<compile_context>
chip_gen: v7x
topology: tpu7x:2x2x1
jax: 0.10.0
libtpu: 0.0.40
codegen_flags: <defaults>
</compile_context>

<pallas_src>
import functools
import math
from typing import NamedTuple

import jax
import jax.numpy as jnp
from jax.experimental import pallas as pl
from jax.experimental.pallas import tpu as pltpu

_LANES = 128
_HEAD_PAD = 128          # linear1 width (30) padded to one full lane tile


def _round_up(x, m):
    return (x + m - 1) // m * m


class MotionDiscriminatorConfig(NamedTuple):
    input_size: int
    hidden_size: int
    hidden_layer: int
    output_size: int = 1


# ----------------------------------------------------------------------------
# Fused kernel: all GRU layers + MLP head in one pallas_call.
# ----------------------------------------------------------------------------
def _make_fused_kernel(num_layers):
    def kernel(*refs):
        x_ref = refs[0]                        # (bb, seq, in0)  batch-major
        h0_ref = refs[1]                       # (L, bb, Hp)
        layer_refs = refs[2:2 + 4 * num_layers]
        w1_ref, b1_ref, w2_ref, b2_ref = refs[2 + 4 * num_layers:
                                              6 + 4 * num_layers]
        lin2_ref = refs[6 + 4 * num_layers]    # (bb, out)
        hn_ref = refs[7 + 4 * num_layers]      # (L, bb, Hp)
        xseq_ref = refs[8 + 4 * num_layers]    # VMEM scratch (bb, seq, Hp)

        bb, seq, _ = x_ref.shape
        Hp = h0_ref.shape[-1]
        # Hoisted whole-sequence projection only when the leading-dim
        # merge/split stays sublane-tile aligned (seq multiple of 8).
        hoist = (seq % 8) == 0

        h = None
        for l in range(num_layers):
            wih = layer_refs[4 * l][...]       # (in_l, 3Hp)  gate cols [r|z|n]
            whh = layer_refs[4 * l + 1][...]   # (Hp, 3Hp)
            bih_eff = layer_refs[4 * l + 2][...]   # (1, 3Hp) = b_ih + [b_hr|b_hz|0]
            # hoist the bias broadcast out of the step loop (no CSE of
            # broadcast_in_dim in JAX).
            bhh_nb = jnp.broadcast_to(layer_refs[4 * l + 3][...], (bb, Hp))

            src_ref = x_ref if l == 0 else xseq_ref   # (bb, seq, in_l)
            in_l = src_ref.shape[-1]

            if hoist:
                # One big matmul for the whole sequence instead of `seq` tiny
                # matmuls under the recurrence.  All reshapes keep the minor
                # dim and split/merge tile-aligned leading dims -> free.
                x_flat = src_ref[...].astype(jnp.float32).reshape(bb * seq, in_l)
                gi_all = jnp.dot(x_flat, wih,
                                 preferred_element_type=jnp.float32) + bih_eff
                gi_all = gi_all.reshape(bb, seq, 3 * Hp)

            h = h0_ref[l]                               # (bb, Hp)
            write_seq = l < num_layers - 1
            # seq is a small compile-time constant -> full static unroll so the
            # scheduler can overlap the hidden matmul with gate math.
            # TODO(synk): for long sequences switch to lax.fori_loop with a
            # chunked gi instead of a full unroll.
            for t in range(seq):
                if hoist:
                    gi_t = gi_all[:, t, :]                       # (bb, 3Hp)
                else:
                    x_t = src_ref[:, t, :].astype(jnp.float32)   # (bb, in_l)
                    gi_t = jnp.dot(x_t, wih,
                                   preferred_element_type=jnp.float32) + bih_eff
                gh = jnp.dot(h, whh, preferred_element_type=jnp.float32)
                r = jax.nn.sigmoid(gi_t[:, 0:Hp] + gh[:, 0:Hp])
                z = jax.nn.sigmoid(gi_t[:, Hp:2 * Hp] + gh[:, Hp:2 * Hp])
                n = jnp.tanh(gi_t[:, 2 * Hp:3 * Hp]
                             + r * (gh[:, 2 * Hp:3 * Hp] + bhh_nb))
                h = n + z * (h - n)                 # == (1-z)*n + z*h
                if write_seq:
                    xseq_ref[:, t, :] = h           # VMEM only; never hits HBM
            hn_ref[l] = h                           # final hidden of this layer

        # MLP head on the last timestep of the last layer (fused in-kernel).
        lin1 = jnp.tanh(jnp.dot(h, w1_ref[...],
                                preferred_element_type=jnp.float32)
                        + b1_ref[...])
        lin2_ref[...] = (jnp.dot(lin1, w2_ref[...],
                                 preferred_element_type=jnp.float32)
                         + b2_ref[...])

    return kernel


def _whole_spec(arr):
    nd = arr.ndim
    return pl.BlockSpec(arr.shape, lambda *_, _nd=nd: (0,) * _nd)


def _pick_batch_block(batch):
    # Split the batch across the grid when it is big enough so a second
    # TensorCore gets half the work; collapses to a single block otherwise.
    for bb in (256, 128, 64, 32, 16, 8):
        if batch % bb == 0 and batch // bb >= 2:
            return bb
    return batch


def _fused_forward(cfg, params, x, h0p):
    batch, seq, in0 = x.shape
    L = cfg.hidden_layer
    Hp = h0p.shape[-1]
    out = cfg.output_size
    bb = _pick_batch_block(batch)
    grid = (batch // bb,)

    inputs = [x, h0p]
    in_specs = [
        pl.BlockSpec((bb, seq, in0), lambda i: (i, 0, 0)),
        pl.BlockSpec((L, bb, Hp), lambda i: (0, i, 0)),
    ]
    for l in range(L):
        for w in params["gru"][l]:
            inputs.append(w)
            in_specs.append(_whole_spec(w))
    for name in ("w1", "b1", "w2", "b2"):
        inputs.append(params[name])
        in_specs.append(_whole_spec(params[name]))

    lin2, hn_p = pl.pallas_call(
        _make_fused_kernel(L),
        grid=grid,
        in_specs=in_specs,
        out_specs=(
            pl.BlockSpec((bb, out), lambda i: (i, 0)),
            pl.BlockSpec((L, bb, Hp), lambda i: (0, i, 0)),
        ),
        out_shape=(
            jax.ShapeDtypeStruct((batch, out), jnp.float32),
            jax.ShapeDtypeStruct((L, batch, Hp), jnp.float32),
        ),
        scratch_shapes=[pltpu.VMEM((bb, seq, Hp), jnp.float32)],
        compiler_params=pltpu.CompilerParams(
            dimension_semantics=("parallel",)),
    )(*inputs)
    return lin2, hn_p


# ----------------------------------------------------------------------------
# Parameters: PyTorch-layout init + conversion to the kernel layout.
# ----------------------------------------------------------------------------
def init_motion_discriminator_params(key, cfg):
    """Raw parameters in PyTorch nn.GRU / nn.Linear layout and init ranges."""
    H, L, out = cfg.hidden_size, cfg.hidden_layer, cfg.output_size
    raw = {"gru": []}
    k = 1.0 / math.sqrt(H)
    keys = jax.random.split(key, 4 * L + 4)
    ki = 0
    for l in range(L):
        in_l = cfg.input_size if l == 0 else H
        w_ih = jax.random.uniform(keys[ki], (3 * H, in_l), jnp.float32, -k, k); ki += 1
        w_hh = jax.random.uniform(keys[ki], (3 * H, H), jnp.float32, -k, k); ki += 1
        b_ih = jax.random.uniform(keys[ki], (3 * H,), jnp.float32, -k, k); ki += 1
        b_hh = jax.random.uniform(keys[ki], (3 * H,), jnp.float32, -k, k); ki += 1
        raw["gru"].append({"w_ih": w_ih, "w_hh": w_hh, "b_ih": b_ih, "b_hh": b_hh})
    k1 = 1.0 / math.sqrt(H)
    raw["linear1"] = {
        "w": jax.random.uniform(keys[ki], (30, H), jnp.float32, -k1, k1),
        "b": jax.random.uniform(keys[ki + 1], (30,), jnp.float32, -k1, k1)}
    ki += 2
    k2 = 1.0 / math.sqrt(30.0)
    raw["linear2"] = {
        "w": jax.random.uniform(keys[ki], (out, 30), jnp.float32, -k2, k2),
        "b": jax.random.uniform(keys[ki + 1], (out,), jnp.float32, -k2, k2)}
    return raw


def prepare_params(cfg, raw):
    """PyTorch layout -> padded / transposed / bias-folded kernel layout.

    Gate order is PyTorch's (r, z, n); hidden is padded to Hp=128 so every gate
    occupies its own 128-lane tile.  b_hr/b_hz are folded into the hoisted
    input-projection bias; b_hn stays separate (it is multiplied by r).
    Zero padding keeps padded hidden lanes identically zero through the
    recurrence (given zero-padded h0), so results match the unpadded GRU.
    """
    H = cfg.hidden_size
    Hp = _round_up(H, _LANES)
    out = cfg.output_size
    kp = {"gru": []}

    def place_gate_cols(w_t, rows):
        # w_t: (in_l, 3H) gate-blocked columns -> (rows, 3Hp), zero padded.
        in_l = w_t.shape[0]
        dst = jnp.zeros((rows, 3 * Hp), jnp.float32)
        for g in range(3):
            dst = dst.at[:in_l, g * Hp:g * Hp + H].set(w_t[:, g * H:(g + 1) * H])
        return dst

    for l in range(cfg.hidden_layer):
        p = raw["gru"][l]
        in_l = p["w_ih"].shape[1]
        rows_ih = in_l if l == 0 else Hp
        wih = place_gate_cols(p["w_ih"].T, rows_ih)                 # (in_l|Hp, 3Hp)
        whh = place_gate_cols(p["w_hh"].T, Hp)                      # (Hp, 3Hp)
        b_ih, b_hh = p["b_ih"], p["b_hh"]
        bih_eff_raw = b_ih + jnp.concatenate(
            [b_hh[:2 * H], jnp.zeros((H,), jnp.float32)])           # fold b_hr, b_hz
        bih_eff = place_gate_cols(bih_eff_raw[None, :], 1)          # (1, 3Hp)
        bhh_n = jnp.zeros((1, Hp), jnp.float32).at[:, :H].set(b_hh[2 * H:])
        kp["gru"].append((wih, whh, bih_eff, bhh_n))

    P1 = _HEAD_PAD
    kp["w1"] = jnp.zeros((Hp, P1), jnp.float32).at[:H, :30].set(raw["linear1"]["w"].T)
    kp["b1"] = jnp.zeros((1, P1), jnp.float32).at[:, :30].set(raw["linear1"]["b"])
    kp["w2"] = jnp.zeros((P1, out), jnp.float32).at[:30, :].set(raw["linear2"]["w"].T)
    kp["b2"] = raw["linear2"]["b"].reshape(1, out).astype(jnp.float32)
    return kp


# ----------------------------------------------------------------------------
# Forward pass (mirrors MotionDiscriminator.forward).
# ----------------------------------------------------------------------------
def motion_discriminator_forward(cfg, params, motion_sequence, hidden_unit=None,
                                 hidden_key=None):
    H, L = cfg.hidden_size, cfg.hidden_layer
    Hp = _round_up(H, _LANES)

    if hidden_unit is None:
        # PyTorch permutes (batch, seq, feat) -> time-major before the GRU; the
        # fused kernel reads batch-major directly, so no wrapper transpose.
        x = motion_sequence
        batch = x.shape[0]
        if hidden_key is None:
            hidden_key = jax.random.PRNGKey(1)
        # TODO(synk): deterministic stand-in for torch.randn initHidden.
        hidden_unit = jax.random.normal(hidden_key, (L, batch, H), jnp.float32)
    else:
        # Caller provides time-major input, matching nn.GRU's expectation.
        x = jnp.transpose(motion_sequence, (1, 0, 2))

    x = x.astype(jnp.float32)
    h0p = jnp.pad(hidden_unit.astype(jnp.float32),
                  ((0, 0), (0, 0), (0, Hp - H)))
    lin2, hn_p = _fused_forward(cfg, params, x, h0p)
    return lin2, hn_p[..., :H]


# ----------------------------------------------------------------------------
# Pure-JAX reference (PyTorch GRU semantics) for a correctness self-check.
# ----------------------------------------------------------------------------
def _reference_forward(cfg, raw, x_bsi, h0):
    H = cfg.hidden_size
    layer_in = jnp.transpose(x_bsi, (1, 0, 2)).astype(jnp.float32)  # (seq,B,in)
    hs = []
    for l in range(cfg.hidden_layer):
        p = raw["gru"][l]
        h = h0[l]
        outs = []
        for t in range(layer_in.shape[0]):
            gi = layer_in[t] @ p["w_ih"].T + p["b_ih"]
            gh = h @ p["w_hh"].T + p["b_hh"]
            r = jax.nn.sigmoid(gi[:, :H] + gh[:, :H])
            z = jax.nn.sigmoid(gi[:, H:2 * H] + gh[:, H:2 * H])
            n = jnp.tanh(gi[:, 2 * H:] + r * gh[:, 2 * H:])
            h = (1.0 - z) * n + z * h
            outs.append(h)
        layer_in = jnp.stack(outs, 0)
        hs.append(h)
    lin1 = jnp.tanh(layer_in[-1] @ raw["linear1"]["w"].T + raw["linear1"]["b"])
    lin2 = lin1 @ raw["linear2"]["w"].T + raw["linear2"]["b"]
    return lin2, jnp.stack(hs, 0)


if __name__ == "__main__":
    INPUT_SIZE = 16
    HIDDEN_SIZE = 32
    HIDDEN_LAYER = 2
    OUTPUT_SIZE = 1
    BATCH = 2
    SEQ = 8

    cfg = MotionDiscriminatorConfig(INPUT_SIZE, HIDDEN_SIZE, HIDDEN_LAYER,
                                    OUTPUT_SIZE)

    root = jax.random.PRNGKey(0)
    k_params, k_data, k_hidden = jax.random.split(root, 3)

    raw = init_motion_discriminator_params(k_params, cfg)
    params = prepare_params(cfg, raw)

    motion_sequence = jax.random.normal(
        k_data, (BATCH, SEQ, INPUT_SIZE), jnp.float32)

    fwd = jax.jit(functools.partial(motion_discriminator_forward, cfg))
    lin2, h_n = fwd(params, motion_sequence, hidden_key=k_hidden)
    jax.block_until_ready((lin2, h_n))

    assert lin2.shape == (BATCH, OUTPUT_SIZE)
    assert h_n.shape == (HIDDEN_LAYER, BATCH, HIDDEN_SIZE)

    # Correctness check against a pure-JAX GRU with identical h0.
    h0_check = jax.random.normal(k_hidden, (HIDDEN_LAYER, BATCH, HIDDEN_SIZE),
                                 jnp.float32)
    ref_lin2, ref_hn = _reference_forward(cfg, raw, motion_sequence, h0_check)
    err1 = float(jnp.max(jnp.abs(lin2 - ref_lin2)))
    err2 = float(jnp.max(jnp.abs(h_n - ref_hn)))
    assert err1 < 5e-3 and err2 < 5e-3, (err1, err2)

    print("KERNEL_OK")
</pallas_src>

<mosaic_0001>
module attributes {stable_mosaic.version = 11 : i64} {
  func.func @kernel(%arg0: i32, %arg1: memref<2x8x16xf32, #tpu.memory_space<vmem>>, %arg2: memref<2x2x128xf32, #tpu.memory_space<vmem>>, %arg3: memref<16x384xf32, #tpu.memory_space<vmem>>, %arg4: memref<128x384xf32, #tpu.memory_space<vmem>>, %arg5: memref<1x384xf32, #tpu.memory_space<vmem>>, %arg6: memref<1x128xf32, #tpu.memory_space<vmem>>, %arg7: memref<128x384xf32, #tpu.memory_space<vmem>>, %arg8: memref<128x384xf32, #tpu.memory_space<vmem>>, %arg9: memref<1x384xf32, #tpu.memory_space<vmem>>, %arg10: memref<1x128xf32, #tpu.memory_space<vmem>>, %arg11: memref<128x128xf32, #tpu.memory_space<vmem>>, %arg12: memref<1x128xf32, #tpu.memory_space<vmem>>, %arg13: memref<128x1xf32, #tpu.memory_space<vmem>>, %arg14: memref<1x1xf32, #tpu.memory_space<vmem>>, %arg15: memref<2x1xf32, #tpu.memory_space<vmem>>, %arg16: memref<2x2x128xf32, #tpu.memory_space<vmem>>, %arg17: memref<2x8x128xf32, #tpu.memory_space<vmem>>) attributes {dimension_semantics = [#tpu.dimension_semantics<parallel>], iteration_bounds = array<i64: 1>, scalar_prefetch = 0 : i64, scratch_operands = 1 : i64, tpu.core_type = #tpu.core_type<tc>, window_params = [{transform_indices = @transform_0, window_bounds = array<i64: 2, 8, 16>}, {transform_indices = @transform_1, window_bounds = array<i64: 2, 2, 128>}, {pipeline_mode = #tpu.pipeline_mode<synchronous>, transform_indices = @transform_2, window_bounds = array<i64: 16, 384>}, {pipeline_mode = #tpu.pipeline_mode<synchronous>, transform_indices = @transform_3, window_bounds = array<i64: 128, 384>}, {pipeline_mode = #tpu.pipeline_mode<synchronous>, transform_indices = @transform_4, window_bounds = array<i64: 1, 384>}, {pipeline_mode = #tpu.pipeline_mode<synchronous>, transform_indices = @transform_5, window_bounds = array<i64: 1, 128>}, {pipeline_mode = #tpu.pipeline_mode<synchronous>, transform_indices = @transform_6, window_bounds = array<i64: 128, 384>}, {pipeline_mode = #tpu.pipeline_mode<synchronous>, transform_indices = @transform_7, window_bounds = array<i64: 128, 384>}, {pipeline_mode = #tpu.pipeline_mode<synchronous>, transform_indices = @transform_8, window_bounds = array<i64: 1, 384>}, {pipeline_mode = #tpu.pipeline_mode<synchronous>, transform_indices = @transform_9, window_bounds = array<i64: 1, 128>}, {pipeline_mode = #tpu.pipeline_mode<synchronous>, transform_indices = @transform_10, window_bounds = array<i64: 128, 128>}, {pipeline_mode = #tpu.pipeline_mode<synchronous>, transform_indices = @transform_11, window_bounds = array<i64: 1, 128>}, {pipeline_mode = #tpu.pipeline_mode<synchronous>, transform_indices = @transform_12, window_bounds = array<i64: 128, 1>}, {pipeline_mode = #tpu.pipeline_mode<synchronous>, transform_indices = @transform_13, window_bounds = array<i64: 1, 1>}, {transform_indices = @transform_14, window_bounds = array<i64: 2, 1>}, {transform_indices = @transform_15, window_bounds = array<i64: 2, 2, 128>}]} {
    %c0 = arith.constant 0 : index
    %c0_0 = arith.constant 0 : index
    %0 = vector.load %arg3[%c0, %c0_0] : memref<16x384xf32, #tpu.memory_space<vmem>>, vector<16x384xf32>
    %c0_1 = arith.constant 0 : index
    %c0_2 = arith.constant 0 : index
    %1 = vector.load %arg4[%c0_1, %c0_2] : memref<128x384xf32, #tpu.memory_space<vmem>>, vector<128x384xf32>
    %c0_3 = arith.constant 0 : index
    %c0_4 = arith.constant 0 : index
    %2 = vector.load %arg5[%c0_3, %c0_4] : memref<1x384xf32, #tpu.memory_space<vmem>>, vector<1x384xf32>
    %c0_5 = arith.constant 0 : index
    %c0_6 = arith.constant 0 : index
    %3 = vector.load %arg6[%c0_5, %c0_6] : memref<1x128xf32, #tpu.memory_space<vmem>>, vector<1x128xf32>
    %4 = vector.shape_cast %3 : vector<1x128xf32> to vector<1x128xf32>
    %5 = vector.broadcast %4 : vector<1x128xf32> to vector<2x128xf32>
    %c0_7 = arith.constant 0 : index
    %c0_8 = arith.constant 0 : index
    %c0_9 = arith.constant 0 : index
    %6 = vector.load %arg1[%c0_7, %c0_8, %c0_9] : memref<2x8x16xf32, #tpu.memory_space<vmem>>, vector<2x8x16xf32>
    %7 = vector.shape_cast %6 : vector<2x8x16xf32> to vector<16x16xf32>
    %cst = arith.constant dense<0.000000e+00> : vector<16x384xf32>
    %8 = tpu.matmul %7, %0, %cst {dimension_numbers = #tpu.dot_dimension_numbers<[1], [0], [0], [1], [0, 0, 1, 1], [], []>} : vector<16x16xf32>, vector<16x384xf32>, vector<16x384xf32> -> vector<16x384xf32>
    %9 = vector.broadcast %2 : vector<1x384xf32> to vector<16x384xf32>
    %10 = arith.addf %8, %9 : vector<16x384xf32>
    %11 = vector.shape_cast %10 : vector<16x384xf32> to vector<2x8x384xf32>
    %c0_10 = arith.constant 0 : index
    %c0_11 = arith.constant 0 : index
    %c0_12 = arith.constant 0 : index
    %12 = vector.load %arg2[%c0_10, %c0_11, %c0_12] : memref<2x2x128xf32, #tpu.memory_space<vmem>>, vector<1x2x128xf32>
    %13 = vector.shape_cast %12 : vector<1x2x128xf32> to vector<2x128xf32>
    %14 = vector.extract_strided_slice %11 {offsets = [0, 0, 0], sizes = [2, 1, 384], strides = [1, 1, 1]} : vector<2x8x384xf32> to vector<2x1x384xf32>
    %15 = vector.shape_cast %14 : vector<2x1x384xf32> to vector<2x384xf32>
    %cst_13 = arith.constant dense<0.000000e+00> : vector<2x384xf32>
    %16 = tpu.matmul %13, %1, %cst_13 {dimension_numbers = #tpu.dot_dimension_numbers<[1], [0], [0], [1], [0, 0, 1, 1], [], []>} : vector<2x128xf32>, vector<128x384xf32>, vector<2x384xf32> -> vector<2x384xf32>
    %17 = vector.extract_strided_slice %15 {offsets = [0, 0], sizes = [2, 128], strides = [1, 1]} : vector<2x384xf32> to vector<2x128xf32>
    %18 = vector.extract_strided_slice %16 {offsets = [0, 0], sizes = [2, 128], strides = [1, 1]} : vector<2x384xf32> to vector<2x128xf32>
    %19 = arith.addf %17, %18 : vector<2x128xf32>
    %20 = arith.negf %19 : vector<2x128xf32>
    %21 = math.exp %20 : vector<2x128xf32>
    %cst_14 = arith.constant 1.000000e+00 : f32
    %22 = vector.broadcast %cst_14 : f32 to vector<2x128xf32>
    %23 = arith.addf %22, %21 : vector<2x128xf32>
    %24 = arith.divf %22, %23 : vector<2x128xf32>
    %25 = vector.extract_strided_slice %15 {offsets = [0, 128], sizes = [2, 128], strides = [1, 1]} : vector<2x384xf32> to vector<2x128xf32>
    %26 = vector.extract_strided_slice %16 {offsets = [0, 128], sizes = [2, 128], strides = [1, 1]} : vector<2x384xf32> to vector<2x128xf32>
    %27 = arith.addf %25, %26 : vector<2x128xf32>
    %28 = arith.negf %27 : vector<2x128xf32>
    %29 = math.exp %28 : vector<2x128xf32>
    %cst_15 = arith.constant 1.000000e+00 : f32
    %30 = vector.broadcast %cst_15 : f32 to vector<2x128xf32>
    %31 = arith.addf %30, %29 : vector<2x128xf32>
    %32 = arith.divf %30, %31 : vector<2x128xf32>
    %33 = vector.extract_strided_slice %15 {offsets = [0, 256], sizes = [2, 128], strides = [1, 1]} : vector<2x384xf32> to vector<2x128xf32>
    %34 = vector.extract_strided_slice %16 {offsets = [0, 256], sizes = [2, 128], strides = [1, 1]} : vector<2x384xf32> to vector<2x128xf32>
    %35 = arith.addf %34, %5 : vector<2x128xf32>
    %36 = arith.mulf %24, %35 : vector<2x128xf32>
    %37 = arith.addf %33, %36 : vector<2x128xf32>
    %38 = math.tanh %37 : vector<2x128xf32>
    %39 = arith.subf %13, %38 : vector<2x128xf32>
    %40 = arith.mulf %32, %39 : vector<2x128xf32>
    %41 = arith.addf %38, %40 : vector<2x128xf32>
    %c0_16 = arith.constant 0 : index
    %c0_17 = arith.constant 0 : index
    %c0_18 = arith.constant 0 : index
    %42 = vector.load %arg17[%c0_16, %c0_17, %c0_18] : memref<2x8x128xf32, #tpu.memory_space<vmem>>, vector<2x1x128xf32>
    %43 = vector.shape_cast %42 : vector<2x1x128xf32> to vector<2x128xf32>
    %44 = vector.shape_cast %41 : vector<2x128xf32> to vector<2x1x128xf32>
    tpu.vector_store %arg17[%c0_16, %c0_17, %c0_18], %44 {strides = array<i32>} : memref<2x8x128xf32, #tpu.memory_space<vmem>>, vector<2x1x128xf32>,
    %45 = vector.extract_strided_slice %11 {offsets = [0, 1, 0], sizes = [2, 1, 384], strides = [1, 1, 1]} : vector<2x8x384xf32> to vector<2x1x384xf32>
    %46 = vector.shape_cast %45 : vector<2x1x384xf32> to vector<2x384xf32>
    %cst_19 = arith.constant dense<0.000000e+00> : vector<2x384xf32>
    %47 = tpu.matmul %41, %1, %cst_19 {dimension_numbers = #tpu.dot_dimension_numbers<[1], [0], [0], [1], [0, 0, 1, 1], [], []>} : vector<2x128xf32>, vector<128x384xf32>, vector<2x384xf32> -> vector<2x384xf32>
    %48 = vector.extract_strided_slice %46 {offsets = [0, 0], sizes = [2, 128], strides = [1, 1]} : vector<2x384xf32> to vector<2x128xf32>
    %49 = vector.extract_strided_slice %47 {offsets = [0, 0], sizes = [2, 128], strides = [1, 1]} : vector<2x384xf32> to vector<2x128xf32>
    %50 = arith.addf %48, %49 : vector<2x128xf32>
    %51 = arith.negf %50 : vector<2x128xf32>
    %52 = math.exp %51 : vector<2x128xf32>
    %cst_20 = arith.constant 1.000000e+00 : f32
    %53 = vector.broadcast %cst_20 : f32 to vector<2x128xf32>
    %54 = arith.addf %53, %52 : vector<2x128xf32>
    %55 = arith.divf %53, %54 : vector<2x128xf32>
    %56 = vector.extract_strided_slice %46 {offsets = [0, 128], sizes = [2, 128], strides = [1, 1]} : vector<2x384xf32> to vector<2x128xf32>
    %57 = vector.extract_strided_slice %47 {offsets = [0, 128], sizes = [2, 128], strides = [1, 1]} : vector<2x384xf32> to vector<2x128xf32>
    %58 = arith.addf %56, %57 : vector<2x128xf32>
    %59 = arith.negf %58 : vector<2x128xf32>
    %60 = math.exp %59 : vector<2x128xf32>
    %cst_21 = arith.constant 1.000000e+00 : f32
    %61 = vector.broadcast %cst_21 : f32 to vector<2x128xf32>
    %62 = arith.addf %61, %60 : vector<2x128xf32>
    %63 = arith.divf %61, %62 : vector<2x128xf32>
    %64 = vector.extract_strided_slice %46 {offsets = [0, 256], sizes = [2, 128], strides = [1, 1]} : vector<2x384xf32> to vector<2x128xf32>
    %65 = vector.extract_strided_slice %47 {offsets = [0, 256], sizes = [2, 128], strides = [1, 1]} : vector<2x384xf32> to vector<2x128xf32>
    %66 = arith.addf %65, %5 : vector<2x128xf32>
    %67 = arith.mulf %55, %66 : vector<2x128xf32>
    %68 = arith.addf %64, %67 : vector<2x128xf32>
    %69 = math.tanh %68 : vector<2x128xf32>
    %70 = arith.subf %41, %69 : vector<2x128xf32>
    %71 = arith.mulf %63, %70 : vector<2x128xf32>
    %72 = arith.addf %69, %71 : vector<2x128xf32>
    %c0_22 = arith.constant 0 : index
    %c1 = arith.constant 1 : index
    %c0_23 = arith.constant 0 : index
    %73 = vector.load %arg17[%c0_22, %c1, %c0_23] : memref<2x8x128xf32, #tpu.memory_space<vmem>>, vector<2x1x128xf32>
    %74 = vector.shape_cast %73 : vector<2x1x128xf32> to vector<2x128xf32>
    %75 = vector.shape_cast %72 : vector<2x128xf32> to vector<2x1x128xf32>
    tpu.vector_store %arg17[%c0_22, %c1, %c0_23], %75 {strides = array<i32>} : memref<2x8x128xf32, #tpu.memory_space<vmem>>, vector<2x1x128xf32>,
    %76 = vector.extract_strided_slice %11 {offsets = [0, 2, 0], sizes = [2, 1, 384], strides = [1, 1, 1]} : vector<2x8x384xf32> to vector<2x1x384xf32>
    %77 = vector.shape_cast %76 : vector<2x1x384xf32> to vector<2x384xf32>
    %cst_24 = arith.constant dense<0.000000e+00> : vector<2x384xf32>
    %78 = tpu.matmul %72, %1, %cst_24 {dimension_numbers = #tpu.dot_dimension_numbers<[1], [0], [0], [1], [0, 0, 1, 1], [], []>} : vector<2x128xf32>, vector<128x384xf32>, vector<2x384xf32> -> vector<2x384xf32>
    %79 = vector.extract_strided_slice %77 {offsets = [0, 0], sizes = [2, 128], strides = [1, 1]} : vector<2x384xf32> to vector<2x128xf32>
    %80 = vector.extract_strided_slice %78 {offsets = [0, 0], sizes = [2, 128], strides = [1, 1]} : vector<2x384xf32> to vector<2x128xf32>
    %81 = arith.addf %79, %80 : vector<2x128xf32>
    %82 = arith.negf %81 : vector<2x128xf32>
    %83 = math.exp %82 : vector<2x128xf32>
    %cst_25 = arith.constant 1.000000e+00 : f32
    %84 = vector.broadcast %cst_25 : f32 to vector<2x128xf32>
    %85 = arith.addf %84, %83 : vector<2x128xf32>
    %86 = arith.divf %84, %85 : vector<2x128xf32>
    %87 = vector.extract_strided_slice %77 {offsets = [0, 128], sizes = [2, 128], strides = [1, 1]} : vector<2x384xf32> to vector<2x128xf32>
    %88 = vector.extract_strided_slice %78 {offsets = [0, 128], sizes = [2, 128], strides = [1, 1]} : vector<2x384xf32> to vector<2x128xf32>
    %89 = arith.addf %87, %88 : vector<2x128xf32>
    %90 = arith.negf %89 : vector<2x128xf32>
    %91 = math.exp %90 : vector<2x128xf32>
    %cst_26 = arith.constant 1.000000e+00 : f32
    %92 = vector.broadcast %cst_26 : f32 to vector<2x128xf32>
    %93 = arith.addf %92, %91 : vector<2x128xf32>
    %94 = arith.divf %92, %93 : vector<2x128xf32>
    %95 = vector.extract_strided_slice %77 {offsets = [0, 256], sizes = [2, 128], strides = [1, 1]} : vector<2x384xf32> to vector<2x128xf32>
    %96 = vector.extract_strided_slice %78 {offsets = [0, 256], sizes = [2, 128], strides = [1, 1]} : vector<2x384xf32> to vector<2x128xf32>
    %97 = arith.addf %96, %5 : vector<2x128xf32>
    %98 = arith.mulf %86, %97 : vector<2x128xf32>
    %99 = arith.addf %95, %98 : vector<2x128xf32>
    %100 = math.tanh %99 : vector<2x128xf32>
    %101 = arith.subf %72, %100 : vector<2x128xf32>
    %102 = arith.mulf %94, %101 : vector<2x128xf32>
    %103 = arith.addf %100, %102 : vector<2x128xf32>
    %c0_27 = arith.constant 0 : index
    %c2 = arith.constant 2 : index
    %c0_28 = arith.constant 0 : index
    %104 = vector.load %arg17[%c0_27, %c2, %c0_28] : memref<2x8x128xf32, #tpu.memory_space<vmem>>, vector<2x1x128xf32>
    %105 = vector.shape_cast %104 : vector<2x1x128xf32> to vector<2x128xf32>
    %106 = vector.shape_cast %103 : vector<2x128xf32> to vector<2x1x128xf32>
    tpu.vector_store %arg17[%c0_27, %c2, %c0_28], %106 {strides = array<i32>} : memref<2x8x128xf32, #tpu.memory_space<vmem>>, vector<2x1x128xf32>,
    %107 = vector.extract_strided_slice %11 {offsets = [0, 3, 0], sizes = [2, 1, 384], strides = [1, 1, 1]} : vector<2x8x384xf32> to vector<2x1x384xf32>
    %108 = vector.shape_cast %107 : vector<2x1x384xf32> to vector<2x384xf32>
    %cst_29 = arith.constant dense<0.000000e+00> : vector<2x384xf32>
    %109 = tpu.matmul %103, %1, %cst_29 {dimension_numbers = #tpu.dot_dimension_numbers<[1], [0], [0], [1], [0, 0, 1, 1], [], []>} : vector<2x128xf32>, vector<128x384xf32>, vector<2x384xf32> -> vector<2x384xf32>
    %110 = vector.extract_strided_slice %108 {offsets = [0, 0], sizes = [2, 128], strides = [1, 1]} : vector<2x384xf32> to vector<2x128xf32>
    %111 = vector.extract_strided_slice %109 {offsets = [0, 0], sizes = [2, 128], strides = [1, 1]} : vector<2x384xf32> to vector<2x128xf32>
    %112 = arith.addf %110, %111 : vector<2x128xf32>
    %113 = arith.negf %112 : vector<2x128xf32>
    %114 = math.exp %113 : vector<2x128xf32>
    %cst_30 = arith.constant 1.000000e+00 : f32
    %115 = vector.broadcast %cst_30 : f32 to vector<2x128xf32>
    %116 = arith.addf %115, %114 : vector<2x128xf32>
    %117 = arith.divf %115, %116 : vector<2x128xf32>
    %118 = vector.extract_strided_slice %108 {offsets = [0, 128], sizes = [2, 128], strides = [1, 1]} : vector<2x384xf32> to vector<2x128xf32>
    %119 = vector.extract_strided_slice %109 {offsets = [0, 128], sizes = [2, 128], strides = [1, 1]} : vector<2x384xf32> to vector<2x128xf32>
    %120 = arith.addf %118, %119 : vector<2x128xf32>
    %121 = arith.negf %120 : vector<2x128xf32>
    %122 = math.exp %121 : vector<2x128xf32>
    %cst_31 = arith.constant 1.000000e+00 : f32
    %123 = vector.broadcast %cst_31 : f32 to vector<2x128xf32>
    %124 = arith.addf %123, %122 : vector<2x128xf32>
    %125 = arith.divf %123, %124 : vector<2x128xf32>
    %126 = vector.extract_strided_slice %108 {offsets = [0, 256], sizes = [2, 128], strides = [1, 1]} : vector<2x384xf32> to vector<2x128xf32>
    %127 = vector.extract_strided_slice %109 {offsets = [0, 256], sizes = [2, 128], strides = [1, 1]} : vector<2x384xf32> to vector<2x128xf32>
    %128 = arith.addf %127, %5 : vector<2x128xf32>
    %129 = arith.mulf %117, %128 : vector<2x128xf32>
    %130 = arith.addf %126, %129 : vector<2x128xf32>
    %131 = math.tanh %130 : vector<2x128xf32>
    %132 = arith.subf %103, %131 : vector<2x128xf32>
    %133 = arith.mulf %125, %132 : vector<2x128xf32>
    %134 = arith.addf %131, %133 : vector<2x128xf32>
    %c0_32 = arith.constant 0 : index
    %c3 = arith.constant 3 : index
    %c0_33 = arith.constant 0 : index
    %135 = vector.load %arg17[%c0_32, %c3, %c0_33] : memref<2x8x128xf32, #tpu.memory_space<vmem>>, vector<2x1x128xf32>
    %136 = vector.shape_cast %135 : vector<2x1x128xf32> to vector<2x128xf32>
    %137 = vector.shape_cast %134 : vector<2x128xf32> to vector<2x1x128xf32>
    tpu.vector_store %arg17[%c0_32, %c3, %c0_33], %137 {strides = array<i32>} : memref<2x8x128xf32, #tpu.memory_space<vmem>>, vector<2x1x128xf32>,
    %138 = vector.extract_strided_slice %11 {offsets = [0, 4, 0], sizes = [2, 1, 384], strides = [1, 1, 1]} : vector<2x8x384xf32> to vector<2x1x384xf32>
    %139 = vector.shape_cast %138 : vector<2x1x384xf32> to vector<2x384xf32>
    %cst_34 = arith.constant dense<0.000000e+00> : vector<2x384xf32>
    %140 = tpu.matmul %134, %1, %cst_34 {dimension_numbers = #tpu.dot_dimension_numbers<[1], [0], [0], [1], [0, 0, 1, 1], [], []>} : vector<2x128xf32>, vector<128x384xf32>, vector<2x384xf32> -> vector<2x384xf32>
    %141 = vector.extract_strided_slice %139 {offsets = [0, 0], sizes = [2, 128], strides = [1, 1]} : vector<2x384xf32> to vector<2x128xf32>
    %142 = vector.extract_strided_slice %140 {offsets = [0, 0], sizes = [2, 128], strides = [1, 1]} : vector<2x384xf32> to vector<2x128xf32>
    %143 = arith.addf %141, %142 : vector<2x128xf32>
    %144 = arith.negf %143 : vector<2x128xf32>
    %145 = math.exp %144 : vector<2x128xf32>
    %cst_35 = arith.constant 1.000000e+00 : f32
    %146 = vector.broadcast %cst_35 : f32 to vector<2x128xf32>
    %147 = arith.addf %146, %145 : vector<2x128xf32>
    %148 = arith.divf %146, %147 : vector<2x128xf32>
    %149 = vector.extract_strided_slice %139 {offsets = [0, 128], sizes = [2, 128], strides = [1, 1]} : vector<2x384xf32> to vector<2x128xf32>
    %150 = vector.extract_strided_slice %140 {offsets = [0, 128], sizes = [2, 128], strides = [1, 1]} : vector<2x384xf32> to vector<2x128xf32>
    %151 = arith.addf %149, %150 : vector<2x128xf32>
    %152 = arith.negf %151 : vector<2x128xf32>
    %153 = math.exp %152 : vector<2x128xf32>
    %cst_36 = arith.constant 1.000000e+00 : f32
    %154 = vector.broadcast %cst_36 : f32 to vector<2x128xf32>
    %155 = arith.addf %154, %153 : vector<2x128xf32>
    %156 = arith.divf %154, %155 : vector<2x128xf32>
    %157 = vector.extract_strided_slice %139 {offsets = [0, 256], sizes = [2, 128], strides = [1, 1]} : vector<2x384xf32> to vector<2x128xf32>
    %158 = vector.extract_strided_slice %140 {offsets = [0, 256], sizes = [2, 128], strides = [1, 1]} : vector<2x384xf32> to vector<2x128xf32>
    %159 = arith.addf %158, %5 : vector<2x128xf32>
    %160 = arith.mulf %148, %159 : vector<2x128xf32>
    %161 = arith.addf %157, %160 : vector<2x128xf32>
    %162 = math.tanh %161 : vector<2x128xf32>
    %163 = arith.subf %134, %162 : vector<2x128xf32>
    %164 = arith.mulf %156, %163 : vector<2x128xf32>
    %165 = arith.addf %162, %164 : vector<2x128xf32>
    %c0_37 = arith.constant 0 : index
    %c4 = arith.constant 4 : index
    %c0_38 = arith.constant 0 : index
    %166 = vector.load %arg17[%c0_37, %c4, %c0_38] : memref<2x8x128xf32, #tpu.memory_space<vmem>>, vector<2x1x128xf32>
    %167 = vector.shape_cast %166 : vector<2x1x128xf32> to vector<2x128xf32>
    %168 = vector.shape_cast %165 : vector<2x128xf32> to vector<2x1x128xf32>
    tpu.vector_store %arg17[%c0_37, %c4, %c0_38], %168 {strides = array<i32>} : memref<2x8x128xf32, #tpu.memory_space<vmem>>, vector<2x1x128xf32>,
    %169 = vector.extract_strided_slice %11 {offsets = [0, 5, 0], sizes = [2, 1, 384], strides = [1, 1, 1]} : vector<2x8x384xf32> to vector<2x1x384xf32>
    %170 = vector.shape_cast %169 : vector<2x1x384xf32> to vector<2x384xf32>
    %cst_39 = arith.constant dense<0.000000e+00> : vector<2x384xf32>
    %171 = tpu.matmul %165, %1, %cst_39 {dimension_numbers = #tpu.dot_dimension_numbers<[1], [0], [0], [1], [0, 0, 1, 1], [], []>} : vector<2x128xf32>, vector<128x384xf32>, vector<2x384xf32> -> vector<2x384xf32>
    %172 = vector.extract_strided_slice %170 {offsets = [0, 0], sizes = [2, 128], strides = [1, 1]} : vector<2x384xf32> to vector<2x128xf32>
    %173 = vector.extract_strided_slice %171 {offsets = [0, 0], sizes = [2, 128], strides = [1, 1]} : vector<2x384xf32> to vector<2x128xf32>
    %174 = arith.addf %172, %173 : vector<2x128xf32>
    %175 = arith.negf %174 : vector<2x128xf32>
    %176 = math.exp %175 : vector<2x128xf32>
    %cst_40 = arith.constant 1.000000e+00 : f32
    %177 = vector.broadcast %cst_40 : f32 to vector<2x128xf32>
    %178 = arith.addf %177, %176 : vector<2x128xf32>
    %179 = arith.divf %177, %178 : vector<2x128xf32>
    %180 = vector.extract_strided_slice %170 {offsets = [0, 128], sizes = [2, 128], strides = [1, 1]} : vector<2x384xf32> to vector<2x128xf32>
    %181 = vector.extract_strided_slice %171 {offsets = [0, 128], sizes = [2, 128], strides = [1, 1]} : vector<2x384xf32> to vector<2x128xf32>
    %182 = arith.addf %180, %181 : vector<2x128xf32>
    %183 = arith.negf %182 : vector<2x128xf32>
    %184 = math.exp %183 : vector<2x128xf32>
    %cst_41 = arith.constant 1.000000e+00 : f32
    %185 = vector.broadcast %cst_41 : f32 to vector<2x128xf32>
    %186 = arith.addf %185, %184 : vector<2x128xf32>
    %187 = arith.divf %185, %186 : vector<2x128xf32>
    %188 = vector.extract_strided_slice %170 {offsets = [0, 256], sizes = [2, 128], strides = [1, 1]} : vector<2x384xf32> to vector<2x128xf32>
    %189 = vector.extract_strided_slice %171 {offsets = [0, 256], sizes = [2, 128], strides = [1, 1]} : vector<2x384xf32> to vector<2x128xf32>
    %190 = arith.addf %189, %5 : vector<2x128xf32>
    %191 = arith.mulf %179, %190 : vector<2x128xf32>
    %192 = arith.addf %188, %191 : vector<2x128xf32>
    %193 = math.tanh %192 : vector<2x128xf32>
    %194 = arith.subf %165, %193 : vector<2x128xf32>
    %195 = arith.mulf %187, %194 : vector<2x128xf32>
    %196 = arith.addf %193, %195 : vector<2x128xf32>
    %c0_42 = arith.constant 0 : index
    %c5 = arith.constant 5 : index
    %c0_43 = arith.constant 0 : index
    %197 = vector.load %arg17[%c0_42, %c5, %c0_43] : memref<2x8x128xf32, #tpu.memory_space<vmem>>, vector<2x1x128xf32>
    %198 = vector.shape_cast %197 : vector<2x1x128xf32> to vector<2x128xf32>
    %199 = vector.shape_cast %196 : vector<2x128xf32> to vector<2x1x128xf32>
    tpu.vector_store %arg17[%c0_42, %c5, %c0_43], %199 {strides = array<i32>} : memref<2x8x128xf32, #tpu.memory_space<vmem>>, vector<2x1x128xf32>,
    %200 = vector.extract_strided_slice %11 {offsets = [0, 6, 0], sizes = [2, 1, 384], strides = [1, 1, 1]} : vector<2x8x384xf32> to vector<2x1x384xf32>
    %201 = vector.shape_cast %200 : vector<2x1x384xf32> to vector<2x384xf32>
    %cst_44 = arith.constant dense<0.000000e+00> : vector<2x384xf32>
    %202 = tpu.matmul %196, %1, %cst_44 {dimension_numbers = #tpu.dot_dimension_numbers<[1], [0], [0], [1], [0, 0, 1, 1], [], []>} : vector<2x128xf32>, vector<128x384xf32>, vector<2x384xf32> -> vector<2x384xf32>
    %203 = vector.extract_strided_slice %201 {offsets = [0, 0], sizes = [2, 128], strides = [1, 1]} : vector<2x384xf32> to vector<2x128xf32>
    %204 = vector.extract_strided_slice %202 {offsets = [0, 0], sizes = [2, 128], strides = [1, 1]} : vector<2x384xf32> to vector<2x128xf32>
    %205 = arith.addf %203, %204 : vector<2x128xf32>
    %206 = arith.negf %205 : vector<2x128xf32>
    %207 = math.exp %206 : vector<2x128xf32>
    %cst_45 = arith.constant 1.000000e+00 : f32
    %208 = vector.broadcast %cst_45 : f32 to vector<2x128xf32>
    %209 = arith.addf %208, %207 : vector<2x128xf32>
    %210 = arith.divf %208, %209 : vector<2x128xf32>
    %211 = vector.extract_strided_slice %201 {offsets = [0, 128], sizes = [2, 128], strides = [1, 1]} : vector<2x384xf32> to vector<2x128xf32>
    %212 = vector.extract_strided_slice %202 {offsets = [0, 128], sizes = [2, 128], strides = [1, 1]} : vector<2x384xf32> to vector<2x128xf32>
    %213 = arith.addf %211, %212 : vector<2x128xf32>
    %214 = arith.negf %213 : vector<2x128xf32>
    %215 = math.exp %214 : vector<2x128xf32>
    %cst_46 = arith.constant 1.000000e+00 : f32
    %216 = vector.broadcast %cst_46 : f32 to vector<2x128xf32>
    %217 = arith.addf %216, %215 : vector<2x128xf32>
    %218 = arith.divf %216, %217 : vector<2x128xf32>
    %219 = vector.extract_strided_slice %201 {offsets = [0, 256], sizes = [2, 128], strides = [1, 1]} : vector<2x384xf32> to vector<2x128xf32>
    %220 = vector.extract_strided_slice %202 {offsets = [0, 256], sizes = [2, 128], strides = [1, 1]} : vector<2x384xf32> to vector<2x128xf32>
    %221 = arith.addf %220, %5 : vector<2x128xf32>
    %222 = arith.mulf %210, %221 : vector<2x128xf32>
    %223 = arith.addf %219, %222 : vector<2x128xf32>
    %224 = math.tanh %223 : vector<2x128xf32>
    %225 = arith.subf %196, %224 : vector<2x128xf32>
    %226 = arith.mulf %218, %225 : vector<2x128xf32>
    %227 = arith.addf %224, %226 : vector<2x128xf32>
    %c0_47 = arith.constant 0 : index
    %c6 = arith.constant 6 : index
    %c0_48 = arith.constant 0 : index
    %228 = vector.load %arg17[%c0_47, %c6, %c0_48] : memref<2x8x128xf32, #tpu.memory_space<vmem>>, vector<2x1x128xf32>
    %229 = vector.shape_cast %228 : vector<2x1x128xf32> to vector<2x128xf32>
    %230 = vector.shape_cast %227 : vector<2x128xf32> to vector<2x1x128xf32>
    tpu.vector_store %arg17[%c0_47, %c6, %c0_48], %230 {strides = array<i32>} : memref<2x8x128xf32, #tpu.memory_space<vmem>>, vector<2x1x128xf32>,
    %231 = vector.extract_strided_slice %11 {offsets = [0, 7, 0], sizes = [2, 1, 384], strides = [1, 1, 1]} : vector<2x8x384xf32> to vector<2x1x384xf32>
    %232 = vector.shape_cast %231 : vector<2x1x384xf32> to vector<2x384xf32>
    %cst_49 = arith.constant dense<0.000000e+00> : vector<2x384xf32>
    %233 = tpu.matmul %227, %1, %cst_49 {dimension_numbers = #tpu.dot_dimension_numbers<[1], [0], [0], [1], [0, 0, 1, 1], [], []>} : vector<2x128xf32>, vector<128x384xf32>, vector<2x384xf32> -> vector<2x384xf32>
    %234 = vector.extract_strided_slice %232 {offsets = [0, 0], sizes = [2, 128], strides = [1, 1]} : vector<2x384xf32> to vector<2x128xf32>
    %235 = vector.extract_strided_slice %233 {offsets = [0, 0], sizes = [2, 128], strides = [1, 1]} : vector<2x384xf32> to vector<2x128xf32>
    %236 = arith.addf %234, %235 : vector<2x128xf32>
    %237 = arith.negf %236 : vector<2x128xf32>
    %238 = math.exp %237 : vector<2x128xf32>
    %cst_50 = arith.constant 1.000000e+00 : f32
    %239 = vector.broadcast %cst_50 : f32 to vector<2x128xf32>
    %240 = arith.addf %239, %238 : vector<2x128xf32>
    %241 = arith.divf %239, %240 : vector<2x128xf32>
    %242 = vector.extract_strided_slice %232 {offsets = [0, 128], sizes = [2, 128], strides = [1, 1]} : vector<2x384xf32> to vector<2x128xf32>
    %243 = vector.extract_strided_slice %233 {offsets = [0, 128], sizes = [2, 128], strides = [1, 1]} : vector<2x384xf32> to vector<2x128xf32>
    %244 = arith.addf %242, %243 : vector<2x128xf32>
    %245 = arith.negf %244 : vector<2x128xf32>
    %246 = math.exp %245 : vector<2x128xf32>
    %cst_51 = arith.constant 1.000000e+00 : f32
    %247 = vector.broadcast %cst_51 : f32 to vector<2x128xf32>
    %248 = arith.addf %247, %246 : vector<2x128xf32>
    %249 = arith.divf %247, %248 : vector<2x128xf32>
    %250 = vector.extract_strided_slice %232 {offsets = [0, 256], sizes = [2, 128], strides = [1, 1]} : vector<2x384xf32> to vector<2x128xf32>
    %251 = vector.extract_strided_slice %233 {offsets = [0, 256], sizes = [2, 128], strides = [1, 1]} : vector<2x384xf32> to vector<2x128xf32>
    %252 = arith.addf %251, %5 : vector<2x128xf32>
    %253 = arith.mulf %241, %252 : vector<2x128xf32>
    %254 = arith.addf %250, %253 : vector<2x128xf32>
    %255 = math.tanh %254 : vector<2x128xf32>
    %256 = arith.subf %227, %255 : vector<2x128xf32>
    %257 = arith.mulf %249, %256 : vector<2x128xf32>
    %258 = arith.addf %255, %257 : vector<2x128xf32>
    %c0_52 = arith.constant 0 : index
    %c7 = arith.constant 7 : index
    %c0_53 = arith.constant 0 : index
    %259 = vector.load %arg17[%c0_52, %c7, %c0_53] : memref<2x8x128xf32, #tpu.memory_space<vmem>>, vector<2x1x128xf32>
    %260 = vector.shape_cast %259 : vector<2x1x128xf32> to vector<2x128xf32>
    %261 = vector.shape_cast %258 : vector<2x128xf32> to vector<2x1x128xf32>
    tpu.vector_store %arg17[%c0_52, %c7, %c0_53], %261 {strides = array<i32>} : memref<2x8x128xf32, #tpu.memory_space<vmem>>, vector<2x1x128xf32>,
    %c0_54 = arith.constant 0 : index
    %c0_55 = arith.constant 0 : index
    %c0_56 = arith.constant 0 : index
    %262 = vector.load %arg16[%c0_54, %c0_55, %c0_56] : memref<2x2x128xf32, #tpu.memory_space<vmem>>, vector<1x2x128xf32>
    %263 = vector.shape_cast %262 : vector<1x2x128xf32> to vector<2x128xf32>
    %264 = vector.shape_cast %258 : vector<2x128xf32> to vector<1x2x128xf32>
    tpu.vector_store %arg16[%c0_54, %c0_55, %c0_56], %264 {strides = array<i32>} : memref<2x2x128xf32, #tpu.memory_space<vmem>>, vector<1x2x128xf32>,
    %c0_57 = arith.constant 0 : index
    %c0_58 = arith.constant 0 : index
    %265 = vector.load %arg7[%c0_57, %c0_58] : memref<128x384xf32, #tpu.memory_space<vmem>>, vector<128x384xf32>
    %c0_59 = arith.constant 0 : index
    %c0_60 = arith.constant 0 : index
    %266 = vector.load %arg8[%c0_59, %c0_60] : memref<128x384xf32, #tpu.memory_space<vmem>>, vector<128x384xf32>
    %c0_61 = arith.constant 0 : index
    %c0_62 = arith.constant 0 : index
    %267 = vector.load %arg9[%c0_61, %c0_62] : memref<1x384xf32, #tpu.memory_space<vmem>>, vector<1x384xf32>
    %c0_63 = arith.constant 0 : index
    %c0_64 = arith.constant 0 : index
    %268 = vector.load %arg10[%c0_63, %c0_64] : memref<1x128xf32, #tpu.memory_space<vmem>>, vector<1x128xf32>
    %269 = vector.shape_cast %268 : vector<1x128xf32> to vector<1x128xf32>
    %270 = vector.broadcast %269 : vector<1x128xf32> to vector<2x128xf32>
    %c0_65 = arith.constant 0 : index
    %c0_66 = arith.constant 0 : index
    %c0_67 = arith.constant 0 : index
    %271 = vector.load %arg17[%c0_65, %c0_66, %c0_67] : memref<2x8x128xf32, #tpu.memory_space<vmem>>, vector<2x8x128xf32>
    %272 = vector.shape_cast %271 : vector<2x8x128xf32> to vector<16x128xf32>
    %cst_68 = arith.constant dense<0.000000e+00> : vector<16x384xf32>
    %273 = tpu.matmul %272, %265, %cst_68 {dimension_numbers = #tpu.dot_dimension_numbers<[1], [0], [0], [1], [0, 0, 1, 1], [], []>} : vector<16x128xf32>, vector<128x384xf32>, vector<16x384xf32> -> vector<16x384xf32>
    %274 = vector.broadcast %267 : vector<1x384xf32> to vector<16x384xf32>
    %275 = arith.addf %273, %274 : vector<16x384xf32>
    %276 = vector.shape_cast %275 : vector<16x384xf32> to vector<2x8x384xf32>
    %c1_69 = arith.constant 1 : index
    %c0_70 = arith.constant 0 : index
    %c0_71 = arith.constant 0 : index
    %277 = vector.load %arg2[%c1_69, %c0_70, %c0_71] : memref<2x2x128xf32, #tpu.memory_space<vmem>>, vector<1x2x128xf32>
    %278 = vector.shape_cast %277 : vector<1x2x128xf32> to vector<2x128xf32>
    %279 = vector.extract_strided_slice %276 {offsets = [0, 0, 0], sizes = [2, 1, 384], strides = [1, 1, 1]} : vector<2x8x384xf32> to vector<2x1x384xf32>
    %280 = vector.shape_cast %279 : vector<2x1x384xf32> to vector<2x384xf32>
    %cst_72 = arith.constant dense<0.000000e+00> : vector<2x384xf32>
    %281 = tpu.matmul %278, %266, %cst_72 {dimension_numbers = #tpu.dot_dimension_numbers<[1], [0], [0], [1], [0, 0, 1, 1], [], []>} : vector<2x128xf32>, vector<128x384xf32>, vector<2x384xf32> -> vector<2x384xf32>
    %282 = vector.extract_strided_slice %280 {offsets = [0, 0], sizes = [2, 128], strides = [1, 1]} : vector<2x384xf32> to vector<2x128xf32>
    %283 = vector.extract_strided_slice %281 {offsets = [0, 0], sizes = [2, 128], strides = [1, 1]} : vector<2x384xf32> to vector<2x128xf32>
    %284 = arith.addf %282, %283 : vector<2x128xf32>
    %285 = arith.negf %284 : vector<2x128xf32>
    %286 = math.exp %285 : vector<2x128xf32>
    %cst_73 = arith.constant 1.000000e+00 : f32
    %287 = vector.broadcast %cst_73 : f32 to vector<2x128xf32>
    %288 = arith.addf %287, %286 : vector<2x128xf32>
    %289 = arith.divf %287, %288 : vector<2x128xf32>
    %290 = vector.extract_strided_slice %280 {offsets = [0, 128], sizes = [2, 128], strides = [1, 1]} : vector<2x384xf32> to vector<2x128xf32>
    %291 = vector.extract_strided_slice %281 {offsets = [0, 128], sizes = [2, 128], strides = [1, 1]} : vector<2x384xf32> to vector<2x128xf32>
    %292 = arith.addf %290, %291 : vector<2x128xf32>
    %293 = arith.negf %292 : vector<2x128xf32>
    %294 = math.exp %293 : vector<2x128xf32>
    %cst_74 = arith.constant 1.000000e+00 : f32
    %295 = vector.broadcast %cst_74 : f32 to vector<2x128xf32>
    %296 = arith.addf %295, %294 : vector<2x128xf32>
    %297 = arith.divf %295, %296 : vector<2x128xf32>
    %298 = vector.extract_strided_slice %280 {offsets = [0, 256], sizes = [2, 128], strides = [1, 1]} : vector<2x384xf32> to vector<2x128xf32>
    %299 = vector.extract_strided_slice %281 {offsets = [0, 256], sizes = [2, 128], strides = [1, 1]} : vector<2x384xf32> to vector<2x128xf32>
    %300 = arith.addf %299, %270 : vector<2x128xf32>
    %301 = arith.mulf %289, %300 : vector<2x128xf32>
    %302 = arith.addf %298, %301 : vector<2x128xf32>
    %303 = math.tanh %302 : vector<2x128xf32>
    %304 = arith.subf %278, %303 : vector<2x128xf32>
    %305 = arith.mulf %297, %304 : vector<2x128xf32>
    %306 = arith.addf %303, %305 : vector<2x128xf32>
    %307 = vector.extract_strided_slice %276 {offsets = [0, 1, 0], sizes = [2, 1, 384], strides = [1, 1, 1]} : vector<2x8x384xf32> to vector<2x1x384xf32>
    %308 = vector.shape_cast %307 : vector<2x1x384xf32> to vector<2x384xf32>
    %cst_75 = arith.constant dense<0.000000e+00> : vector<2x384xf32>
    %309 = tpu.matmul %306, %266, %cst_75 {dimension_numbers = #tpu.dot_dimension_numbers<[1], [0], [0], [1], [0, 0, 1, 1], [], []>} : vector<2x128xf32>, vector<128x384xf32>, vector<2x384xf32> -> vector<2x384xf32>
    %310 = vector.extract_strided_slice %308 {offsets = [0, 0], sizes = [2, 128], strides = [1, 1]} : vector<2x384xf32> to vector<2x128xf32>
    %311 = vector.extract_strided_slice %309 {offsets = [0, 0], sizes = [2, 128], strides = [1, 1]} : vector<2x384xf32> to vector<2x128xf32>
    %312 = arith.addf %310, %311 : vector<2x128xf32>
    %313 = arith.negf %312 : vector<2x128xf32>
    %314 = math.exp %313 : vector<2x128xf32>
    %cst_76 = arith.constant 1.000000e+00 : f32
    %315 = vector.broadcast %cst_76 : f32 to vector<2x128xf32>
    %316 = arith.addf %315, %314 : vector<2x128xf32>
    %317 = arith.divf %315, %316 : vector<2x128xf32>
    %318 = vector.extract_strided_slice %308 {offsets = [0, 128], sizes = [2, 128], strides = [1, 1]} : vector<2x384xf32> to vector<2x128xf32>
    %319 = vector.extract_strided_slice %309 {offsets = [0, 128], sizes = [2, 128], strides = [1, 1]} : vector<2x384xf32> to vector<2x128xf32>
    %320 = arith.addf %318, %319 : vector<2x128xf32>
    %321 = arith.negf %320 : vector<2x128xf32>
    %322 = math.exp %321 : vector<2x128xf32>
    %cst_77 = arith.constant 1.000000e+00 : f32
    %323 = vector.broadcast %cst_77 : f32 to vector<2x128xf32>
    %324 = arith.addf %323, %322 : vector<2x128xf32>
    %325 = arith.divf %323, %324 : vector<2x128xf32>
    %326 = vector.extract_strided_slice %308 {offsets = [0, 256], sizes = [2, 128], strides = [1, 1]} : vector<2x384xf32> to vector<2x128xf32>
    %327 = vector.extract_strided_slice %309 {offsets = [0, 256], sizes = [2, 128], strides = [1, 1]} : vector<2x384xf32> to vector<2x128xf32>
    %328 = arith.addf %327, %270 : vector<2x128xf32>
    %329 = arith.mulf %317, %328 : vector<2x128xf32>
    %330 = arith.addf %326, %329 : vector<2x128xf32>
    %331 = math.tanh %330 : vector<2x128xf32>
    %332 = arith.subf %306, %331 : vector<2x128xf32>
    %333 = arith.mulf %325, %332 : vector<2x128xf32>
    %334 = arith.addf %331, %333 : vector<2x128xf32>
    %335 = vector.extract_strided_slice %276 {offsets = [0, 2, 0], sizes = [2, 1, 384], strides = [1, 1, 1]} : vector<2x8x384xf32> to vector<2x1x384xf32>
    %336 = vector.shape_cast %335 : vector<2x1x384xf32> to vector<2x384xf32>
    %cst_78 = arith.constant dense<0.000000e+00> : vector<2x384xf32>
    %337 = tpu.matmul %334, %266, %cst_78 {dimension_numbers = #tpu.dot_dimension_numbers<[1], [0], [0], [1], [0, 0, 1, 1], [], []>} : vector<2x128xf32>, vector<128x384xf32>, vector<2x384xf32> -> vector<2x384xf32>
    %338 = vector.extract_strided_slice %336 {offsets = [0, 0], sizes = [2, 128], strides = [1, 1]} : vector<2x384xf32> to vector<2x128xf32>
    %339 = vector.extract_strided_slice %337 {offsets = [0, 0], sizes = [2, 128], strides = [1, 1]} : vector<2x384xf32> to vector<2x128xf32>
    %340 = arith.addf %338, %339 : vector<2x128xf32>
    %341 = arith.negf %340 : vector<2x128xf32>
    %342 = math.exp %341 : vector<2x128xf32>
    %cst_79 = arith.constant 1.000000e+00 : f32
    %343 = vector.broadcast %cst_79 : f32 to vector<2x128xf32>
    %344 = arith.addf %343, %342 : vector<2x128xf32>
    %345 = arith.divf %343, %344 : vector<2x128xf32>
    %346 = vector.extract_strided_slice %336 {offsets = [0, 128], sizes = [2, 128], strides = [1, 1]} : vector<2x384xf32> to vector<2x128xf32>
    %347 = vector.extract_strided_slice %337 {offsets = [0, 128], sizes = [2, 128], strides = [1, 1]} : vector<2x384xf32> to vector<2x128xf32>
    %348 = arith.addf %346, %347 : vector<2x128xf32>
    %349 = arith.negf %348 : vector<2x128xf32>
    %350 = math.exp %349 : vector<2x128xf32>
    %cst_80 = arith.constant 1.000000e+00 : f32
    %351 = vector.broadcast %cst_80 : f32 to vector<2x128xf32>
    %352 = arith.addf %351, %350 : vector<2x128xf32>
    %353 = arith.divf %351, %352 : vector<2x128xf32>
    %354 = vector.extract_strided_slice %336 {offsets = [0, 256], sizes = [2, 128], strides = [1, 1]} : vector<2x384xf32> to vector<2x128xf32>
    %355 = vector.extract_strided_slice %337 {offsets = [0, 256], sizes = [2, 128], strides = [1, 1]} : vector<2x384xf32> to vector<2x128xf32>
    %356 = arith.addf %355, %270 : vector<2x128xf32>
    %357 = arith.mulf %345, %356 : vector<2x128xf32>
    %358 = arith.addf %354, %357 : vector<2x128xf32>
    %359 = math.tanh %358 : vector<2x128xf32>
    %360 = arith.subf %334, %359 : vector<2x128xf32>
    %361 = arith.mulf %353, %360 : vector<2x128xf32>
    %362 = arith.addf %359, %361 : vector<2x128xf32>
    %363 = vector.extract_strided_slice %276 {offsets = [0, 3, 0], sizes = [2, 1, 384], strides = [1, 1, 1]} : vector<2x8x384xf32> to vector<2x1x384xf32>
    %364 = vector.shape_cast %363 : vector<2x1x384xf32> to vector<2x384xf32>
    %cst_81 = arith.constant dense<0.000000e+00> : vector<2x384xf32>
    %365 = tpu.matmul %362, %266, %cst_81 {dimension_numbers = #tpu.dot_dimension_numbers<[1], [0], [0], [1], [0, 0, 1, 1], [], []>} : vector<2x128xf32>, vector<128x384xf32>, vector<2x384xf32> -> vector<2x384xf32>
    %366 = vector.extract_strided_slice %364 {offsets = [0, 0], sizes = [2, 128], strides = [1, 1]} : vector<2x384xf32> to vector<2x128xf32>
    %367 = vector.extract_strided_slice %365 {offsets = [0, 0], sizes = [2, 128], strides = [1, 1]} : vector<2x384xf32> to vector<2x128xf32>
    %368 = arith.addf %366, %367 : vector<2x128xf32>
    %369 = arith.negf %368 : vector<2x128xf32>
    %370 = math.exp %369 : vector<2x128xf32>
    %cst_82 = arith.constant 1.000000e+00 : f32
    %371 = vector.broadcast %cst_82 : f32 to vector<2x128xf32>
    %372 = arith.addf %371, %370 : vector<2x128xf32>
    %373 = arith.divf %371, %372 : vector<2x128xf32>
    %374 = vector.extract_strided_slice %364 {offsets = [0, 128], sizes = [2, 128], strides = [1, 1]} : vector<2x384xf32> to vector<2x128xf32>
    %375 = vector.extract_strided_slice %365 {offsets = [0, 128], sizes = [2, 128], strides = [1, 1]} : vector<2x384xf32> to vector<2x128xf32>
    %376 = arith.addf %374, %375 : vector<2x128xf32>
    %377 = arith.negf %376 : vector<2x128xf32>
    %378 = math.exp %377 : vector<2x128xf32>
    %cst_83 = arith.constant 1.000000e+00 : f32
    %379 = vector.broadcast %cst_83 : f32 to vector<2x128xf32>
    %380 = arith.addf %379, %378 : vector<2x128xf32>
    %381 = arith.divf %379, %380 : vector<2x128xf32>
    %382 = vector.extract_strided_slice %364 {offsets = [0, 256], sizes = [2, 128], strides = [1, 1]} : vector<2x384xf32> to vector<2x128xf32>
    %383 = vector.extract_strided_slice %365 {offsets = [0, 256], sizes = [2, 128], strides = [1, 1]} : vector<2x384xf32> to vector<2x128xf32>
    %384 = arith.addf %383, %270 : vector<2x128xf32>
    %385 = arith.mulf %373, %384 : vector<2x128xf32>
    %386 = arith.addf %382, %385 : vector<2x128xf32>
    %387 = math.tanh %386 : vector<2x128xf32>
    %388 = arith.subf %362, %387 : vector<2x128xf32>
    %389 = arith.mulf %381, %388 : vector<2x128xf32>
    %390 = arith.addf %387, %389 : vector<2x128xf32>
    %391 = vector.extract_strided_slice %276 {offsets = [0, 4, 0], sizes = [2, 1, 384], strides = [1, 1, 1]} : vector<2x8x384xf32> to vector<2x1x384xf32>
    %392 = vector.shape_cast %391 : vector<2x1x384xf32> to vector<2x384xf32>
    %cst_84 = arith.constant dense<0.000000e+00> : vector<2x384xf32>
    %393 = tpu.matmul %390, %266, %cst_84 {dimension_numbers = #tpu.dot_dimension_numbers<[1], [0], [0], [1], [0, 0, 1, 1], [], []>} : vector<2x128xf32>, vector<128x384xf32>, vector<2x384xf32> -> vector<2x384xf32>
    %394 = vector.extract_strided_slice %392 {offsets = [0, 0], sizes = [2, 128], strides = [1, 1]} : vector<2x384xf32> to vector<2x128xf32>
    %395 = vector.extract_strided_slice %393 {offsets = [0, 0], sizes = [2, 128], strides = [1, 1]} : vector<2x384xf32> to vector<2x128xf32>
    %396 = arith.addf %394, %395 : vector<2x128xf32>
    %397 = arith.negf %396 : vector<2x128xf32>
    %398 = math.exp %397 : vector<2x128xf32>
    %cst_85 = arith.constant 1.000000e+00 : f32
    %399 = vector.broadcast %cst_85 : f32 to vector<2x128xf32>
    %400 = arith.addf %399, %398 : vector<2x128xf32>
    %401 = arith.divf %399, %400 : vector<2x128xf32>
    %402 = vector.extract_strided_slice %392 {offsets = [0, 128], sizes = [2, 128], strides = [1, 1]} : vector<2x384xf32> to vector<2x128xf32>
    %403 = vector.extract_strided_slice %393 {offsets = [0, 128], sizes = [2, 128], strides = [1, 1]} : vector<2x384xf32> to vector<2x128xf32>
    %404 = arith.addf %402, %403 : vector<2x128xf32>
    %405 = arith.negf %404 : vector<2x128xf32>
    %406 = math.exp %405 : vector<2x128xf32>
    %cst_86 = arith.constant 1.000000e+00 : f32
    %407 = vector.broadcast %cst_86 : f32 to vector<2x128xf32>
    %408 = arith.addf %407, %406 : vector<2x128xf32>
    %409 = arith.divf %407, %408 : vector<2x128xf32>
    %410 = vector.extract_strided_slice %392 {offsets = [0, 256], sizes = [2, 128], strides = [1, 1]} : vector<2x384xf32> to vector<2x128xf32>
    %411 = vector.extract_strided_slice %393 {offsets = [0, 256], sizes = [2, 128], strides = [1, 1]} : vector<2x384xf32> to vector<2x128xf32>
    %412 = arith.addf %411, %270 : vector<2x128xf32>
    %413 = arith.mulf %401, %412 : vector<2x128xf32>
    %414 = arith.addf %410, %413 : vector<2x128xf32>
    %415 = math.tanh %414 : vector<2x128xf32>
    %416 = arith.subf %390, %415 : vector<2x128xf32>
    %417 = arith.mulf %409, %416 : vector<2x128xf32>
    %418 = arith.addf %415, %417 : vector<2x128xf32>
    %419 = vector.extract_strided_slice %276 {offsets = [0, 5, 0], sizes = [2, 1, 384], strides = [1, 1, 1]} : vector<2x8x384xf32> to vector<2x1x384xf32>
    %420 = vector.shape_cast %419 : vector<2x1x384xf32> to vector<2x384xf32>
    %cst_87 = arith.constant dense<0.000000e+00> : vector<2x384xf32>
    %421 = tpu.matmul %418, %266, %cst_87 {dimension_numbers = #tpu.dot_dimension_numbers<[1], [0], [0], [1], [0, 0, 1, 1], [], []>} : vector<2x128xf32>, vector<128x384xf32>, vector<2x384xf32> -> vector<2x384xf32>
    %422 = vector.extract_strided_slice %420 {offsets = [0, 0], sizes = [2, 128], strides = [1, 1]} : vector<2x384xf32> to vector<2x128xf32>
    %423 = vector.extract_strided_slice %421 {offsets = [0, 0], sizes = [2, 128], strides = [1, 1]} : vector<2x384xf32> to vector<2x128xf32>
    %424 = arith.addf %422, %423 : vector<2x128xf32>
    %425 = arith.negf %424 : vector<2x128xf32>
    %426 = math.exp %425 : vector<2x128xf32>
    %cst_88 = arith.constant 1.000000e+00 : f32
    %427 = vector.broadcast %cst_88 : f32 to vector<2x128xf32>
    %428 = arith.addf %427, %426 : vector<2x128xf32>
    %429 = arith.divf %427, %428 : vector<2x128xf32>
    %430 = vector.extract_strided_slice %420 {offsets = [0, 128], sizes = [2, 128], strides = [1, 1]} : vector<2x384xf32> to vector<2x128xf32>
    %431 = vector.extract_strided_slice %421 {offsets = [0, 128], sizes = [2, 128], strides = [1, 1]} : vector<2x384xf32> to vector<2x128xf32>
    %432 = arith.addf %430, %431 : vector<2x128xf32>
    %433 = arith.negf %432 : vector<2x128xf32>
    %434 = math.exp %433 : vector<2x128xf32>
    %cst_89 = arith.constant 1.000000e+00 : f32
    %435 = vector.broadcast %cst_89 : f32 to vector<2x128xf32>
    %436 = arith.addf %435, %434 : vector<2x128xf32>
    %437 = arith.divf %435, %436 : vector<2x128xf32>
    %438 = vector.extract_strided_slice %420 {offsets = [0, 256], sizes = [2, 128], strides = [1, 1]} : vector<2x384xf32> to vector<2x128xf32>
    %439 = vector.extract_strided_slice %421 {offsets = [0, 256], sizes = [2, 128], strides = [1, 1]} : vector<2x384xf32> to vector<2x128xf32>
    %440 = arith.addf %439, %270 : vector<2x128xf32>
    %441 = arith.mulf %429, %440 : vector<2x128xf32>
    %442 = arith.addf %438, %441 : vector<2x128xf32>
    %443 = math.tanh %442 : vector<2x128xf32>
    %444 = arith.subf %418, %443 : vector<2x128xf32>
    %445 = arith.mulf %437, %444 : vector<2x128xf32>
    %446 = arith.addf %443, %445 : vector<2x128xf32>
    %447 = vector.extract_strided_slice %276 {offsets = [0, 6, 0], sizes = [2, 1, 384], strides = [1, 1, 1]} : vector<2x8x384xf32> to vector<2x1x384xf32>
    %448 = vector.shape_cast %447 : vector<2x1x384xf32> to vector<2x384xf32>
    %cst_90 = arith.constant dense<0.000000e+00> : vector<2x384xf32>
    %449 = tpu.matmul %446, %266, %cst_90 {dimension_numbers = #tpu.dot_dimension_numbers<[1], [0], [0], [1], [0, 0, 1, 1], [], []>} : vector<2x128xf32>, vector<128x384xf32>, vector<2x384xf32> -> vector<2x384xf32>
    %450 = vector.extract_strided_slice %448 {offsets = [0, 0], sizes = [2, 128], strides = [1, 1]} : vector<2x384xf32> to vector<2x128xf32>
    %451 = vector.extract_strided_slice %449 {offsets = [0, 0], sizes = [2, 128], strides = [1, 1]} : vector<2x384xf32> to vector<2x128xf32>
    %452 = arith.addf %450, %451 : vector<2x128xf32>
    %453 = arith.negf %452 : vector<2x128xf32>
    %454 = math.exp %453 : vector<2x128xf32>
    %cst_91 = arith.constant 1.000000e+00 : f32
    %455 = vector.broadcast %cst_91 : f32 to vector<2x128xf32>
    %456 = arith.addf %455, %454 : vector<2x128xf32>
    %457 = arith.divf %455, %456 : vector<2x128xf32>
    %458 = vector.extract_strided_slice %448 {offsets = [0, 128], sizes = [2, 128], strides = [1, 1]} : vector<2x384xf32> to vector<2x128xf32>
    %459 = vector.extract_strided_slice %449 {offsets = [0, 128], sizes = [2, 128], strides = [1, 1]} : vector<2x384xf32> to vector<2x128xf32>
    %460 = arith.addf %458, %459 : vector<2x128xf32>
    %461 = arith.negf %460 : vector<2x128xf32>
    %462 = math.exp %461 : vector<2x128xf32>
    %cst_92 = arith.constant 1.000000e+00 : f32
    %463 = vector.broadcast %cst_92 : f32 to vector<2x128xf32>
    %464 = arith.addf %463, %462 : vector<2x128xf32>
    %465 = arith.divf %463, %464 : vector<2x128xf32>
    %466 = vector.extract_strided_slice %448 {offsets = [0, 256], sizes = [2, 128], strides = [1, 1]} : vector<2x384xf32> to vector<2x128xf32>
    %467 = vector.extract_strided_slice %449 {offsets = [0, 256], sizes = [2, 128], strides = [1, 1]} : vector<2x384xf32> to vector<2x128xf32>
    %468 = arith.addf %467, %270 : vector<2x128xf32>
    %469 = arith.mulf %457, %468 : vector<2x128xf32>
    %470 = arith.addf %466, %469 : vector<2x128xf32>
    %471 = math.tanh %470 : vector<2x128xf32>
    %472 = arith.subf %446, %471 : vector<2x128xf32>
    %473 = arith.mulf %465, %472 : vector<2x128xf32>
    %474 = arith.addf %471, %473 : vector<2x128xf32>
    %475 = vector.extract_strided_slice %276 {offsets = [0, 7, 0], sizes = [2, 1, 384], strides = [1, 1, 1]} : vector<2x8x384xf32> to vector<2x1x384xf32>
    %476 = vector.shape_cast %475 : vector<2x1x384xf32> to vector<2x384xf32>
    %cst_93 = arith.constant dense<0.000000e+00> : vector<2x384xf32>
    %477 = tpu.matmul %474, %266, %cst_93 {dimension_numbers = #tpu.dot_dimension_numbers<[1], [0], [0], [1], [0, 0, 1, 1], [], []>} : vector<2x128xf32>, vector<128x384xf32>, vector<2x384xf32> -> vector<2x384xf32>
    %478 = vector.extract_strided_slice %476 {offsets = [0, 0], sizes = [2, 128], strides = [1, 1]} : vector<2x384xf32> to vector<2x128xf32>
    %479 = vector.extract_strided_slice %477 {offsets = [0, 0], sizes = [2, 128], strides = [1, 1]} : vector<2x384xf32> to vector<2x128xf32>
    %480 = arith.addf %478, %479 : vector<2x128xf32>
    %481 = arith.negf %480 : vector<2x128xf32>
    %482 = math.exp %481 : vector<2x128xf32>
    %cst_94 = arith.constant 1.000000e+00 : f32
    %483 = vector.broadcast %cst_94 : f32 to vector<2x128xf32>
    %484 = arith.addf %483, %482 : vector<2x128xf32>
    %485 = arith.divf %483, %484 : vector<2x128xf32>
    %486 = vector.extract_strided_slice %476 {offsets = [0, 128], sizes = [2, 128], strides = [1, 1]} : vector<2x384xf32> to vector<2x128xf32>
    %487 = vector.extract_strided_slice %477 {offsets = [0, 128], sizes = [2, 128], strides = [1, 1]} : vector<2x384xf32> to vector<2x128xf32>
    %488 = arith.addf %486, %487 : vector<2x128xf32>
    %489 = arith.negf %488 : vector<2x128xf32>
    %490 = math.exp %489 : vector<2x128xf32>
    %cst_95 = arith.constant 1.000000e+00 : f32
    %491 = vector.broadcast %cst_95 : f32 to vector<2x128xf32>
    %492 = arith.addf %491, %490 : vector<2x128xf32>
    %493 = arith.divf %491, %492 : vector<2x128xf32>
    %494 = vector.extract_strided_slice %476 {offsets = [0, 256], sizes = [2, 128], strides = [1, 1]} : vector<2x384xf32> to vector<2x128xf32>
    %495 = vector.extract_strided_slice %477 {offsets = [0, 256], sizes = [2, 128], strides = [1, 1]} : vector<2x384xf32> to vector<2x128xf32>
    %496 = arith.addf %495, %270 : vector<2x128xf32>
    %497 = arith.mulf %485, %496 : vector<2x128xf32>
    %498 = arith.addf %494, %497 : vector<2x128xf32>
    %499 = math.tanh %498 : vector<2x128xf32>
    %500 = arith.subf %474, %499 : vector<2x128xf32>
    %501 = arith.mulf %493, %500 : vector<2x128xf32>
    %502 = arith.addf %499, %501 : vector<2x128xf32>
    %c1_96 = arith.constant 1 : index
    %c0_97 = arith.constant 0 : index
    %c0_98 = arith.constant 0 : index
    %503 = vector.load %arg16[%c1_96, %c0_97, %c0_98] : memref<2x2x128xf32, #tpu.memory_space<vmem>>, vector<1x2x128xf32>
    %504 = vector.shape_cast %503 : vector<1x2x128xf32> to vector<2x128xf32>
    %505 = vector.shape_cast %502 : vector<2x128xf32> to vector<1x2x128xf32>
    tpu.vector_store %arg16[%c1_96, %c0_97, %c0_98], %505 {strides = array<i32>} : memref<2x2x128xf32, #tpu.memory_space<vmem>>, vector<1x2x128xf32>,
    %c0_99 = arith.constant 0 : index
    %c0_100 = arith.constant 0 : index
    %506 = vector.load %arg11[%c0_99, %c0_100] : memref<128x128xf32, #tpu.memory_space<vmem>>, vector<128x128xf32>
    %cst_101 = arith.constant dense<0.000000e+00> : vector<2x128xf32>
    %507 = tpu.matmul %502, %506, %cst_101 {dimension_numbers = #tpu.dot_dimension_numbers<[1], [0], [0], [1], [0, 0, 1, 1], [], []>} : vector<2x128xf32>, vector<128x128xf32>, vector<2x128xf32> -> vector<2x128xf32>
    %c0_102 = arith.constant 0 : index
    %c0_103 = arith.constant 0 : index
    %508 = vector.load %arg12[%c0_102, %c0_103] : memref<1x128xf32, #tpu.memory_space<vmem>>, vector<1x128xf32>
    %509 = vector.broadcast %508 : vector<1x128xf32> to vector<2x128xf32>
    %510 = arith.addf %507, %509 : vector<2x128xf32>
    %511 = math.tanh %510 : vector<2x128xf32>
    %c0_104 = arith.constant 0 : index
    %c0_105 = arith.constant 0 : index
    %512 = vector.load %arg13[%c0_104, %c0_105] : memref<128x1xf32, #tpu.memory_space<vmem>>, vector<128x1xf32>
    %cst_106 = arith.constant dense<0.000000e+00> : vector<2x1xf32>
    %513 = tpu.matmul %511, %512, %cst_106 {dimension_numbers = #tpu.dot_dimension_numbers<[1], [0], [0], [1], [0, 0, 1, 1], [], []>} : vector<2x128xf32>, vector<128x1xf32>, vector<2x1xf32> -> vector<2x1xf32>
    %c0_107 = arith.constant 0 : index
    %c0_108 = arith.constant 0 : index
    %514 = vector.load %arg14[%c0_107, %c0_108] : memref<1x1xf32, #tpu.memory_space<vmem>>, vector<1x1xf32>
    %515 = vector.broadcast %514 : vector<1x1xf32> to vector<2x1xf32>
    %516 = arith.addf %513, %515 : vector<2x1xf32>
    %c0_109 = arith.constant 0 : index
    %c0_110 = arith.constant 0 : index
    %517 = vector.load %arg15[%c0_109, %c0_110] : memref<2x1xf32, #tpu.memory_space<vmem>>, vector<2x1xf32>
    tpu.vector_store %arg15[%c0_109, %c0_110], %516 {strides = array<i32>} : memref<2x1xf32, #tpu.memory_space<vmem>>, vector<2x1xf32>,
    return
  }
  func.func @transform_0(%arg0: i32) -> (i32, i32, i32) {
    %c0_i32 = arith.constant 0 : i32
    %c0_i32_0 = arith.constant 0 : i32
    %c0_i32_1 = arith.constant 0 : i32
    return %arg0, %c0_i32, %c0_i32_0 : i32, i32, i32
  }
  func.func @transform_1(%arg0: i32) -> (i32, i32, i32) {
    %c0_i32 = arith.constant 0 : i32
    %c0_i32_0 = arith.constant 0 : i32
    %c0_i32_1 = arith.constant 0 : i32
    return %c0_i32, %arg0, %c0_i32_0 : i32, i32, i32
  }
  func.func @transform_2(%arg0: i32) -> (i32, i32) {
    %c0_i32 = arith.constant 0 : i32
    %c0_i32_0 = arith.constant 0 : i32
    %c0_i32_1 = arith.constant 0 : i32
    return %c0_i32, %c0_i32_0 : i32, i32
  }
  func.func @transform_3(%arg0: i32) -> (i32, i32) {
    %c0_i32 = arith.constant 0 : i32
    %c0_i32_0 = arith.constant 0 : i32
    %c0_i32_1 = arith.constant 0 : i32
    return %c0_i32, %c0_i32_0 : i32, i32
  }
  func.func @transform_4(%arg0: i32) -> (i32, i32) {
    %c0_i32 = arith.constant 0 : i32
    %c0_i32_0 = arith.constant 0 : i32
    %c0_i32_1 = arith.constant 0 : i32
    return %c0_i32, %c0_i32_0 : i32, i32
  }
  func.func @transform_5(%arg0: i32) -> (i32, i32) {
    %c0_i32 = arith.constant 0 : i32
    %c0_i32_0 = arith.constant 0 : i32
    %c0_i32_1 = arith.constant 0 : i32
    return %c0_i32, %c0_i32_0 : i32, i32
  }
  func.func @transform_6(%arg0: i32) -> (i32, i32) {
    %c0_i32 = arith.constant 0 : i32
    %c0_i32_0 = arith.constant 0 : i32
    %c0_i32_1 = arith.constant 0 : i32
    return %c0_i32, %c0_i32_0 : i32, i32
  }
  func.func @transform_7(%arg0: i32) -> (i32, i32) {
    %c0_i32 = arith.constant 0 : i32
    %c0_i32_0 = arith.constant 0 : i32
    %c0_i32_1 = arith.constant 0 : i32
    return %c0_i32, %c0_i32_0 : i32, i32
  }
  func.func @transform_8(%arg0: i32) -> (i32, i32) {
    %c0_i32 = arith.constant 0 : i32
    %c0_i32_0 = arith.constant 0 : i32
    %c0_i32_1 = arith.constant 0 : i32
    return %c0_i32, %c0_i32_0 : i32, i32
  }
  func.func @transform_9(%arg0: i32) -> (i32, i32) {
    %c0_i32 = arith.constant 0 : i32
    %c0_i32_0 = arith.constant 0 : i32
    %c0_i32_1 = arith.constant 0 : i32
    return %c0_i32, %c0_i32_0 : i32, i32
  }
  func.func @transform_10(%arg0: i32) -> (i32, i32) {
    %c0_i32 = arith.constant 0 : i32
    %c0_i32_0 = arith.constant 0 : i32
    %c0_i32_1 = arith.constant 0 : i32
    return %c0_i32, %c0_i32_0 : i32, i32
  }
  func.func @transform_11(%arg0: i32) -> (i32, i32) {
    %c0_i32 = arith.constant 0 : i32
    %c0_i32_0 = arith.constant 0 : i32
    %c0_i32_1 = arith.constant 0 : i32
    return %c0_i32, %c0_i32_0 : i32, i32
  }
  func.func @transform_12(%arg0: i32) -> (i32, i32) {
    %c0_i32 = arith.constant 0 : i32
    %c0_i32_0 = arith.constant 0 : i32
    %c0_i32_1 = arith.constant 0 : i32
    return %c0_i32, %c0_i32_0 : i32, i32
  }
  func.func @transform_13(%arg0: i32) -> (i32, i32) {
    %c0_i32 = arith.constant 0 : i32
    %c0_i32_0 = arith.constant 0 : i32
    %c0_i32_1 = arith.constant 0 : i32
    return %c0_i32, %c0_i32_0 : i32, i32
  }
  func.func @transform_14(%arg0: i32) -> (i32, i32) {
    %c0_i32 = arith.constant 0 : i32
    %c0_i32_0 = arith.constant 0 : i32
    return %arg0, %c0_i32 : i32, i32
  }
  func.func @transform_15(%arg0: i32) -> (i32, i32, i32) {
    %c0_i32 = arith.constant 0 : i32
    %c0_i32_0 = arith.constant 0 : i32
    %c0_i32_1 = arith.constant 0 : i32
    return %c0_i32, %arg0, %c0_i32_0 : i32, i32, i32
  }
}

</mosaic_0001>

<bundles_post_ra>
// kernel: motion_discriminator_forward.1
= control target key start
LH: loop header
LB: loop body
LE: loop exit
PB: predicated region body
PF: predicated region fallthrough
CT: control target
= control target key end

     0   :  { %s8084_s0 = inlined_call_operand.vmem [shape: f32[2,8,16], index: 0, kind: input, shape index: {}]   ;;  %s8085_s1 = inlined_call_operand.vmem [shape: f32[2,2,128], index: 1, kind: input, shape index: {}]   ;;  %s8086_s2 = inlined_call_operand.vmem [shape: f32[16,384], index: 2, kind: input, shape index: {}]   ;;  %s8087_s3 = inlined_call_operand.hbm [shape: f32[128,384], index: 3, kind: input, shape index: {}]   ;;  %s8088_s4 = inlined_call_operand.vmem [shape: f32[1,384], index: 4, kind: input, shape index: {}]   ;;  %s8089_s5 = inlined_call_operand.vmem [shape: f32[1,128], index: 5, kind: input, shape index: {}]   ;;  %s8090_s6 = inlined_call_operand.hbm [shape: f32[128,384], index: 6, kind: input, shape index: {}]   ;;  %s8091_s7 = inlined_call_operand.hbm [shape: f32[128,384], index: 7, kind: input, shape index: {}]   ;;  %s8092_s8 = inlined_call_operand.vmem [shape: f32[1,384], index: 8, kind: input, shape index: {}]   ;;  %s8093_s9 = inlined_call_operand.vmem [shape: f32[1,128], index: 9, kind: input, shape index: {}]   ;;  %s8094_s10 = inlined_call_operand.vmem [shape: f32[128,128], index: 10, kind: input, shape index: {}]   ;;  %s8095_s11 = inlined_call_operand.vmem [shape: f32[1,128], index: 11, kind: input, shape index: {}]   ;;  %s8096_s12 = inlined_call_operand.vmem [shape: f32[128,1], index: 12, kind: input, shape index: {}]   ;;  %s8097_s13 = inlined_call_operand.<no memory space> [shape: f32[1,1], index: 13, kind: input, shape index: {}]   ;;  %s8098_s14 = inlined_call_operand.vmem [shape: f32[2,1], index: 14, kind: output, shape index: {0}]   ;;  %s8099_s15 = inlined_call_operand.hbm [shape: f32[2,2,128], index: 15, kind: output, shape index: {1}]  }
   0x1   :  { %v21_v0 = vstv %s8097_s13 }
   0x2   :  { %22 = vst [vmem:[#allocation3] sm:$0x1] %v21_v0 }
   0x3   :  { %23 = vsyncpa [#allocation5], 0 }
   0x4   :  { %24 = vsyncpa [#allocation8], 0 }
   0x5   :  { %25 = vsyncpa [#allocation6], 0  ;;  %s6778_s20 = smov [#allocation7]   ;;  %s6779_s22 = smov [#allocation4]  }
   0x6   :  { %s53_s21 = sshll.u32 %s6778_s20, 4  ;;  %s37_s23 = sshll.u32 %s6779_s22, 4  ;;  %s54_s21 = int_to_ptr.vmem [resolvable:$true] %s53_s21  ;;  %s6872_s23 = int_to_ptr.vmem [resolvable:$true] %s37_s23 }
   0x7   :  { %s6684_s26 = scalar_lea.hbm %s8090_s6, 6144 }
   0x8   :  { %p6685_p0 = scmp.ne.s32.totalorder %s8090_s6, %s6684_s26  ;;  %p6688_p1 = scmp.lt.u32.totalorder %s6684_s26, %s8090_s6 }
   0xa   :  { %p6690_p2 = pnand %p6688_p1, %p6685_p0 }
   0xc   :  { %6693 = shalt.err (!%p6690_p2)
}
   0xd   :  { %s6694_s30 = scalar_lea.vmem %s54_s21, 6144  ;;  %p6699_p4 = scmp.lt.s32.totalorder %s54_s21, %s54_s21 }
   0xe   :  { %p6695_p3 = scmp.ne.s32.totalorder %s54_s21, %s6694_s30  ;;  %p6700_p5 = scmp.lt.s32.totalorder %s6694_s30, %s6694_s30 }
  0x10   :  { %p6701_p6 = por %p6700_p5, %p6699_p4 }
  0x12   :  { %p6702_p7 = pnand %p6701_p6, %p6695_p3 }
  0x14   :  { %6705 = shalt.err (!%p6702_p7)
}
  0x15   :  { %s6780_s16 = smov 384   ;;  %s6781_s17 = smov 24  }
  0x16   :  { %59 = dma.hbm_to_vmem [thread:$0]  %s8090_s6, 6144, %s54_s21, [#allocation8], %s6780_s16, %s6780_s16, %s6781_s17  }
  0x17   :  { %s6706_s24 = scalar_lea.hbm %s8087_s3, 6144 }
  0x18   :  { %p6707_p8 = scmp.ne.s32.totalorder %s8087_s3, %s6706_s24  ;;  %p6710_p9 = scmp.lt.u32.totalorder %s6706_s24, %s8087_s3 }
  0x1a   :  { %p6712_p10 = pnand %p6710_p9, %p6707_p8 }
  0x1c   :  { %6715 = shalt.err (!%p6712_p10)
}
  0x1d   :  { %s6716_s13 = scalar_lea.vmem %s6872_s23, 6144  ;;  %p6721_p12 = scmp.lt.s32.totalorder %s6872_s23, %s6872_s23 }
  0x1e   :  { %p6717_p11 = scmp.ne.s32.totalorder %s6872_s23, %s6716_s13  ;;  %p6722_p13 = scmp.lt.s32.totalorder %s6716_s13, %s6716_s13 }
  0x20   :  { %p6723_p0 = por %p6722_p13, %p6721_p12 }
  0x22   :  { %p6724_p1 = pnand %p6723_p0, %p6717_p11 }
  0x24   :  { %6727 = shalt.err (!%p6724_p1)
}
  0x25   :  { %43 = dma.hbm_to_vmem [thread:$0]  %s8087_s3, 6144, %s6872_s23, [#allocation5], %s6780_s16, %s6780_s16, %s6781_s17  }
  0x26   :  { %s6782_s29 = smov [#allocation9]   ;;  %s6728_s20 = scalar_lea.hbm %s8091_s7, 6144 }
  0x27   :  { %s65_s30 = sshll.u32 %s6782_s29, 4  ;;  %p6729_p2 = scmp.ne.s32.totalorder %s8091_s7, %s6728_s20  ;;  %s66_s30 = int_to_ptr.vmem [resolvable:$true] %s65_s30 }
  0x28   :  { %p6732_p3 = scmp.lt.u32.totalorder %s6728_s20, %s8091_s7 }
  0x2a   :  { %p6734_p4 = pnand %p6732_p3, %p6729_p2 }
  0x2c   :  { %6737 = shalt.err (!%p6734_p4)
}
  0x2d   :  { %s6738_s27 = scalar_lea.vmem %s66_s30, 6144  ;;  %p6743_p6 = scmp.lt.s32.totalorder %s66_s30, %s66_s30 }
  0x2e   :  { %p6739_p5 = scmp.ne.s32.totalorder %s66_s30, %s6738_s27  ;;  %p6744_p7 = scmp.lt.s32.totalorder %s6738_s27, %s6738_s27 }
  0x30   :  { %p6745_p8 = por %p6744_p7, %p6743_p6 }
  0x32   :  { %p6746_p9 = pnand %p6745_p8, %p6739_p5 }
  0x34   :  { %6749 = shalt.err (!%p6746_p9)
}
  0x35   :  { %71 = dma.hbm_to_vmem [thread:$0]  %s8091_s7, 6144, %s66_s30, [#allocation8], %s6780_s16, %s6780_s16, %s6781_s17  }
  0x36   :  { %6772 = dma.done.wait [#allocation5], 6144  }
  0x37   :  { %6773 = vsyncadd [#allocation5], 4294961152 }
  0x38   :  { %6774 = dma.done.wait [#allocation8], 12288  }
  0x39   :  { %6775 = vsyncadd [#allocation8], 4294955008  ;;  %v6783_v1 = vmov 0.0   ;;  %v94_v2 = vld [vmem:[%s8086_s2 + $0x8] sm:$0xff]  ;;  %v97_v3 = vld [vmem:[%s8086_s2 + $0x20] sm:$0xff]  ;;  %vm173_vm0 = vcmask 130048  }
  0x3a   :  { %244 = vmatprep.mubr.f32.mxu0 %v6783_v1  ;;  %v93_v4 = vld [vmem:[%s8086_s2] sm:$0xff]  ;;  %v5333_v5 = vpack.c.bf16 %v97_v3, %v94_v2  ;;  %v96_v6 = vld [vmem:[%s8086_s2 + $0x18] sm:$0xff]  ;;  %v102_v12 = vld [vmem:[#allocation4 + $0x18] sm:$0xff]  ;;  %v6784_v41 = vmov 0.0|0.0   ;;  %vm6785_vm1 = vmmov 0   ;;  %vm524_vm2 = vcmask 1041409  }
  0x3b   :  { %v155_v7 = vld [vmem:[%s8084_s0] sm:$0xff]  ;;  %v5335_v9 = vpack.c.bf16 %v96_v6, %v93_v4  ;;  %v103_v10 = vld [vmem:[#allocation4 + $0x20] sm:$0xff]  ;;  %v106_v14 = vld [vmem:[#allocation4 + $0x38] sm:$0xff] }
  0x3c   :  { %v100_v8 = vld [vmem:[#allocation4 + $0x8] sm:$0xff]  ;;  %v99_v11 = vld [vmem:[#allocation4] sm:$0xff]  ;;  %4665 = vmatprep.mubr.msk.f32.mxu1 %vm173_vm0, %v155_v7  ;;  %5334 = vmatprep.subr.bf16.mxu0 %v5333_v5  ;;  %v109_v15 = vld [vmem:[#allocation4 + $0x50] sm:$0xff] }
  0x3d   :  { %v6941_v13 = vpack.c.bf16 %v103_v10, %v100_v8  ;;  %5336 = vmatpush1.bf16.msra.mxu0 %v5335_v9  ;;  %v6943_v16 = vpack.c.bf16 %v102_v12, %v99_v11  ;;  %v6946_v17 = vpack.c.bf16 %v109_v15, %v106_v14  ;;  %v105_v18 = vld [vmem:[#allocation4 + $0x30] sm:$0xff]  ;;  %v108_v19 = vld [vmem:[#allocation4 + $0x48] sm:$0xff]  ;;  %v115_v21 = vld [vmem:[#allocation4 + $0x80] sm:$0xff] }
  0x3e   :  { %v112_v20 = vld [vmem:[#allocation4 + $0x68] sm:$0xff]  ;;  %v6950_v22 = vpack.c.bf16 %v108_v19, %v105_v18  ;;  %v111_v23 = vld [vmem:[#allocation4 + $0x60] sm:$0xff]  ;;  %v114_v25 = vld [vmem:[#allocation4 + $0x78] sm:$0xff] }
  0x3f   :  { %5342 = vmatprep.subr.bf16.mxu0 %v6941_v13  ;;  %v6954_v24 = vpack.c.bf16 %v115_v21, %v112_v20  ;;  %v95_v26 = vld [vmem:[%s8086_s2 + $0x10] sm:$0xff]  ;;  %v98_v27 = vld [vmem:[%s8086_s2 + $0x28] sm:$0xff]  ;;  %v6966_v32 = vpack.c.bf16 %v114_v25, %v111_v23  ;;  %v104_v34 = vld [vmem:[#allocation4 + $0x28] sm:$0xff] }
  0x40   :  { %4261 = vmatmul.mubr.msk.f32.vlgmr.msra.gmra.mrb[0].mxu0 %vm173_vm0, %v155_v7  ;;  %v118_v28 = vld [vmem:[#allocation4 + $0x98] sm:$0xff]  ;;  %v121_v29 = vld [vmem:[#allocation4 + $0xb0] sm:$0xff]  ;;  %v5337_v30 = vpack.c.bf16 %v98_v27, %v95_v26  ;;  %v120_v37 = vld [vmem:[#allocation4 + $0xa8] sm:$0xff] }
  0x41   :  { %5344 = vmatpush1.bf16.msra.mxu0 %v6943_v16  ;;  %250 = vmatprep.mubr.f32.mxu0 %v6783_v1  ;;  %v156_v31 = vld [vmem:[%s8084_s0 + $0x8] sm:$0xff]  ;;  %v6969_v35 = vpack.c.bf16 %v121_v29, %v118_v28  ;;  %v124_v38 = vld [vmem:[#allocation4 + $0xc8] sm:$0xff]  ;;  %v127_v40 = vld [vmem:[#allocation4 + $0xe0] sm:$0xff] }
  0x42   :  { %5346 = vmatprep.subr.bf16.mxu0 %v6946_v17  ;;  %5338 = vmatprep.subr.bf16.mxu1 %v5337_v30  ;;  %v101_v33 = vld [vmem:[#allocation4 + $0x10] sm:$0xff]  ;;  %v107_v42 = vld [vmem:[#allocation4 + $0x40] sm:$0xff]  ;;  %v110_v43 = vld [vmem:[#allocation4 + $0x58] sm:$0xff]  ;;  %v6981_v45 = vpack.c.bf16 %v127_v40, %v124_v38 }
  0x43   :  { %v117_v36 = vld [vmem:[#allocation4 + $0x90] sm:$0xff]  ;;  %5340 = vmatpush3.bf16.msra.mxu1 %v5337_v30  ;;  %v6971_v39 = vpack.c.bf16 %v104_v34, %v101_v33  ;;  %v123_v46 = vld [vmem:[#allocation4 + $0xc0] sm:$0xff]  ;;  %v126_v47 = vld [vmem:[#allocation4 + $0xd8] sm:$0xff]  ;;  %v6984_v49 = vpack.c.bf16 %v110_v43, %v107_v42 }
  0x44   :  { %5373 = vmatprep.subr.bf16.mxu1 %v6784_v41  ;;  %4262 = vmatmul.mubr.msk.f32.gmra.mrb[2].mxu0 %vm173_vm0, %v156_v31  ;;  %v6977_v44 = vpack.c.bf16 %v120_v37, %v117_v36  ;;  %v130_v48 = vld [vmem:[#allocation4 + $0xf8] sm:$0xff]  ;;  %v133_v50 = vld [vmem:[#allocation4 + $0x110] sm:$0xff]  ;;  %v116_v52 = vld [vmem:[#allocation4 + $0x88] sm:$0xff]  ;;  %v6990_v53 = vpack.c.bf16 %v126_v47, %v123_v46  ;;  %v158_v37 = vlaneseq }
  0x45   :  { %5348 = vmatpush1.bf16.msra.mxu0 %v6950_v22  ;;  %397 = vmatprep.mubr.f32.mxu0 %v6783_v1  ;;  %v113_v51 = vld [vmem:[#allocation4 + $0x70] sm:$0xff]  ;;  %v6993_v54 = vpack.c.bf16 %v133_v50, %v130_v48  ;;  %v132_v56 = vld [vmem:[#allocation4 + $0x108] sm:$0xff]  ;;  %v139_v59 = vld [vmem:[#allocation4 + $0x140] sm:$0xff] }
  0x46   :  { %5350 = vmatprep.subr.bf16.mxu0 %v6954_v24  ;;  %4666 = vmatmul.mubr.msk.f32.vlgmr.msra.gmra.mrb[0].mxu1 %vm173_vm0, %v156_v31  ;;  %v129_v55 = vld [vmem:[#allocation4 + $0xf0] sm:$0xff]  ;;  %v136_v57 = vld [vmem:[#allocation4 + $0x128] sm:$0xff]  ;;  %v6996_v58 = vpack.c.bf16 %v116_v52, %v113_v51  ;;  %v119_v60 = vld [vmem:[#allocation4 + $0xa0] sm:$0xff]  ;;  %v7081_v38 = vshrl.u32 %v158_v37, 7 }
  0x47   :  { %5375 = vmatpush3.bf16.msra.mxu1 %v6971_v39  ;;  %4700 = vmatprep.mubr.msk.f32.mxu1 %vm6785_vm1, %v6783_v1  ;;  %v122_v61 = vld [vmem:[#allocation4 + $0xb8] sm:$0xff]  ;;  %v7000_v62 = vpack.c.bf16 %v132_v56, %v129_v55  ;;  %v7003_v63 = vpack.c.bf16 %v139_v59, %v136_v57  ;;  %v135_v0 = vld [vmem:[#allocation4 + $0x120] sm:$0xff]  ;;  %v145_v5 = vld [vmem:[#allocation4 + $0x170] sm:$0xff] }
  0x48   :  { %5376 = vmatprep.subr.bf16.mxu1 %v6784_v41  ;;  %v138_v2 = vld [vmem:[#allocation4 + $0x138] sm:$0xff]  ;;  %v7006_v4 = vpack.c.bf16 %v122_v61, %v119_v60  ;;  %v125_v6 = vld [vmem:[#allocation4 + $0xd0] sm:$0xff]  ;;  %v128_v7 = vld [vmem:[#allocation4 + $0xe8] sm:$0xff]  ;;  %v160_v40 = vsub.s32 0, %v7081_v38  ;;  %v164_v57 = vsub.s32 1, %v7081_v38 }
  0x49   :  { %5352 = vmatpush1.bf16.msra.mxu0 %v6966_v32  ;;  %v142_v3 = vld [vmem:[#allocation4 + $0x158] sm:$0xff]  ;;  %v7010_v8 = vpack.c.bf16 %v138_v2, %v135_v0  ;;  %v141_v10 = vld [vmem:[#allocation4 + $0x150] sm:$0xff]  ;;  %v144_v11 = vld [vmem:[#allocation4 + $0x168] sm:$0xff]  ;;  %v7016_v12 = vpack.c.bf16 %v128_v7, %v125_v6 }
  0x4a   :  { %5354 = vmatprep.subr.bf16.mxu0 %v6969_v35  ;;  %v7013_v9 = vpack.c.bf16 %v145_v5, %v142_v3  ;;  %v131_v14 = vld [vmem:[#allocation4 + $0x100] sm:$0xff]  ;;  %v134_v15 = vld [vmem:[#allocation4 + $0x118] sm:$0xff]  ;;  %v7020_v18 = vpack.c.bf16 %v144_v11, %v141_v10  ;;  %v137_v20 = vld [vmem:[#allocation4 + $0x130] sm:$0xff] }
  0x4b   :  { %5378 = vmatpush3.bf16.msra.mxu1 %v6984_v49  ;;  %v7024_v19 = vpack.c.bf16 %v134_v15, %v131_v14  ;;  %v140_v21 = vld [vmem:[#allocation4 + $0x148] sm:$0xff]  ;;  %v143_v26 = vld [vmem:[#allocation4 + $0x160] sm:$0xff]  ;;  %v146_v27 = vld [vmem:[#allocation4 + $0x178] sm:$0xff] }
  0x4c   :  { %5379 = vmatprep.subr.bf16.mxu1 %v6784_v41  ;;  %v7031_v23 = vld [vmem:[%s8085_s1] sm:$0x3]  ;;  %v7034_v25 = vpack.c.bf16 %v140_v21, %v137_v20  ;;  %v7042_v28 = vpack.c.bf16 %v146_v27, %v143_v26  ;;  %v168_v27 = vsub.s32 2, %v7081_v38 }
  0x4d   :  { %5356 = vmatpush1.bf16.msra.mxu0 %v6977_v44  ;;  %v147_v42 = vld [vmem:[%s8088_s4] sm:$0x7] }
  0x4e   :  { %5358 = vmatprep.subr.bf16.mxu0 %v6981_v45  ;;  %v161_v43 = vrot.slane %v147_v42, %v160_v40  ;;  %v165_v60 = vrot.slane %v147_v42, %v164_v57  ;;  %v7107_v21 = vld [vmem:[%s8089_s5] ss:$0 sm:$0xff] }
  0x4f   :  { %5381 = vmatpush3.bf16.msra.mxu1 %v6996_v58 }
  0x50   :  { %5382 = vmatprep.subr.bf16.mxu1 %v6784_v41 }
  0x51   :  { %5360 = vmatpush1.bf16.msra.mxu0 %v6990_v53 }
  0x52   :  { %5362 = vmatprep.subr.bf16.mxu0 %v6993_v54 }
  0x53   :  { %5384 = vmatpush3.bf16.msra.mxu1 %v7006_v4 }
  0x54   :  { %5385 = vmatprep.subr.bf16.mxu1 %v6784_v41 }
  0x55   :  { %5364 = vmatpush1.bf16.msra.mxu0 %v7000_v62 }
  0x56   :  { %5366 = vmatprep.subr.bf16.mxu0 %v7003_v63 }
  0x57   :  { %5387 = vmatpush3.bf16.msra.mxu1 %v7016_v12 }
  0x58   :  { %5388 = vmatprep.subr.bf16.mxu1 %v6784_v41 }
  0x59   :  { %5368 = vmatpush1.bf16.msra.mxu0 %v7010_v8 }
  0x5a   :  { %5370 = vmatprep.subr.bf16.mxu0 %v7013_v9 }
  0x5b   :  { %5390 = vmatpush3.bf16.msra.mxu1 %v7024_v19 }
  0x5c   :  { %5391 = vmatprep.subr.bf16.mxu1 %v6784_v41 }
  0x5d   :  { %5372 = vmatpush1.bf16.msra.mxu0 %v7020_v18 }
  0x5e   :  { %5398 = vmatprep.subr.bf16.mxu0 %v6941_v13 }
  0x5f   :  { %5393 = vmatpush3.bf16.msra.mxu1 %v7034_v25 }
  0x60   :  { %398 = vmatmul.mubr.f32.vlgmr.msra.gmra.mrb[4].mxu0 %v7031_v23  ;;  %5394 = vmatprep.subr.bf16.mxu1 %v6784_v41 }
  0x61   :  { %5400 = vmatpush1.bf16.msra.mxu0 %v6943_v16  ;;  %607 = vmatprep.mubr.f32.mxu0 %v6783_v1 }
  0x62   :  { %5402 = vmatprep.subr.bf16.mxu0 %v6946_v17 }
  0x63   :  { %5396 = vmatpush3.bf16.msra.mxu1 %v7042_v28 }
  0x64   :  { %5429 = vmatprep.subr.bf16.mxu1 %v6784_v41 }
  0x65   :  { %5404 = vmatpush1.bf16.msra.mxu0 %v6950_v22 }
  0x66   :  { %5406 = vmatprep.subr.bf16.mxu0 %v6954_v24  ;;  %4701 = vmatmul.mubr.f32.vlgmr.msra.gmra.mrb[2].mxu1 %v7031_v23 }
  0x67   :  { %5431 = vmatpush3.bf16.msra.mxu1 %v6971_v39  ;;  %4735 = vmatprep.mubr.msk.f32.mxu1 %vm6785_vm1, %v6783_v1 }
  0x68   :  { %5432 = vmatprep.subr.bf16.mxu1 %v6784_v41 }
  0x69   :  { %5408 = vmatpush1.bf16.msra.mxu0 %v6966_v32 }
  0x6a   :  { %5410 = vmatprep.subr.bf16.mxu0 %v6969_v35 }
  0x6b   :  { %5434 = vmatpush3.bf16.msra.mxu1 %v6984_v49 }
  0x6c   :  { %5435 = vmatprep.subr.bf16.mxu1 %v6784_v41 }
  0x6d   :  { %5412 = vmatpush1.bf16.msra.mxu0 %v6977_v44 }
  0x6e   :  { %5414 = vmatprep.subr.bf16.mxu0 %v6981_v45 }
  0x6f   :  { %5437 = vmatpush3.bf16.msra.mxu1 %v6996_v58 }
  0x70   :  { %5438 = vmatprep.subr.bf16.mxu1 %v6784_v41 }
  0x71   :  { %5416 = vmatpush1.bf16.msra.mxu0 %v6990_v53 }
  0x72   :  { %5418 = vmatprep.subr.bf16.mxu0 %v6993_v54 }
  0x73   :  { %5440 = vmatpush3.bf16.msra.mxu1 %v7006_v4 }
  0x74   :  { %5441 = vmatprep.subr.bf16.mxu1 %v6784_v41 }
  0x75   :  { %5420 = vmatpush1.bf16.msra.mxu0 %v7000_v62 }
  0x76   :  { %5422 = vmatprep.subr.bf16.mxu0 %v7003_v63 }
  0x77   :  { %5443 = vmatpush3.bf16.msra.mxu1 %v7016_v12 }
  0x78   :  { %5444 = vmatprep.subr.bf16.mxu1 %v6784_v41 }
  0x79   :  { %5424 = vmatpush1.bf16.msra.mxu0 %v7010_v8 }
  0x7a   :  { %5426 = vmatprep.subr.bf16.mxu0 %v7013_v9 }
  0x7b   :  { %5446 = vmatpush3.bf16.msra.mxu1 %v7024_v19 }
  0x7c   :  { %5447 = vmatprep.subr.bf16.mxu1 %v6784_v41 }
  0x7d   :  { %5428 = vmatpush1.bf16.msra.mxu0 %v7020_v18 }
  0x7e   :  { %5454 = vmatprep.subr.bf16.mxu0 %v6941_v13 }
  0x7f   :  { %5449 = vmatpush3.bf16.msra.mxu1 %v7034_v25 }
  0x80   :  { %5450 = vmatprep.subr.bf16.mxu1 %v6784_v41 }
  0x83   :  { %5452 = vmatpush3.bf16.msra.mxu1 %v7042_v28 }
  0x84   :  { %5485 = vmatprep.subr.bf16.mxu1 %v6784_v41 }
 0x113   :  { %v246_v29 = vpop.f32.mrb[0].mxu0 }
 0x114   :  { %v248_v30 = vpop.f32.mrb[1].mxu0  ;;  %v7089_v46 = vadd.f32 %v246_v29, %v161_v43 }
 0x115   :  { %v7098_v2 = vadd.f32 %v248_v30, %v165_v60  ;;  %v169_v30 = vrot.slane %v147_v42, %v168_v27 }
 0x117   :  { %v252_v31 = vpop.f32.mrb[2].mxu0 }
 0x118   :  { %v254_v33 = vpop.f32.mrb[3].mxu0  ;;  %v7091_v48 = vadd.f32 %v252_v31, %v161_v43 }
 0x119   :  { %v4667_v34 = vpop.f32.mrb[0].mxu1  ;;  %v7100_v6 = vadd.f32 %v254_v33, %v165_v60 }
 0x11a   :  { %v323_v36 = vpop.f32.mrb[1].mxu1 }
 0x133   :  { %v399_v47 = vpop.f32.mrb[4].mxu0 }
 0x134   :  { %v475_v50 = vrot.slane %v399_v47, 1  ;;  %v478_v51 = vadd.f32 %v399_v47, %v7089_v46  ;;  %v401_v52 = vpop.f32.mrb[5].mxu0  ;;  %v7113_v47 = vadd.f32 %v4667_v34, %v169_v30 }
 0x135   :  { %v493_v3 = vrot.slane %v401_v52, 1  ;;  %v496_v7 = vadd.f32 %v401_v52, %v7098_v2 }
 0x136   :  { %v479_v55 = vadd.f32 %v475_v50, %v7091_v48  ;;  %v4265_v56 = vmul.f32 -1.442695, %v478_v51  ;;  %v7115_v50 = vadd.f32 %v323_v36, %v169_v30 }
 0x137   :  { %v497_v14 = vadd.f32 %v493_v3, %v7100_v6  ;;  %v4267_v20 = vmul.f32 -1.442695, %v496_v7 }
 0x138   :  { %6360 = vpow2.f32 %v4265_v56  ;;  %v4266_v59 = vmul.f32 -1.442695, %v479_v55 }
 0x139   :  { %v470_v61 = vpop.f32.mrb[2].mxu1  ;;  %v4268_v26 = vmul.f32 -1.442695, %v497_v14 }
 0x13a   :  { %6362 = vpow2.f32 %v4266_v59  ;;  %v4702_v0 = vpop.f32.mrb[3].mxu1  ;;  %v510_v29 = vadd.f32 %v7107_v21, %v470_v61 }
 0x13c   :  { %v512_v31 = vrot.slane %v510_v29, 1 }
 0x142   :  { %v6361_v5 = vpop.eup %6360 }
 0x143   :  { %v486_v10 = vadd.f32 1.0, %v6361_v5 }
 0x144   :  { %v6363_v11 = vpop.eup %6362 }
 0x145   :  { %v487_v15 = vadd.f32 1.0, %v6363_v11  ;;  %6364 = vrcp.f32 %v486_v10 }
 0x147   :  { %6366 = vrcp.f32 %v487_v15 }
 0x148   :  { %6368 = vpow2.f32 %v4267_v20 }
 0x149   :  { %6370 = vpow2.f32 %v4268_v26 }
 0x14f   :  { %v6365_v33 = vpop.eup %6364 }
 0x150   :  { %v515_v37 = vmul.f32 %v6365_v33, %v510_v29 }
 0x151   :  { %v6367_v43 = vpop.eup %6366 }
 0x152   :  { %v516_v51 = vmul.f32 %v6367_v43, %v512_v31  ;;  %v6369_v52 = vpop.eup %6368  ;;  %v517_v55 = vadd.f32 %v515_v37, %v7115_v50 }
 0x153   :  { %v6371_v59 = vpop.eup %6370  ;;  %v504_v60 = vadd.f32 1.0, %v6369_v52 }
 0x154   :  { %v518_v56 = vadd.f32 %v516_v51, %v7113_v47  ;;  %v505_v61 = vadd.f32 1.0, %v6371_v59 }
 0x156   :  { %6372 = vtanh.f32 %v518_v56 }
 0x157   :  { %6374 = vtanh.f32 %v517_v55 }
 0x158   :  { %6376 = vrcp.f32 %v504_v60 }
 0x159   :  { %6378 = vrcp.f32 %v505_v61 }
 0x160   :  { %v6373_v42 = vpop.eup %6372 }
 0x161   :  { %v523_v0 = vrot.slane %v6373_v42, 7  ;;  %v6375_v34 = vpop.eup %6374 }
 0x162   :  { %v6377_v5 = vpop.eup %6376 }
 0x163   :  { %v525_v36 = vsel %vm524_vm2, %v523_v0, %v6375_v34  ;;  %v6379_v11 = vpop.eup %6378 }
 0x164   :  { %v527_v3 = vsub.f32 %v7031_v23, %v525_v36 }
 0x166   :  { %v529_v7 = vrot.slane %v527_v3, 1  ;;  %v532_v10 = vmul.f32 %v6377_v5, %v527_v3 }
 0x168   :  { %v533_v14 = vmul.f32 %v6379_v11, %v529_v7  ;;  %v7121_v15 = vadd.f32 %v6375_v34, %v532_v10 }
 0x16a   :  { %v7123_v20 = vadd.f32 %v6373_v42, %v533_v14  ;;  %536 = vst [vmem:[#allocation2] sm:$0x1] %v7121_v15 }
 0x16c   :  { %537 = vst [vmem:[#allocation2 + $0x8] sm:$0x1] %v7123_v20  ;;  %v540_v26 = vrot.slane %v7123_v20, 7 }
 0x16e   :  { %v541_v29 = vsel %vm524_vm2, %v540_v26, %v7121_v15 }
 0x16f   :  { %608 = vmatmul.mubr.f32.vlgmr.msra.gmra.mrb[6].mxu0 %v541_v29  ;;  %4736 = vmatmul.mubr.f32.vlgmr.msra.gmra.mrb[4].mxu1 %v541_v29 }
 0x170   :  { %5456 = vmatpush1.bf16.msra.mxu0 %v6943_v16  ;;  %5487 = vmatpush3.bf16.msra.mxu1 %v6971_v39 }
 0x171   :  { %5458 = vmatprep.subr.bf16.mxu0 %v6946_v17  ;;  %5488 = vmatprep.subr.bf16.mxu1 %v6784_v41 }
 0x172   :  { %820 = vmatprep.mubr.f32.mxu0 %v6783_v1  ;;  %4770 = vmatprep.mubr.msk.f32.mxu1 %vm6785_vm1, %v6783_v1 }
 0x174   :  { %5460 = vmatpush1.bf16.msra.mxu0 %v6950_v22  ;;  %5490 = vmatpush3.bf16.msra.mxu1 %v6984_v49 }
 0x175   :  { %5462 = vmatprep.subr.bf16.mxu0 %v6954_v24  ;;  %5491 = vmatprep.subr.bf16.mxu1 %v6784_v41 }
 0x178   :  { %5464 = vmatpush1.bf16.msra.mxu0 %v6966_v32  ;;  %5493 = vmatpush3.bf16.msra.mxu1 %v6996_v58 }
 0x179   :  { %5466 = vmatprep.subr.bf16.mxu0 %v6969_v35  ;;  %5494 = vmatprep.subr.bf16.mxu1 %v6784_v41 }
 0x17c   :  { %5468 = vmatpush1.bf16.msra.mxu0 %v6977_v44  ;;  %5496 = vmatpush3.bf16.msra.mxu1 %v7006_v4 }
 0x17d   :  { %5470 = vmatprep.subr.bf16.mxu0 %v6981_v45  ;;  %5497 = vmatprep.subr.bf16.mxu1 %v6784_v41 }
 0x180   :  { %5472 = vmatpush1.bf16.msra.mxu0 %v6990_v53  ;;  %5499 = vmatpush3.bf16.msra.mxu1 %v7016_v12 }
 0x181   :  { %5474 = vmatprep.subr.bf16.mxu0 %v6993_v54  ;;  %5500 = vmatprep.subr.bf16.mxu1 %v6784_v41 }
 0x184   :  { %5476 = vmatpush1.bf16.msra.mxu0 %v7000_v62  ;;  %5502 = vmatpush3.bf16.msra.mxu1 %v7024_v19 }
 0x185   :  { %5478 = vmatprep.subr.bf16.mxu0 %v7003_v63  ;;  %5503 = vmatprep.subr.bf16.mxu1 %v6784_v41 }
 0x188   :  { %5480 = vmatpush1.bf16.msra.mxu0 %v7010_v8  ;;  %5505 = vmatpush3.bf16.msra.mxu1 %v7034_v25 }
 0x189   :  { %5482 = vmatprep.subr.bf16.mxu0 %v7013_v9  ;;  %5506 = vmatprep.subr.bf16.mxu1 %v6784_v41 }
 0x18c   :  { %5484 = vmatpush1.bf16.msra.mxu0 %v7020_v18  ;;  %5508 = vmatpush3.bf16.msra.mxu1 %v7042_v28 }
 0x18d   :  { %5510 = vmatprep.subr.bf16.mxu0 %v6941_v13  ;;  %5541 = vmatprep.subr.bf16.mxu1 %v6784_v41 }
 0x242   :  { %v609_v23 = vpop.f32.mrb[6].mxu0  ;;  %v680_v30 = vpop.f32.mrb[4].mxu1 }
 0x243   :  { %v685_v31 = vrot.slane %v609_v23, 7  ;;  %v689_v33 = vadd.f32 %v609_v23, %v7091_v48  ;;  %v611_v37 = vpop.f32.mrb[7].mxu0  ;;  %v4737_v43 = vpop.f32.mrb[5].mxu1  ;;  %v720_v5 = vadd.f32 %v7107_v21, %v680_v30 }
 0x244   :  { %v703_v56 = vrot.slane %v611_v37, 7  ;;  %v707_v59 = vadd.f32 %v611_v37, %v7100_v6 }
 0x245   :  { %v688_v51 = vadd.f32 %v685_v31, %v7089_v46  ;;  %v4270_v52 = vmul.f32 -1.442695, %v689_v33  ;;  %v722_v10 = vrot.slane %v720_v5, 7 }
 0x246   :  { %v706_v42 = vadd.f32 %v703_v56, %v7098_v2  ;;  %v4272_v36 = vmul.f32 -1.442695, %v707_v59 }
 0x247   :  { %v4269_v55 = vmul.f32 -1.442695, %v688_v51  ;;  %6380 = vpow2.f32 %v4270_v52 }
 0x248   :  { %v4271_v3 = vmul.f32 -1.442695, %v706_v42 }
 0x249   :  { %6382 = vpow2.f32 %v4269_v55 }
 0x251   :  { %v6381_v60 = vpop.eup %6380 }
 0x252   :  { %v697_v61 = vadd.f32 1.0, %v6381_v60 }
 0x253   :  { %v6383_v0 = vpop.eup %6382 }
 0x254   :  { %v696_v34 = vadd.f32 1.0, %v6383_v0  ;;  %6384 = vrcp.f32 %v697_v61 }
 0x256   :  { %6386 = vrcp.f32 %v696_v34 }
 0x257   :  { %6388 = vpow2.f32 %v4272_v36 }
 0x258   :  { %6390 = vpow2.f32 %v4271_v3 }
 0x25e   :  { %v6385_v7 = vpop.eup %6384 }
 0x25f   :  { %v726_v11 = vmul.f32 %v6385_v7, %v720_v5 }
 0x260   :  { %v6387_v14 = vpop.eup %6386 }
 0x261   :  { %v725_v26 = vmul.f32 %v6387_v14, %v722_v10  ;;  %v728_v29 = vadd.f32 %v726_v11, %v7113_v47  ;;  %v6389_v23 = vpop.eup %6388 }
 0x262   :  { %v6391_v33 = vpop.eup %6390  ;;  %v715_v37 = vadd.f32 1.0, %v6389_v23 }
 0x263   :  { %v727_v31 = vadd.f32 %v725_v26, %v7115_v50  ;;  %6392 = vtanh.f32 %v728_v29  ;;  %v714_v43 = vadd.f32 1.0, %v6391_v33 }
 0x265   :  { %6394 = vtanh.f32 %v727_v31 }
 0x266   :  { %6396 = vrcp.f32 %v715_v37 }
 0x267   :  { %6398 = vrcp.f32 %v714_v43 }
 0x26d   :  { %v6393_v51 = vpop.eup %6392 }
 0x26e   :  { %v734_v52 = vrot.slane %v6393_v51, 1 }
 0x26f   :  { %v6395_v30 = vpop.eup %6394 }
 0x270   :  { %v733_v55 = vrot.slane %v6395_v30, 1  ;;  %v738_v56 = vsub.f32 %v7123_v20, %v734_v52  ;;  %v6397_v61 = vpop.eup %6396 }
 0x271   :  { %v6399_v34 = vpop.eup %6398 }
 0x272   :  { %v737_v59 = vsub.f32 %v7121_v15, %v733_v55  ;;  %v742_v60 = vrot.slane %v738_v56, 7 }
 0x274   :  { %v741_v42 = vrot.slane %v737_v59, 7  ;;  %v746_v0 = vmul.f32 %v6397_v61, %v742_v60 }
 0x276   :  { %v745_v36 = vmul.f32 %v6399_v34, %v741_v42  ;;  %v7174_v3 = vadd.f32 %v6393_v51, %v746_v0 }
 0x278   :  { %v7176_v5 = vadd.f32 %v6395_v30, %v745_v36  ;;  %750 = vst [vmem:[#allocation2 + $0x8] sm:$0x2] %v7174_v3 }
 0x27a   :  { %749 = vst [vmem:[#allocation2] sm:$0x2] %v7176_v5  ;;  %v753_v7 = vrot.slane %v7176_v5, 1 }
 0x27c   :  { %v754_v20 = vsel %vm524_vm2, %v7174_v3, %v753_v7 }
 0x27d   :  { %821 = vmatmul.mubr.f32.vlgmr.msra.gmra.mrb[8].mxu0 %v754_v20  ;;  %4771 = vmatmul.mubr.f32.vlgmr.msra.gmra.mrb[6].mxu1 %v754_v20 }
 0x27e   :  { %5512 = vmatpush1.bf16.msra.mxu0 %v6943_v16  ;;  %5543 = vmatpush3.bf16.msra.mxu1 %v6971_v39 }
 0x27f   :  { %5514 = vmatprep.subr.bf16.mxu0 %v6946_v17  ;;  %5544 = vmatprep.subr.bf16.mxu1 %v6784_v41 }
 0x280   :  { %1037 = vmatprep.mubr.f32.mxu0 %v6783_v1  ;;  %4805 = vmatprep.mubr.msk.f32.mxu1 %vm6785_vm1, %v6783_v1 }
 0x282   :  { %5516 = vmatpush1.bf16.msra.mxu0 %v6950_v22  ;;  %5546 = vmatpush3.bf16.msra.mxu1 %v6984_v49 }
 0x283   :  { %5518 = vmatprep.subr.bf16.mxu0 %v6954_v24  ;;  %5547 = vmatprep.subr.bf16.mxu1 %v6784_v41 }
 0x286   :  { %5520 = vmatpush1.bf16.msra.mxu0 %v6966_v32  ;;  %5549 = vmatpush3.bf16.msra.mxu1 %v6996_v58 }
 0x287   :  { %5522 = vmatprep.subr.bf16.mxu0 %v6969_v35  ;;  %5550 = vmatprep.subr.bf16.mxu1 %v6784_v41 }
 0x28a   :  { %5524 = vmatpush1.bf16.msra.mxu0 %v6977_v44  ;;  %5552 = vmatpush3.bf16.msra.mxu1 %v7006_v4 }
 0x28b   :  { %5526 = vmatprep.subr.bf16.mxu0 %v6981_v45  ;;  %5553 = vmatprep.subr.bf16.mxu1 %v6784_v41 }
 0x28e   :  { %5528 = vmatpush1.bf16.msra.mxu0 %v6990_v53  ;;  %5555 = vmatpush3.bf16.msra.mxu1 %v7016_v12 }
 0x28f   :  { %5530 = vmatprep.subr.bf16.mxu0 %v6993_v54  ;;  %5556 = vmatprep.subr.bf16.mxu1 %v6784_v41 }
 0x292   :  { %5532 = vmatpush1.bf16.msra.mxu0 %v7000_v62  ;;  %5558 = vmatpush3.bf16.msra.mxu1 %v7024_v19 }
 0x293   :  { %5534 = vmatprep.subr.bf16.mxu0 %v7003_v63  ;;  %5559 = vmatprep.subr.bf16.mxu1 %v6784_v41 }
 0x296   :  { %5536 = vmatpush1.bf16.msra.mxu0 %v7010_v8  ;;  %5561 = vmatpush3.bf16.msra.mxu1 %v7034_v25 }
 0x297   :  { %5538 = vmatprep.subr.bf16.mxu0 %v7013_v9  ;;  %5562 = vmatprep.subr.bf16.mxu1 %v6784_v41 }
 0x29a   :  { %5540 = vmatpush1.bf16.msra.mxu0 %v7020_v18  ;;  %5564 = vmatpush3.bf16.msra.mxu1 %v7042_v28 }
 0x29b   :  { %5566 = vmatprep.subr.bf16.mxu0 %v6941_v13  ;;  %5597 = vmatprep.subr.bf16.mxu1 %v6784_v41 }
 0x350   :  { %v822_v15 = vpop.f32.mrb[8].mxu0  ;;  %v893_v10 = vpop.f32.mrb[6].mxu1 }
 0x351   :  { %v898_v11 = vrot.slane %v822_v15, 6  ;;  %v899_v14 = vrot.slane %v822_v15, 7  ;;  %v824_v26 = vpop.f32.mrb[9].mxu0  ;;  %v4772_v29 = vpop.f32.mrb[7].mxu1  ;;  %v935_v0 = vadd.f32 %v7107_v21, %v893_v10 }
 0x352   :  { %v917_v43 = vrot.slane %v824_v26, 6  ;;  %v918_v51 = vrot.slane %v824_v26, 7 }
 0x353   :  { %v902_v23 = vadd.f32 %v898_v11, %v7089_v46  ;;  %v903_v31 = vadd.f32 %v899_v14, %v7091_v48  ;;  %v937_v34 = vrot.slane %v935_v0, 6  ;;  %v938_v7 = vrot.slane %v935_v0, 7 }
 0x354   :  { %v921_v52 = vadd.f32 %v917_v43, %v7098_v2  ;;  %v922_v55 = vadd.f32 %v918_v51, %v7100_v6 }
 0x355   :  { %v4273_v33 = vmul.f32 -1.442695, %v902_v23  ;;  %v4274_v37 = vmul.f32 -1.442695, %v903_v31 }
 0x356   :  { %v4275_v61 = vmul.f32 -1.442695, %v921_v52  ;;  %v4276_v42 = vmul.f32 -1.442695, %v922_v55 }
 0x357   :  { %6400 = vpow2.f32 %v4273_v33 }
 0x358   :  { %6402 = vpow2.f32 %v4274_v37 }
 0x361   :  { %v6401_v30 = vpop.eup %6400 }
 0x362   :  { %v6403_v56 = vpop.eup %6402  ;;  %v910_v59 = vadd.f32 1.0, %v6401_v30 }
 0x363   :  { %v911_v60 = vadd.f32 1.0, %v6403_v56 }
 0x364   :  { %6404 = vrcp.f32 %v910_v59 }
 0x365   :  { %6406 = vrcp.f32 %v911_v60 }
 0x366   :  { %6408 = vpow2.f32 %v4275_v61 }
 0x367   :  { %6410 = vpow2.f32 %v4276_v42 }
 0x36e   :  { %v6405_v36 = vpop.eup %6404 }
 0x36f   :  { %v6407_v20 = vpop.eup %6406  ;;  %v941_v15 = vmul.f32 %v6405_v36, %v937_v34 }
 0x370   :  { %v942_v11 = vmul.f32 %v6407_v20, %v938_v7  ;;  %v6409_v26 = vpop.eup %6408 }
 0x371   :  { %v943_v14 = vadd.f32 %v941_v15, %v7115_v50  ;;  %v6411_v23 = vpop.eup %6410  ;;  %v929_v31 = vadd.f32 1.0, %v6409_v26 }
 0x372   :  { %v944_v29 = vadd.f32 %v942_v11, %v7113_v47  ;;  %v930_v33 = vadd.f32 1.0, %v6411_v23 }
 0x373   :  { %6412 = vtanh.f32 %v943_v14 }
 0x374   :  { %6414 = vtanh.f32 %v944_v29 }
 0x375   :  { %6416 = vrcp.f32 %v929_v31 }
 0x376   :  { %6418 = vrcp.f32 %v930_v33 }
 0x37d   :  { %v6413_v10 = vpop.eup %6412 }
 0x37e   :  { %v6415_v37 = vpop.eup %6414  ;;  %v949_v43 = vrot.slane %v6413_v10, 1 }
 0x37f   :  { %v950_v51 = vrot.slane %v6415_v37, 1  ;;  %v6417_v56 = vpop.eup %6416 }
 0x380   :  { %v953_v52 = vsub.f32 %v7176_v5, %v949_v43  ;;  %v6419_v60 = vpop.eup %6418 }
 0x381   :  { %v954_v30 = vsub.f32 %v7174_v3, %v950_v51 }
 0x382   :  { %v957_v55 = vrot.slane %v953_v52, 7 }
 0x383   :  { %v958_v59 = vrot.slane %v954_v30, 7 }
 0x384   :  { %v961_v61 = vmul.f32 %v6417_v56, %v957_v55 }
 0x385   :  { %v962_v42 = vmul.f32 %v6419_v60, %v958_v59 }
 0x386   :  { %v7227_v0 = vadd.f32 %v6413_v10, %v961_v61 }
 0x387   :  { %v7229_v34 = vadd.f32 %v6415_v37, %v962_v42 }
 0x388   :  { %965 = vst [vmem:[#allocation2] sm:$0x4] %v7227_v0  ;;  %v969_v36 = vrot.slane %v7227_v0, 2 }
 0x389   :  { %966 = vst [vmem:[#allocation2 + $0x8] sm:$0x4] %v7229_v34  ;;  %v970_v5 = vrot.slane %v7229_v34, 1 }
 0x38b   :  { %v971_v3 = vsel %vm524_vm2, %v970_v5, %v969_v36 }
 0x38c   :  { %1038 = vmatmul.mubr.f32.vlgmr.msra.gmra.mrb[10].mxu0 %v971_v3  ;;  %4806 = vmatmul.mubr.f32.vlgmr.msra.gmra.mrb[8].mxu1 %v971_v3 }
 0x38d   :  { %5568 = vmatpush1.bf16.msra.mxu0 %v6943_v16  ;;  %5599 = vmatpush3.bf16.msra.mxu1 %v6971_v39 }
 0x38e   :  { %5570 = vmatprep.subr.bf16.mxu0 %v6946_v17  ;;  %5600 = vmatprep.subr.bf16.mxu1 %v6784_v41 }
 0x38f   :  { %1254 = vmatprep.mubr.f32.mxu0 %v6783_v1  ;;  %4840 = vmatprep.mubr.msk.f32.mxu1 %vm6785_vm1, %v6783_v1 }
 0x391   :  { %5572 = vmatpush1.bf16.msra.mxu0 %v6950_v22  ;;  %5602 = vmatpush3.bf16.msra.mxu1 %v6984_v49 }
 0x392   :  { %5574 = vmatprep.subr.bf16.mxu0 %v6954_v24  ;;  %5603 = vmatprep.subr.bf16.mxu1 %v6784_v41 }
 0x395   :  { %5576 = vmatpush1.bf16.msra.mxu0 %v6966_v32  ;;  %5605 = vmatpush3.bf16.msra.mxu1 %v6996_v58 }
 0x396   :  { %5578 = vmatprep.subr.bf16.mxu0 %v6969_v35  ;;  %5606 = vmatprep.subr.bf16.mxu1 %v6784_v41 }
 0x399   :  { %5580 = vmatpush1.bf16.msra.mxu0 %v6977_v44  ;;  %5608 = vmatpush3.bf16.msra.mxu1 %v7006_v4 }
 0x39a   :  { %5582 = vmatprep.subr.bf16.mxu0 %v6981_v45  ;;  %5609 = vmatprep.subr.bf16.mxu1 %v6784_v41 }
 0x39d   :  { %5584 = vmatpush1.bf16.msra.mxu0 %v6990_v53  ;;  %5611 = vmatpush3.bf16.msra.mxu1 %v7016_v12 }
 0x39e   :  { %5586 = vmatprep.subr.bf16.mxu0 %v6993_v54  ;;  %5612 = vmatprep.subr.bf16.mxu1 %v6784_v41 }
 0x3a1   :  { %5588 = vmatpush1.bf16.msra.mxu0 %v7000_v62  ;;  %5614 = vmatpush3.bf16.msra.mxu1 %v7024_v19 }
 0x3a2   :  { %5590 = vmatprep.subr.bf16.mxu0 %v7003_v63  ;;  %5615 = vmatprep.subr.bf16.mxu1 %v6784_v41 }
 0x3a5   :  { %5592 = vmatpush1.bf16.msra.mxu0 %v7010_v8  ;;  %5617 = vmatpush3.bf16.msra.mxu1 %v7034_v25 }
 0x3a6   :  { %5594 = vmatprep.subr.bf16.mxu0 %v7013_v9  ;;  %5618 = vmatprep.subr.bf16.mxu1 %v6784_v41 }
 0x3a9   :  { %5596 = vmatpush1.bf16.msra.mxu0 %v7020_v18  ;;  %5620 = vmatpush3.bf16.msra.mxu1 %v7042_v28 }
 0x3aa   :  { %5622 = vmatprep.subr.bf16.mxu0 %v6941_v13  ;;  %5653 = vmatprep.subr.bf16.mxu1 %v6784_v41 }
 0x45f   :  { %v1039_v7 = vpop.f32.mrb[10].mxu0  ;;  %v1110_v20 = vpop.f32.mrb[8].mxu1 }
 0x460   :  { %v1115_v15 = vrot.slane %v1039_v7, 5  ;;  %v1116_v11 = vrot.slane %v1039_v7, 6  ;;  %v1041_v14 = vpop.f32.mrb[11].mxu0  ;;  %v4807_v26 = vpop.f32.mrb[9].mxu1  ;;  %v1152_v61 = vadd.f32 %v7107_v21, %v1110_v20 }
 0x461   :  { %v1134_v10 = vrot.slane %v1041_v14, 5  ;;  %v1135_v37 = vrot.slane %v1041_v14, 6 }
 0x462   :  { %v1119_v29 = vadd.f32 %v1115_v15, %v7089_v46  ;;  %v1120_v23 = vadd.f32 %v1116_v11, %v7091_v48  ;;  %v1154_v42 = vrot.slane %v1152_v61, 5  ;;  %v1155_v5 = vrot.slane %v1152_v61, 6 }
 0x463   :  { %v1138_v43 = vadd.f32 %v1134_v10, %v7098_v2  ;;  %v1139_v52 = vadd.f32 %v1135_v37, %v7100_v6 }
 0x464   :  { %v4277_v31 = vmul.f32 -1.442695, %v1119_v29  ;;  %v4278_v33 = vmul.f32 -1.442695, %v1120_v23 }
 0x465   :  { %v4279_v59 = vmul.f32 -1.442695, %v1138_v43  ;;  %v4280_v60 = vmul.f32 -1.442695, %v1139_v52 }
 0x466   :  { %6420 = vpow2.f32 %v4277_v31 }
 0x467   :  { %6422 = vpow2.f32 %v4278_v33 }
 0x470   :  { %v6421_v51 = vpop.eup %6420 }
 0x471   :  { %v6423_v30 = vpop.eup %6422  ;;  %v1127_v55 = vadd.f32 1.0, %v6421_v51 }
 0x472   :  { %v1128_v56 = vadd.f32 1.0, %v6423_v30 }
 0x473   :  { %6424 = vrcp.f32 %v1127_v55 }
 0x474   :  { %6426 = vrcp.f32 %v1128_v56 }
 0x475   :  { %6428 = vpow2.f32 %v4279_v59 }
 0x476   :  { %6430 = vpow2.f32 %v4280_v60 }
 0x47d   :  { %v6425_v36 = vpop.eup %6424 }
 0x47e   :  { %v6427_v3 = vpop.eup %6426  ;;  %v1158_v7 = vmul.f32 %v6425_v36, %v1154_v42 }
 0x47f   :  { %v1159_v15 = vmul.f32 %v6427_v3, %v1155_v5  ;;  %v6429_v14 = vpop.eup %6428 }
 0x480   :  { %v1160_v11 = vadd.f32 %v1158_v7, %v7115_v50  ;;  %v6431_v29 = vpop.eup %6430  ;;  %v1146_v23 = vadd.f32 1.0, %v6429_v14 }
 0x481   :  { %v1161_v26 = vadd.f32 %v1159_v15, %v7113_v47  ;;  %v1147_v31 = vadd.f32 1.0, %v6431_v29 }
 0x482   :  { %6432 = vtanh.f32 %v1160_v11 }
 0x483   :  { %6434 = vtanh.f32 %v1161_v26 }
 0x484   :  { %6436 = vrcp.f32 %v1146_v23 }
 0x485   :  { %6438 = vrcp.f32 %v1147_v31 }
 0x48c   :  { %v6433_v20 = vpop.eup %6432 }
 0x48d   :  { %v6435_v33 = vpop.eup %6434  ;;  %v1166_v10 = vrot.slane %v6433_v20, 1 }
 0x48e   :  { %v1167_v37 = vrot.slane %v6435_v33, 1  ;;  %v6437_v30 = vpop.eup %6436 }
 0x48f   :  { %v1170_v43 = vsub.f32 %v7227_v0, %v1166_v10  ;;  %v6439_v56 = vpop.eup %6438 }
 0x490   :  { %v1171_v51 = vsub.f32 %v7229_v34, %v1167_v37 }
 0x491   :  { %v1174_v52 = vrot.slane %v1170_v43, 7 }
 0x492   :  { %v1175_v55 = vrot.slane %v1171_v51, 7 }
 0x493   :  { %v1178_v59 = vmul.f32 %v6437_v30, %v1174_v52 }
 0x494   :  { %v1179_v60 = vmul.f32 %v6439_v56, %v1175_v55 }
 0x495   :  { %v7280_v61 = vadd.f32 %v6433_v20, %v1178_v59 }
 0x496   :  { %v7282_v42 = vadd.f32 %v6435_v33, %v1179_v60 }
 0x497   :  { %1182 = vst [vmem:[#allocation2] sm:$0x8] %v7280_v61  ;;  %v1186_v36 = vrot.slane %v7280_v61, 3 }
 0x498   :  { %1183 = vst [vmem:[#allocation2 + $0x8] sm:$0x8] %v7282_v42  ;;  %v1187_v0 = vrot.slane %v7282_v42, 2 }
 0x49a   :  { %v1188_v34 = vsel %vm524_vm2, %v1187_v0, %v1186_v36 }
 0x49b   :  { %1255 = vmatmul.mubr.f32.vlgmr.msra.gmra.mrb[12].mxu0 %v1188_v34  ;;  %4841 = vmatmul.mubr.f32.vlgmr.msra.gmra.mrb[10].mxu1 %v1188_v34 }
 0x49c   :  { %5624 = vmatpush1.bf16.msra.mxu0 %v6943_v16  ;;  %5655 = vmatpush3.bf16.msra.mxu1 %v6971_v39 }
 0x49d   :  { %5626 = vmatprep.subr.bf16.mxu0 %v6946_v17  ;;  %5656 = vmatprep.subr.bf16.mxu1 %v6784_v41 }
 0x49e   :  { %1471 = vmatprep.mubr.f32.mxu0 %v6783_v1  ;;  %4875 = vmatprep.mubr.msk.f32.mxu1 %vm6785_vm1, %v6783_v1 }
 0x4a0   :  { %5628 = vmatpush1.bf16.msra.mxu0 %v6950_v22  ;;  %5658 = vmatpush3.bf16.msra.mxu1 %v6984_v49 }
 0x4a1   :  { %5630 = vmatprep.subr.bf16.mxu0 %v6954_v24  ;;  %5659 = vmatprep.subr.bf16.mxu1 %v6784_v41 }
 0x4a4   :  { %5632 = vmatpush1.bf16.msra.mxu0 %v6966_v32  ;;  %5661 = vmatpush3.bf16.msra.mxu1 %v6996_v58 }
 0x4a5   :  { %5634 = vmatprep.subr.bf16.mxu0 %v6969_v35  ;;  %5662 = vmatprep.subr.bf16.mxu1 %v6784_v41 }
 0x4a8   :  { %5636 = vmatpush1.bf16.msra.mxu0 %v6977_v44  ;;  %5664 = vmatpush3.bf16.msra.mxu1 %v7006_v4 }
 0x4a9   :  { %5638 = vmatprep.subr.bf16.mxu0 %v6981_v45  ;;  %5665 = vmatprep.subr.bf16.mxu1 %v6784_v41 }
 0x4ac   :  { %5640 = vmatpush1.bf16.msra.mxu0 %v6990_v53  ;;  %5667 = vmatpush3.bf16.msra.mxu1 %v7016_v12 }
 0x4ad   :  { %5642 = vmatprep.subr.bf16.mxu0 %v6993_v54  ;;  %5668 = vmatprep.subr.bf16.mxu1 %v6784_v41 }
 0x4b0   :  { %5644 = vmatpush1.bf16.msra.mxu0 %v7000_v62  ;;  %5670 = vmatpush3.bf16.msra.mxu1 %v7024_v19 }
 0x4b1   :  { %5646 = vmatprep.subr.bf16.mxu0 %v7003_v63  ;;  %5671 = vmatprep.subr.bf16.mxu1 %v6784_v41 }
 0x4b4   :  { %5648 = vmatpush1.bf16.msra.mxu0 %v7010_v8  ;;  %5673 = vmatpush3.bf16.msra.mxu1 %v7034_v25 }
 0x4b5   :  { %5650 = vmatprep.subr.bf16.mxu0 %v7013_v9  ;;  %5674 = vmatprep.subr.bf16.mxu1 %v6784_v41 }
 0x4b8   :  { %5652 = vmatpush1.bf16.msra.mxu0 %v7020_v18  ;;  %5676 = vmatpush3.bf16.msra.mxu1 %v7042_v28 }
 0x4b9   :  { %5678 = vmatprep.subr.bf16.mxu0 %v6941_v13  ;;  %5709 = vmatprep.subr.bf16.mxu1 %v6784_v41 }
 0x56e   :  { %v1256_v5 = vpop.f32.mrb[12].mxu0  ;;  %v1327_v3 = vpop.f32.mrb[10].mxu1 }
 0x56f   :  { %v1332_v7 = vrot.slane %v1256_v5, 4  ;;  %v1333_v15 = vrot.slane %v1256_v5, 5  ;;  %v1258_v11 = vpop.f32.mrb[13].mxu0  ;;  %v4842_v14 = vpop.f32.mrb[11].mxu1  ;;  %v1369_v59 = vadd.f32 %v7107_v21, %v1327_v3 }
 0x570   :  { %v1351_v20 = vrot.slane %v1258_v11, 4  ;;  %v1352_v33 = vrot.slane %v1258_v11, 5 }
 0x571   :  { %v1336_v26 = vadd.f32 %v1332_v7, %v7089_v46  ;;  %v1337_v29 = vadd.f32 %v1333_v15, %v7091_v48  ;;  %v1371_v60 = vrot.slane %v1369_v59, 4  ;;  %v1372_v0 = vrot.slane %v1369_v59, 5 }
 0x572   :  { %v1355_v10 = vadd.f32 %v1351_v20, %v7098_v2  ;;  %v1356_v43 = vadd.f32 %v1352_v33, %v7100_v6 }
 0x573   :  { %v4281_v23 = vmul.f32 -1.442695, %v1336_v26  ;;  %v4282_v31 = vmul.f32 -1.442695, %v1337_v29 }
 0x574   :  { %v4283_v55 = vmul.f32 -1.442695, %v1355_v10  ;;  %v4284_v56 = vmul.f32 -1.442695, %v1356_v43 }
 0x575   :  { %6440 = vpow2.f32 %v4281_v23 }
 0x576   :  { %6442 = vpow2.f32 %v4282_v31 }
 0x57f   :  { %v6441_v37 = vpop.eup %6440 }
 0x580   :  { %v6443_v51 = vpop.eup %6442  ;;  %v1344_v52 = vadd.f32 1.0, %v6441_v37 }
 0x581   :  { %v1345_v30 = vadd.f32 1.0, %v6443_v51 }
 0x582   :  { %6444 = vrcp.f32 %v1344_v52 }
 0x583   :  { %6446 = vrcp.f32 %v1345_v30 }
 0x584   :  { %6448 = vpow2.f32 %v4283_v55 }
 0x585   :  { %6450 = vpow2.f32 %v4284_v56 }
 0x58c   :  { %v6445_v36 = vpop.eup %6444 }
 0x58d   :  { %v6447_v34 = vpop.eup %6446  ;;  %v1375_v5 = vmul.f32 %v6445_v36, %v1371_v60 }
 0x58e   :  { %v1376_v7 = vmul.f32 %v6447_v34, %v1372_v0  ;;  %v6449_v11 = vpop.eup %6448 }
 0x58f   :  { %v1377_v15 = vadd.f32 %v1375_v5, %v7115_v50  ;;  %v6451_v26 = vpop.eup %6450  ;;  %v1363_v29 = vadd.f32 1.0, %v6449_v11 }
 0x590   :  { %v1378_v14 = vadd.f32 %v1376_v7, %v7113_v47  ;;  %v1364_v23 = vadd.f32 1.0, %v6451_v26 }
 0x591   :  { %6452 = vtanh.f32 %v1377_v15 }
 0x592   :  { %6454 = vtanh.f32 %v1378_v14 }
 0x593   :  { %6456 = vrcp.f32 %v1363_v29 }
 0x594   :  { %6458 = vrcp.f32 %v1364_v23 }
 0x59b   :  { %v6453_v3 = vpop.eup %6452 }
 0x59c   :  { %v6455_v31 = vpop.eup %6454  ;;  %v1383_v20 = vrot.slane %v6453_v3, 1 }
 0x59d   :  { %v1384_v33 = vrot.slane %v6455_v31, 1  ;;  %v6457_v51 = vpop.eup %6456 }
 0x59e   :  { %v1387_v10 = vsub.f32 %v7280_v61, %v1383_v20  ;;  %v6459_v30 = vpop.eup %6458 }
 0x59f   :  { %v1388_v37 = vsub.f32 %v7282_v42, %v1384_v33 }
 0x5a0   :  { %v1391_v43 = vrot.slane %v1387_v10, 7 }
 0x5a1   :  { %v1392_v52 = vrot.slane %v1388_v37, 7 }
 0x5a2   :  { %v1395_v55 = vmul.f32 %v6457_v51, %v1391_v43 }
 0x5a3   :  { %v1396_v56 = vmul.f32 %v6459_v30, %v1392_v52 }
 0x5a4   :  { %v7333_v59 = vadd.f32 %v6453_v3, %v1395_v55 }
 0x5a5   :  { %v7335_v60 = vadd.f32 %v6455_v31, %v1396_v56 }
 0x5a6   :  { %1399 = vst [vmem:[#allocation2] sm:$0x10] %v7333_v59  ;;  %v1403_v36 = vrot.slane %v7333_v59, 4 }
 0x5a7   :  { %1400 = vst [vmem:[#allocation2 + $0x8] sm:$0x10] %v7335_v60  ;;  %v1404_v61 = vrot.slane %v7335_v60, 3 }
 0x5a9   :  { %v1405_v42 = vsel %vm524_vm2, %v1404_v61, %v1403_v36 }
 0x5aa   :  { %1472 = vmatmul.mubr.f32.vlgmr.msra.gmra.mrb[14].mxu0 %v1405_v42  ;;  %4876 = vmatmul.mubr.f32.vlgmr.msra.gmra.mrb[12].mxu1 %v1405_v42 }
 0x5ab   :  { %5680 = vmatpush1.bf16.msra.mxu0 %v6943_v16  ;;  %5711 = vmatpush3.bf16.msra.mxu1 %v6971_v39 }
 0x5ac   :  { %5682 = vmatprep.subr.bf16.mxu0 %v6946_v17  ;;  %5712 = vmatprep.subr.bf16.mxu1 %v6784_v41 }
 0x5ad   :  { %1688 = vmatprep.mubr.f32.mxu0 %v6783_v1  ;;  %4910 = vmatprep.mubr.msk.f32.mxu1 %vm6785_vm1, %v6783_v1 }
 0x5af   :  { %5684 = vmatpush1.bf16.msra.mxu0 %v6950_v22  ;;  %5714 = vmatpush3.bf16.msra.mxu1 %v6984_v49 }
 0x5b0   :  { %5686 = vmatprep.subr.bf16.mxu0 %v6954_v24  ;;  %5715 = vmatprep.subr.bf16.mxu1 %v6784_v41 }
 0x5b3   :  { %5688 = vmatpush1.bf16.msra.mxu0 %v6966_v32  ;;  %5717 = vmatpush3.bf16.msra.mxu1 %v6996_v58 }
 0x5b4   :  { %5690 = vmatprep.subr.bf16.mxu0 %v6969_v35  ;;  %5718 = vmatprep.subr.bf16.mxu1 %v6784_v41 }
 0x5b7   :  { %5692 = vmatpush1.bf16.msra.mxu0 %v6977_v44  ;;  %5720 = vmatpush3.bf16.msra.mxu1 %v7006_v4 }
 0x5b8   :  { %5694 = vmatprep.subr.bf16.mxu0 %v6981_v45  ;;  %5721 = vmatprep.subr.bf16.mxu1 %v6784_v41 }
 0x5bb   :  { %5696 = vmatpush1.bf16.msra.mxu0 %v6990_v53  ;;  %5723 = vmatpush3.bf16.msra.mxu1 %v7016_v12 }
 0x5bc   :  { %5698 = vmatprep.subr.bf16.mxu0 %v6993_v54  ;;  %5724 = vmatprep.subr.bf16.mxu1 %v6784_v41 }
 0x5bf   :  { %5700 = vmatpush1.bf16.msra.mxu0 %v7000_v62  ;;  %5726 = vmatpush3.bf16.msra.mxu1 %v7024_v19 }
 0x5c0   :  { %5702 = vmatprep.subr.bf16.mxu0 %v7003_v63  ;;  %5727 = vmatprep.subr.bf16.mxu1 %v6784_v41 }
 0x5c3   :  { %5704 = vmatpush1.bf16.msra.mxu0 %v7010_v8  ;;  %5729 = vmatpush3.bf16.msra.mxu1 %v7034_v25 }
 0x5c4   :  { %5706 = vmatprep.subr.bf16.mxu0 %v7013_v9  ;;  %5730 = vmatprep.subr.bf16.mxu1 %v6784_v41 }
 0x5c7   :  { %5708 = vmatpush1.bf16.msra.mxu0 %v7020_v18  ;;  %5732 = vmatpush3.bf16.msra.mxu1 %v7042_v28 }
 0x5c8   :  { %5734 = vmatprep.subr.bf16.mxu0 %v6941_v13  ;;  %5765 = vmatprep.subr.bf16.mxu1 %v6784_v41 }
 0x67d   :  { %v1473_v0 = vpop.f32.mrb[14].mxu0  ;;  %v1544_v34 = vpop.f32.mrb[12].mxu1 }
 0x67e   :  { %v1549_v5 = vrot.slane %v1473_v0, 3  ;;  %v1550_v7 = vrot.slane %v1473_v0, 4  ;;  %v1475_v15 = vpop.f32.mrb[15].mxu0  ;;  %v4877_v11 = vpop.f32.mrb[13].mxu1  ;;  %v1586_v30 = vadd.f32 %v7107_v21, %v1544_v34 }
 0x67f   :  { %v1568_v3 = vrot.slane %v1475_v15, 3  ;;  %v1569_v31 = vrot.slane %v1475_v15, 4 }
 0x680   :  { %v1553_v14 = vadd.f32 %v1549_v5, %v7089_v46  ;;  %v1554_v26 = vadd.f32 %v1550_v7, %v7091_v48  ;;  %v1588_v55 = vrot.slane %v1586_v30, 3  ;;  %v1589_v36 = vrot.slane %v1586_v30, 4 }
 0x681   :  { %v1572_v13 = vadd.f32 %v1568_v3, %v7098_v2  ;;  %v1573_v33 = vadd.f32 %v1569_v31, %v7100_v6 }
 0x682   :  { %v4285_v29 = vmul.f32 -1.442695, %v1553_v14  ;;  %v4286_v23 = vmul.f32 -1.442695, %v1554_v26 }
 0x683   :  { %v4287_v51 = vmul.f32 -1.442695, %v1572_v13  ;;  %v4288_v52 = vmul.f32 -1.442695, %v1573_v33 }
 0x684   :  { %6460 = vpow2.f32 %v4285_v29 }
 0x685   :  { %6462 = vpow2.f32 %v4286_v23 }
 0x68e   :  { %v6461_v20 = vpop.eup %6460 }
 0x68f   :  { %v6463_v10 = vpop.eup %6462  ;;  %v1561_v37 = vadd.f32 1.0, %v6461_v20 }
 0x690   :  { %v1562_v43 = vadd.f32 1.0, %v6463_v10 }
 0x691   :  { %6464 = vrcp.f32 %v1561_v37 }
 0x692   :  { %6466 = vrcp.f32 %v1562_v43 }
 0x693   :  { %6468 = vpow2.f32 %v4287_v51 }
 0x694   :  { %6470 = vpow2.f32 %v4288_v52 }
 0x69b   :  { %v6465_v56 = vpop.eup %6464 }
 0x69c   :  { %v6467_v61 = vpop.eup %6466  ;;  %v1592_v42 = vmul.f32 %v6465_v56, %v1588_v55 }
 0x69d   :  { %v1593_v0 = vmul.f32 %v6467_v61, %v1589_v36  ;;  %v6469_v7 = vpop.eup %6468 }
 0x69e   :  { %v1594_v5 = vadd.f32 %v1592_v42, %v7115_v50  ;;  %v6471_v11 = vpop.eup %6470  ;;  %v1580_v14 = vadd.f32 1.0, %v6469_v7 }
 0x69f   :  { %v1595_v15 = vadd.f32 %v1593_v0, %v7113_v47  ;;  %v1581_v26 = vadd.f32 1.0, %v6471_v11 }
 0x6a0   :  { %6472 = vtanh.f32 %v1594_v5 }
 0x6a1   :  { %6474 = vtanh.f32 %v1595_v15 }
 0x6a2   :  { %6476 = vrcp.f32 %v1580_v14 }
 0x6a3   :  { %6478 = vrcp.f32 %v1581_v26 }
 0x6aa   :  { %v6473_v21 = vpop.eup %6472 }
 0x6ab   :  { %v6475_v34 = vpop.eup %6474  ;;  %v1600_v29 = vrot.slane %v6473_v21, 1 }
 0x6ac   :  { %v1601_v23 = vrot.slane %v6475_v34, 1  ;;  %v6477_v20 = vpop.eup %6476 }
 0x6ad   :  { %v1604_v3 = vsub.f32 %v7333_v59, %v1600_v29  ;;  %v6479_v10 = vpop.eup %6478 }
 0x6ae   :  { %v1605_v31 = vsub.f32 %v7335_v60, %v1601_v23 }
 0x6af   :  { %v1608_v13 = vrot.slane %v1604_v3, 7 }
 0x6b0   :  { %v1609_v33 = vrot.slane %v1605_v31, 7 }
 0x6b1   :  { %v1612_v37 = vmul.f32 %v6477_v20, %v1608_v13 }
 0x6b2   :  { %v1613_v43 = vmul.f32 %v6479_v10, %v1609_v33 }
 0x6b3   :  { %v7386_v51 = vadd.f32 %v6473_v21, %v1612_v37 }
 0x6b4   :  { %v7388_v52 = vadd.f32 %v6475_v34, %v1613_v43 }
 0x6b5   :  { %1616 = vst [vmem:[#allocation2] sm:$0x20] %v7386_v51  ;;  %v1620_v30 = vrot.slane %v7386_v51, 5 }
 0x6b6   :  { %1617 = vst [vmem:[#allocation2 + $0x8] sm:$0x20] %v7388_v52  ;;  %v1621_v59 = vrot.slane %v7388_v52, 4 }
 0x6b8   :  { %v1622_v60 = vsel %vm524_vm2, %v1621_v59, %v1620_v30 }
 0x6b9   :  { %1689 = vmatmul.mubr.f32.vlgmr.msra.gmra.mrb[16].mxu0 %v1622_v60  ;;  %4911 = vmatmul.mubr.f32.vlgmr.msra.gmra.mrb[14].mxu1 %v1622_v60  ;;  %v2060_v60 = vld [vmem:[#allocation7 + $0x8] sm:$0xff] }
 0x6ba   :  { %5736 = vmatpush1.bf16.msra.mxu0 %v6943_v16  ;;  %5767 = vmatpush3.bf16.msra.mxu1 %v6971_v39 }
 0x6bb   :  { %5738 = vmatprep.subr.bf16.mxu0 %v6946_v17  ;;  %5768 = vmatprep.subr.bf16.mxu1 %v6784_v41 }
 0x6bc   :  { %1905 = vmatprep.mubr.f32.mxu0 %v6783_v1  ;;  %4945 = vmatprep.mubr.msk.f32.mxu1 %vm6785_vm1, %v6783_v1 }
 0x6be   :  { %5740 = vmatpush1.bf16.msra.mxu0 %v6950_v22  ;;  %5770 = vmatpush3.bf16.msra.mxu1 %v6984_v49 }
 0x6bf   :  { %5742 = vmatprep.subr.bf16.mxu0 %v6954_v24  ;;  %5771 = vmatprep.subr.bf16.mxu1 %v6784_v41 }
 0x6c2   :  { %5744 = vmatpush1.bf16.msra.mxu0 %v6966_v32  ;;  %5773 = vmatpush3.bf16.msra.mxu1 %v6996_v58 }
 0x6c3   :  { %5746 = vmatprep.subr.bf16.mxu0 %v6969_v35  ;;  %5774 = vmatprep.subr.bf16.mxu1 %v6784_v41 }
 0x6c6   :  { %5748 = vmatpush1.bf16.msra.mxu0 %v6977_v44  ;;  %5776 = vmatpush3.bf16.msra.mxu1 %v7006_v4 }
 0x6c7   :  { %5750 = vmatprep.subr.bf16.mxu0 %v6981_v45  ;;  %5777 = vmatprep.subr.bf16.mxu1 %v6784_v41 }
 0x6ca   :  { %5752 = vmatpush1.bf16.msra.mxu0 %v6990_v53  ;;  %5779 = vmatpush3.bf16.msra.mxu1 %v7016_v12 }
 0x6cb   :  { %5754 = vmatprep.subr.bf16.mxu0 %v6993_v54  ;;  %5780 = vmatprep.subr.bf16.mxu1 %v6784_v41 }
 0x6ce   :  { %5756 = vmatpush1.bf16.msra.mxu0 %v7000_v62  ;;  %5782 = vmatpush3.bf16.msra.mxu1 %v7024_v19  ;;  %v7435_v19 = vld [vmem:[%s8089_s5] ss:$0 sm:$0xff] }
 0x6cf   :  { %5758 = vmatprep.subr.bf16.mxu0 %v7003_v63  ;;  %5783 = vmatprep.subr.bf16.mxu1 %v6784_v41 }
 0x6d2   :  { %5760 = vmatpush1.bf16.msra.mxu0 %v7010_v8  ;;  %5785 = vmatpush3.bf16.msra.mxu1 %v7034_v25 }
 0x6d3   :  { %5762 = vmatprep.subr.bf16.mxu0 %v7013_v9  ;;  %5786 = vmatprep.subr.bf16.mxu1 %v6784_v41 }
 0x6d6   :  { %5764 = vmatpush1.bf16.msra.mxu0 %v7020_v18  ;;  %5788 = vmatpush3.bf16.msra.mxu1 %v7042_v28 }
 0x78c   :  { %v1690_v16 = vpop.f32.mrb[16].mxu0  ;;  %v1761_v17 = vpop.f32.mrb[14].mxu1 }
 0x78d   :  { %v1766_v22 = vrot.slane %v1690_v16, 2  ;;  %v1767_v24 = vrot.slane %v1690_v16, 3  ;;  %v1692_v32 = vpop.f32.mrb[17].mxu0  ;;  %v4912_v35 = vpop.f32.mrb[15].mxu1  ;;  %v1803_v25 = vadd.f32 %v7435_v19, %v1761_v17  ;;  %v2063_v16 = vld [vmem:[#allocation7 + $0x20] sm:$0xff] }
 0x78e   :  { %v1785_v53 = vrot.slane %v1692_v32, 2  ;;  %v1786_v54 = vrot.slane %v1692_v32, 3  ;;  %v5789_v17 = vpack.c.bf16 %v2063_v16, %v2060_v60  ;;  %v2061_v35 = vld [vmem:[#allocation7 + $0x10] sm:$0xff]  ;;  %v2092_v60 = vld [vmem:[#allocation7 + $0x108] sm:$0xff] }
 0x78f   :  { %v1770_v39 = vadd.f32 %v1766_v22, %v7089_v46  ;;  %v1771_v44 = vadd.f32 %v1767_v24, %v7091_v48  ;;  %v1805_v28 = vrot.slane %v1803_v25, 2  ;;  %v1806_v56 = vrot.slane %v1803_v25, 3  ;;  %v2059_v22 = vld [vmem:[#allocation7] sm:$0xff]  ;;  %v2062_v24 = vld [vmem:[#allocation7 + $0x18] sm:$0xff] }
 0x790   :  { %v1789_v58 = vadd.f32 %v1785_v53, %v7098_v2  ;;  %v1790_v63 = vadd.f32 %v1786_v54, %v7100_v6  ;;  %v5791_v32 = vpack.c.bf16 %v2062_v24, %v2059_v22  ;;  %5790 = vmatprep.subr.bf16.mxu0 %v5789_v17  ;;  %v2065_v54 = vld [vmem:[#allocation7 + $0x30] sm:$0xff]  ;;  %v2071_v25 = vld [vmem:[#allocation7 + $0x60] sm:$0xff]  ;;  %v2094_v22 = vld [vmem:[#allocation7 + $0x118] sm:$0xff] }
 0x791   :  { %v4289_v45 = vmul.f32 -1.442695, %v1770_v39  ;;  %v4290_v49 = vmul.f32 -1.442695, %v1771_v44  ;;  %v2064_v39 = vld [vmem:[#allocation7 + $0x28] sm:$0xff]  ;;  %v2091_v17 = vld [vmem:[#allocation7 + $0x100] sm:$0xff] }
 0x792   :  { %v4291_v12 = vmul.f32 -1.442695, %v1789_v58  ;;  %v4292_v18 = vmul.f32 -1.442695, %v1790_v63  ;;  %v5821_v44 = vpack.c.bf16 %v2064_v39, %v2061_v35  ;;  %v2068_v58 = vld [vmem:[#allocation7 + $0x48] sm:$0xff]  ;;  %v2067_v63 = vld [vmem:[#allocation7 + $0x40] sm:$0xff]  ;;  %v5841_v24 = vpack.c.bf16 %v2094_v22, %v2091_v17 }
 0x793   :  { %6480 = vpow2.f32 %v4289_v45  ;;  %v2066_v45 = vld [vmem:[#allocation7 + $0x38] sm:$0xff]  ;;  %v2099_v35 = vld [vmem:[#allocation7 + $0x140] sm:$0xff] }
 0x794   :  { %6482 = vpow2.f32 %v4290_v49  ;;  %v2069_v49 = vld [vmem:[#allocation7 + $0x50] sm:$0xff]  ;;  %5822 = vmatprep.subr.bf16.mxu1 %v5821_v44 }
 0x795   :  { %v5793_v53 = vpack.c.bf16 %v2069_v49, %v2066_v45  ;;  %v2098_v45 = vld [vmem:[#allocation7 + $0x138] sm:$0xff] }
 0x79d   :  { %v6481_v62 = vpop.eup %6480 }
 0x79e   :  { %v6483_v4 = vpop.eup %6482  ;;  %v1778_v8 = vadd.f32 1.0, %v6481_v62  ;;  %v5795_v62 = vpack.c.bf16 %v2068_v58, %v2065_v54  ;;  %v2100_v54 = vld [vmem:[#allocation7 + $0x148] sm:$0xff] }
 0x79f   :  { %v1779_v9 = vadd.f32 1.0, %v6483_v4  ;;  %v2070_v4 = vld [vmem:[#allocation7 + $0x58] sm:$0xff] }
 0x7a0   :  { %6484 = vrcp.f32 %v1778_v8  ;;  %v5825_v8 = vpack.c.bf16 %v2070_v4, %v2067_v63  ;;  %v2105_v63 = vld [vmem:[#allocation7 + $0x170] sm:$0xff] }
 0x7a1   :  { %6486 = vrcp.f32 %v1779_v9  ;;  %v2072_v9 = vld [vmem:[#allocation7 + $0x68] sm:$0xff]  ;;  %v2101_v4 = vld [vmem:[#allocation7 + $0x150] sm:$0xff] }
 0x7a2   :  { %6488 = vpow2.f32 %v4291_v12  ;;  %v2075_v12 = vld [vmem:[#allocation7 + $0x80] sm:$0xff] }
 0x7a3   :  { %6490 = vpow2.f32 %v4292_v18  ;;  %v5797_v18 = vpack.c.bf16 %v2075_v12, %v2072_v9  ;;  %v2104_v9 = vld [vmem:[#allocation7 + $0x168] sm:$0xff]  ;;  %v2103_v12 = vld [vmem:[#allocation7 + $0x160] sm:$0xff] }
 0x7aa   :  { %v6485_v55 = vpop.eup %6484 }
 0x7ab   :  { %v6487_v36 = vpop.eup %6486  ;;  %v1809_v61 = vmul.f32 %v6485_v55, %v1805_v28  ;;  %v2074_v28 = vld [vmem:[#allocation7 + $0x78] sm:$0xff] }
 0x7ac   :  { %v1810_v42 = vmul.f32 %v6487_v36, %v1806_v56  ;;  %v6489_v5 = vpop.eup %6488  ;;  %v5799_v55 = vpack.c.bf16 %v2074_v28, %v2071_v25  ;;  %v2073_v56 = vld [vmem:[#allocation7 + $0x70] sm:$0xff]  ;;  %v2076_v36 = vld [vmem:[#allocation7 + $0x88] sm:$0xff]  ;;  %v5819_v25 = vpack.c.bf16 %v2104_v9, %v2101_v4  ;;  %v2107_v9 = vld [vmem:[#allocation9] sm:$0xff] }
 0x7ad   :  { %v1811_v0 = vadd.f32 %v1809_v61, %v7115_v50  ;;  %v6491_v15 = vpop.eup %6490  ;;  %v1797_v11 = vadd.f32 1.0, %v6489_v5  ;;  %v5829_v61 = vpack.c.bf16 %v2076_v36, %v2073_v56  ;;  %v2111_v56 = vld [vmem:[#allocation9 + $0x20] sm:$0xff] }
 0x7ae   :  { %v1812_v7 = vadd.f32 %v1810_v42, %v7113_v47  ;;  %v1798_v14 = vadd.f32 1.0, %v6491_v15  ;;  %v2078_v42 = vld [vmem:[#allocation7 + $0x98] sm:$0xff]  ;;  %v2080_v15 = vld [vmem:[#allocation7 + $0xa8] sm:$0xff] }
 0x7af   :  { %6492 = vtanh.f32 %v1811_v0  ;;  %v2081_v0 = vld [vmem:[#allocation7 + $0xb0] sm:$0xff] }
 0x7b0   :  { %6494 = vtanh.f32 %v1812_v7  ;;  %v5801_v5 = vpack.c.bf16 %v2081_v0, %v2078_v42  ;;  %v2077_v7 = vld [vmem:[#allocation7 + $0x90] sm:$0xff] }
 0x7b1   :  { %6496 = vrcp.f32 %v1797_v11  ;;  %v5803_v11 = vpack.c.bf16 %v2080_v15, %v2077_v7 }
 0x7b2   :  { %6498 = vrcp.f32 %v1798_v14  ;;  %v2079_v14 = vld [vmem:[#allocation7 + $0xa0] sm:$0xff] }
 0x7b9   :  { %v6493_v26 = vpop.eup %6492 }
 0x7ba   :  { %v6495_v21 = vpop.eup %6494  ;;  %v1817_v34 = vrot.slane %v6493_v26, 1 }
 0x7bb   :  { %v1818_v29 = vrot.slane %v6495_v21, 1  ;;  %v6497_v13 = vpop.eup %6496 }
 0x7bc   :  { %v1821_v23 = vsub.f32 %v7386_v51, %v1817_v34  ;;  %v6499_v33 = vpop.eup %6498  ;;  %v2084_v34 = vld [vmem:[#allocation7 + $0xc8] sm:$0xff] }
 0x7bd   :  { %v1822_v3 = vsub.f32 %v7388_v52, %v1818_v29  ;;  %v2087_v29 = vld [vmem:[#allocation7 + $0xe0] sm:$0xff] }
 0x7be   :  { %v1825_v31 = vrot.slane %v1821_v23, 7  ;;  %v5805_v23 = vpack.c.bf16 %v2087_v29, %v2084_v34 }
 0x7bf   :  { %v1826_v20 = vrot.slane %v1822_v3, 7  ;;  %v2083_v3 = vld [vmem:[#allocation7 + $0xc0] sm:$0xff] }
 0x7c0   :  { %v1829_v10 = vmul.f32 %v6497_v13, %v1825_v31  ;;  %v2086_v31 = vld [vmem:[#allocation7 + $0xd8] sm:$0xff] }
 0x7c1   :  { %v1830_v37 = vmul.f32 %v6499_v33, %v1826_v20  ;;  %v5807_v13 = vpack.c.bf16 %v2086_v31, %v2083_v3  ;;  %v2085_v20 = vld [vmem:[#allocation7 + $0xd0] sm:$0xff]  ;;  %v2088_v33 = vld [vmem:[#allocation7 + $0xe8] sm:$0xff] }
 0x7c2   :  { %v7442_v43 = vadd.f32 %v6493_v26, %v1829_v10  ;;  %v2082_v26 = vld [vmem:[#allocation7 + $0xb8] sm:$0xff]  ;;  %v5837_v10 = vpack.c.bf16 %v2088_v33, %v2085_v20 }
 0x7c3   :  { %v7444_v30 = vadd.f32 %v6495_v21, %v1830_v37  ;;  %v5833_v21 = vpack.c.bf16 %v2082_v26, %v2079_v14  ;;  %v2090_v37 = vld [vmem:[#allocation7 + $0xf8] sm:$0xff] }
 0x7c4   :  { %1833 = vst [vmem:[#allocation2] sm:$0x40] %v7442_v43  ;;  %v1837_v59 = vrot.slane %v7442_v43, 6 }
 0x7c5   :  { %1834 = vst [vmem:[#allocation2 + $0x8] sm:$0x40] %v7444_v30  ;;  %v1838_v51 = vrot.slane %v7444_v30, 5 }
 0x7c7   :  { %v1839_v52 = vsel %vm524_vm2, %v1838_v51, %v1837_v59  ;;  %v2093_v59 = vld [vmem:[#allocation7 + $0x110] sm:$0xff] }
 0x7c8   :  { %1906 = vmatmul.mubr.f32.vlgmr.msra.gmra.mrb[18].mxu0 %v1839_v52  ;;  %4946 = vmatmul.mubr.f32.vlgmr.msra.gmra.mrb[16].mxu1 %v1839_v52  ;;  %v5809_v51 = vpack.c.bf16 %v2093_v59, %v2090_v37  ;;  %v2089_v52 = vld [vmem:[#allocation7 + $0xf0] sm:$0xff] }
 0x7c9   :  { %2245 = vmatprep.mubr.f32.mxu0 %v6783_v1  ;;  %5792 = vmatpush1.bf16.msra.mxu0 %v5791_v32  ;;  %v5811_v16 = vpack.c.bf16 %v2092_v60, %v2089_v52  ;;  %v2096_v32 = vld [vmem:[#allocation7 + $0x128] sm:$0xff] }
 0x7ca   :  { %5824 = vmatpush3.bf16.msra.mxu1 %v5821_v44  ;;  %5794 = vmatprep.subr.bf16.mxu0 %v5793_v53  ;;  %v5813_v39 = vpack.c.bf16 %v2099_v35, %v2096_v32  ;;  %v2095_v44 = vld [vmem:[#allocation7 + $0x120] sm:$0xff]  ;;  %v2097_v53 = vld [vmem:[#allocation7 + $0x130] sm:$0xff] }
 0x7cb   :  { %5826 = vmatprep.subr.bf16.mxu1 %v5825_v8  ;;  %v5815_v49 = vpack.c.bf16 %v2098_v45, %v2095_v44  ;;  %v5845_v58 = vpack.c.bf16 %v2100_v54, %v2097_v53 }
 0x7cd   :  { %5796 = vmatpush1.bf16.msra.mxu0 %v5795_v62  ;;  %v2102_v62 = vld [vmem:[#allocation7 + $0x158] sm:$0xff] }
 0x7ce   :  { %5828 = vmatpush3.bf16.msra.mxu1 %v5825_v8  ;;  %5798 = vmatprep.subr.bf16.mxu0 %v5797_v18  ;;  %v5817_v8 = vpack.c.bf16 %v2105_v63, %v2102_v62  ;;  %v2106_v18 = vld [vmem:[#allocation7 + $0x178] sm:$0xff] }
 0x7cf   :  { %5830 = vmatprep.subr.bf16.mxu1 %v5829_v61  ;;  %v5849_v28 = vpack.c.bf16 %v2106_v18, %v2103_v12  ;;  %v2110_v12 = vld [vmem:[#allocation9 + $0x18] sm:$0xff] }
 0x7d0   :  { %v2114_v18 = vld [vmem:[#allocation9 + $0x38] sm:$0xff] }
 0x7d1   :  { %5800 = vmatpush1.bf16.msra.mxu0 %v5799_v55  ;;  %v2108_v55 = vld [vmem:[#allocation9 + $0x8] sm:$0xff] }
 0x7d2   :  { %5832 = vmatpush3.bf16.msra.mxu1 %v5829_v61  ;;  %5802 = vmatprep.subr.bf16.mxu0 %v5801_v5  ;;  %v7452_v36 = vpack.c.bf16 %v2111_v56, %v2108_v55  ;;  %v2113_v56 = vld [vmem:[#allocation9 + $0x30] sm:$0xff] }
 0x7d3   :  { %5834 = vmatprep.subr.bf16.mxu1 %v5833_v21 }
 0x7d5   :  { %5804 = vmatpush1.bf16.msra.mxu0 %v5803_v11 }
 0x7d6   :  { %5836 = vmatpush3.bf16.msra.mxu1 %v5833_v21  ;;  %5806 = vmatprep.subr.bf16.mxu0 %v5805_v23 }
 0x7d7   :  { %5838 = vmatprep.subr.bf16.mxu1 %v5837_v10 }
 0x7d9   :  { %5808 = vmatpush1.bf16.msra.mxu0 %v5807_v13 }
 0x7da   :  { %5840 = vmatpush3.bf16.msra.mxu1 %v5837_v10  ;;  %5810 = vmatprep.subr.bf16.mxu0 %v5809_v51 }
 0x7db   :  { %5842 = vmatprep.subr.bf16.mxu1 %v5841_v24 }
 0x7dd   :  { %5812 = vmatpush1.bf16.msra.mxu0 %v5811_v16 }
 0x7de   :  { %5844 = vmatpush3.bf16.msra.mxu1 %v5841_v24  ;;  %5814 = vmatprep.subr.bf16.mxu0 %v5813_v39 }
 0x7df   :  { %5846 = vmatprep.subr.bf16.mxu1 %v5845_v58 }
 0x7e1   :  { %5816 = vmatpush1.bf16.msra.mxu0 %v5815_v49 }
 0x7e2   :  { %5848 = vmatpush3.bf16.msra.mxu1 %v5845_v58  ;;  %5818 = vmatprep.subr.bf16.mxu0 %v5817_v8 }
 0x7e3   :  { %5850 = vmatprep.subr.bf16.mxu1 %v5849_v28 }
 0x7e5   :  { %5820 = vmatpush1.bf16.msra.mxu0 %v5819_v25  ;;  %v2117_v25 = vld [vmem:[#allocation9 + $0x50] sm:$0xff] }
 0x7e6   :  { %5854 = vmatprep.subr.bf16.mxu0 %v7452_v36  ;;  %5852 = vmatpush3.bf16.msra.mxu1 %v5849_v28  ;;  %v2112_v28 = vld [vmem:[#allocation9 + $0x28] sm:$0xff]  ;;  %v7467_v55 = vpack.c.bf16 %v2117_v25, %v2114_v18  ;;  %v2145_v25 = vld [vmem:[#allocation9 + $0x130] sm:$0xff] }
 0x7e7   :  { %5885 = vmatprep.subr.bf16.mxu1 %v6784_v41 }
 0x89b   :  { %v1907_v61 = vpop.f32.mrb[18].mxu0  ;;  %v1978_v42 = vpop.f32.mrb[16].mxu1 }
 0x89c   :  { %v1983_v0 = vrot.slane %v1907_v61, 1  ;;  %v1984_v5 = vrot.slane %v1907_v61, 2  ;;  %v1909_v7 = vpop.f32.mrb[19].mxu0  ;;  %v4947_v15 = vpop.f32.mrb[17].mxu1  ;;  %v2116_v61 = vld [vmem:[#allocation9 + $0x48] sm:$0xff] }
 0x89d   :  { %v2002_v34 = vrot.slane %v1909_v7, 1  ;;  %v2003_v29 = vrot.slane %v1909_v7, 2 }
 0x89e   :  { %v1987_v11 = vadd.f32 %v1983_v0, %v7089_v46  ;;  %v1988_v14 = vadd.f32 %v1984_v5, %v7091_v48  ;;  %v2020_v48 = vadd.f32 %v7435_v19, %v1978_v42  ;;  %v2120_v0 = vld [vmem:[#allocation9 + $0x68] sm:$0xff]  ;;  %v2123_v5 = vld [vmem:[#allocation9 + $0x80] sm:$0xff] }
 0x89f   :  { %v2006_v23 = vadd.f32 %v2002_v34, %v7098_v2  ;;  %v2007_v31 = vadd.f32 %v2003_v29, %v7100_v6  ;;  %v2119_v34 = vld [vmem:[#allocation9 + $0x60] sm:$0xff]  ;;  %v2122_v29 = vld [vmem:[#allocation9 + $0x78] sm:$0xff] }
 0x8a0   :  { %v4293_v26 = vmul.f32 -1.442695, %v1987_v11  ;;  %v4294_v21 = vmul.f32 -1.442695, %v1988_v14  ;;  %v2022_v37 = vrot.slane %v2020_v48, 1  ;;  %v2023_v51 = vrot.slane %v2020_v48, 2 }
 0x8a1   :  { %v4295_v10 = vmul.f32 -1.442695, %v2006_v23  ;;  %v4296_v46 = vmul.f32 -1.442695, %v2007_v31  ;;  %v2115_v11 = vld [vmem:[#allocation9 + $0x40] sm:$0xff]  ;;  %v2118_v14 = vld [vmem:[#allocation9 + $0x58] sm:$0xff] }
 0x8a2   :  { %6500 = vpow2.f32 %v4293_v26  ;;  %v7472_v26 = vpack.c.bf16 %v2116_v61, %v2113_v56  ;;  %v2126_v23 = vld [vmem:[#allocation9 + $0x98] sm:$0xff]  ;;  %v7479_v31 = vpack.c.bf16 %v2118_v14, %v2115_v11  ;;  %v2128_v48 = vld [vmem:[#allocation9 + $0xa8] sm:$0xff]  ;;  %v2149_v61 = vld [vmem:[#allocation9 + $0x150] sm:$0xff] }
 0x8a3   :  { %6502 = vpow2.f32 %v4294_v21  ;;  %v7476_v21 = vpack.c.bf16 %v2123_v5, %v2120_v0  ;;  %v2151_v5 = vld [vmem:[#allocation9 + $0x160] sm:$0xff] }
 0x8ac   :  { %v6501_v3 = vpop.eup %6500 }
 0x8ad   :  { %v6503_v13 = vpop.eup %6502  ;;  %v1995_v20 = vadd.f32 1.0, %v6501_v3  ;;  %v2129_v3 = vld [vmem:[#allocation9 + $0xb0] sm:$0xff] }
 0x8ae   :  { %v1996_v33 = vadd.f32 1.0, %v6503_v13  ;;  %v2121_v13 = vld [vmem:[#allocation9 + $0x70] sm:$0xff] }
 0x8af   :  { %6504 = vrcp.f32 %v1995_v20  ;;  %v2124_v20 = vld [vmem:[#allocation9 + $0x88] sm:$0xff] }
 0x8b0   :  { %6506 = vrcp.f32 %v1996_v33  ;;  %v7485_v33 = vpack.c.bf16 %v2122_v29, %v2119_v34  ;;  %v7547_v34 = vld [vmem:[%s8085_s1 + $0x2] sm:$0x3] }
 0x8b1   :  { %6508 = vpow2.f32 %v4295_v10  ;;  %v7489_v10 = vpack.c.bf16 %v2129_v3, %v2126_v23 }
 0x8b2   :  { %6510 = vpow2.f32 %v4296_v46  ;;  %v2125_v46 = vld [vmem:[#allocation9 + $0x90] sm:$0xff] }
 0x8b9   :  { %v6505_v59 = vpop.eup %6504 }
 0x8ba   :  { %v6507_v52 = vpop.eup %6506  ;;  %v2026_v60 = vmul.f32 %v6505_v59, %v2022_v37  ;;  %v2132_v37 = vld [vmem:[#allocation9 + $0xc8] sm:$0xff]  ;;  %v2135_v59 = vld [vmem:[#allocation9 + $0xe0] sm:$0xff] }
 0x8bb   :  { %v2027_v2 = vmul.f32 %v6507_v52, %v2023_v51  ;;  %v6509_v6 = vpop.eup %6508  ;;  %v7492_v51 = vpack.c.bf16 %v2124_v20, %v2121_v13  ;;  %v2127_v52 = vld [vmem:[#allocation9 + $0xa0] sm:$0xff] }
 0x8bc   :  { %v2028_v16 = vadd.f32 %v2026_v60, %v7115_v50  ;;  %v6511_v22 = vpop.eup %6510  ;;  %v2014_v24 = vadd.f32 1.0, %v6509_v6  ;;  %v2130_v60 = vld [vmem:[#allocation9 + $0xb8] sm:$0xff]  ;;  %v2131_v6 = vld [vmem:[#allocation9 + $0xc0] sm:$0xff] }
 0x8bd   :  { %v2029_v17 = vadd.f32 %v2027_v2, %v7113_v47  ;;  %v2015_v32 = vadd.f32 1.0, %v6511_v22  ;;  %v7496_v2 = vpack.c.bf16 %v2128_v48, %v2125_v46  ;;  %v2138_v22 = vld [vmem:[#allocation9 + $0xf8] sm:$0xff]  ;;  %v2155_v48 = vld [vmem:[%s8092_s8] sm:$0x7] }
 0x8be   :  { %6512 = vtanh.f32 %v2028_v16  ;;  %v7499_v16 = vpack.c.bf16 %v2135_v59, %v2132_v37  ;;  %v2169_v37 = vrot.slane %v2155_v48, %v160_v40  ;;  %v2173_v40 = vrot.slane %v2155_v48, %v164_v57  ;;  %v7611_v57 = vld [vmem:[%s8093_s9] ss:$0 sm:$0xff] }
 0x8bf   :  { %6514 = vtanh.f32 %v2029_v17  ;;  %v2134_v17 = vld [vmem:[#allocation9 + $0xd8] sm:$0xff] }
 0x8c0   :  { %6516 = vrcp.f32 %v2014_v24  ;;  %v2141_v24 = vld [vmem:[#allocation9 + $0x110] sm:$0xff] }
 0x8c1   :  { %6518 = vrcp.f32 %v2015_v32  ;;  %v7502_v32 = vpack.c.bf16 %v2130_v60, %v2127_v52 }
 0x8c8   :  { %v6513_v19 = vpop.eup %6512 }
 0x8c9   :  { %v6515_v35 = vpop.eup %6514  ;;  %v2034_v39 = vrot.slane %v6513_v19, 1 }
 0x8ca   :  { %v2035_v44 = vrot.slane %v6515_v35, 1  ;;  %v6517_v50 = vpop.eup %6516 }
 0x8cb   :  { %v2038_v45 = vsub.f32 %v7442_v43, %v2034_v39  ;;  %v6519_v58 = vpop.eup %6518  ;;  %v2109_v43 = vld [vmem:[#allocation9 + $0x10] sm:$0xff]  ;;  %v7506_v39 = vpack.c.bf16 %v2134_v17, %v2131_v6 }
 0x8cc   :  { %v2039_v49 = vsub.f32 %v7444_v30, %v2035_v44  ;;  %v7465_v30 = vpack.c.bf16 %v2110_v12, %v2107_v9  ;;  %v7469_v7 = vpack.c.bf16 %v2112_v28, %v2109_v43  ;;  %v7509_v44 = vpack.c.bf16 %v2141_v24, %v2138_v22  ;;  %v2150_v9 = vld [vmem:[#allocation9 + $0x158] sm:$0xff]  ;;  %v2153_v12 = vld [vmem:[#allocation9 + $0x170] sm:$0xff]  ;;  %v2148_v43 = vld [vmem:[#allocation9 + $0x148] sm:$0xff] }
 0x8cd   :  { %v2042_v53 = vrot.slane %v2038_v45, 7  ;;  %v2137_v45 = vld [vmem:[#allocation9 + $0xf0] sm:$0xff]  ;;  %v7529_v56 = vpack.c.bf16 %v2153_v12, %v2150_v9  ;;  %v7532_v0 = vpack.c.bf16 %v2148_v43, %v2145_v25 }
 0x8ce   :  { %v2043_v54 = vrot.slane %v2039_v49, 7  ;;  %v2140_v49 = vld [vmem:[#allocation9 + $0x108] sm:$0xff] }
 0x8cf   :  { %v2046_v47 = vmul.f32 %v6517_v50, %v2042_v53  ;;  %v2144_v53 = vld [vmem:[#allocation9 + $0x128] sm:$0xff]  ;;  %v2147_v50 = vld [vmem:[#allocation9 + $0x140] sm:$0xff] }
 0x8d0   :  { %v2047_v62 = vmul.f32 %v6519_v58, %v2043_v54  ;;  %v2139_v58 = vld [vmem:[#allocation9 + $0x100] sm:$0xff] }
 0x8d1   :  { %v2048_v63 = vadd.f32 %v6513_v19, %v2046_v47  ;;  %v2133_v19 = vld [vmem:[#allocation9 + $0xd0] sm:$0xff]  ;;  %v2142_v47 = vld [vmem:[#allocation9 + $0x118] sm:$0xff] }
 0x8d2   :  { %v2049_v4 = vadd.f32 %v6515_v35, %v2047_v62  ;;  %v2136_v35 = vld [vmem:[#allocation9 + $0xe8] sm:$0xff]  ;;  %v7516_v62 = vpack.c.bf16 %v2140_v49, %v2137_v45  ;;  %v7522_v18 = vpack.c.bf16 %v2142_v47, %v2139_v58 }
 0x8d3   :  { %2050 = vst [vmem:[#allocation2] sm:$0x80] %v2048_v63  ;;  %2057 = vst [vmem:[#allocation10 - $0x7] sm:$0x80] %v2048_v63  ;;  %v7512_v54 = vpack.c.bf16 %v2136_v35, %v2133_v19  ;;  %v7519_v63 = vpack.c.bf16 %v2147_v50, %v2144_v53 }
 0x8d4   :  { %2051 = vst [vmem:[#allocation2 + $0x8] sm:$0x80] %v2049_v4  ;;  %v2054_v8 = vrot.slane %v2049_v4, 7  ;;  %v2143_v4 = vld [vmem:[#allocation9 + $0x120] sm:$0xff] }
 0x8d6   :  { %2058 = vst [vmem:[#allocation10 + $0x1] sm:$0x1] %v2054_v8  ;;  %v2146_v8 = vld [vmem:[#allocation9 + $0x138] sm:$0xff] }
 0x8d7   :  { %v7526_v28 = vpack.c.bf16 %v2146_v8, %v2143_v4 }
 0x8da   :  { %v2163_v42 = vld [vmem:[#allocation2] sm:$0xff] }
 0x8db   :  { %2246 = vmatmul.mubr.f32.vlgmr.msra.gmra.mrb[20].mxu0 %v2163_v42  ;;  %4980 = vmatprep.mubr.f32.mxu1 %v2163_v42  ;;  %v2164_v15 = vld [vmem:[#allocation2 + $0x8] sm:$0xff]  ;;  %v2152_v42 = vld [vmem:[#allocation9 + $0x168] sm:$0xff] }
 0x8dc   :  { %5856 = vmatpush1.bf16.msra.mxu0 %v7465_v30  ;;  %4981 = vmatmul.mubr.f32.vlgmr.msra.gmra.mrb[18].mxu1 %v2164_v15  ;;  %v7536_v11 = vpack.c.bf16 %v2152_v42, %v2149_v61 }
 0x8dd   :  { %2251 = vmatprep.mubr.f32.mxu0 %v6783_v1  ;;  %5858 = vmatprep.subr.bf16.mxu0 %v7467_v55 }
 0x8de   :  { %5887 = vmatpush3.bf16.msra.mxu1 %v7469_v7  ;;  %5015 = vmatprep.mubr.msk.f32.mxu1 %vm6785_vm1, %v6783_v1 }
 0x8df   :  { %2252 = vmatmul.mubr.f32.gmra.mrb[22].mxu0 %v2164_v15  ;;  %5888 = vmatprep.subr.bf16.mxu1 %v6784_v41  ;;  %v2154_v15 = vld [vmem:[#allocation9 + $0x178] sm:$0xff] }
 0x8e0   :  { %5860 = vmatpush1.bf16.msra.mxu0 %v7472_v26  ;;  %2399 = vmatprep.mubr.f32.mxu0 %v6783_v1  ;;  %v7540_v14 = vpack.c.bf16 %v2154_v15, %v2151_v5  ;;  %v2177_v5 = vrot.slane %v2155_v48, %v168_v27 }
 0x8e1   :  { %5862 = vmatprep.subr.bf16.mxu0 %v7476_v21 }
 0x8e2   :  { %5890 = vmatpush3.bf16.msra.mxu1 %v7479_v31 }
 0x8e3   :  { %5891 = vmatprep.subr.bf16.mxu1 %v6784_v41 }
 0x8e4   :  { %5864 = vmatpush1.bf16.msra.mxu0 %v7485_v33 }
 0x8e5   :  { %5866 = vmatprep.subr.bf16.mxu0 %v7489_v10 }
 0x8e6   :  { %5893 = vmatpush3.bf16.msra.mxu1 %v7492_v51 }
 0x8e7   :  { %5894 = vmatprep.subr.bf16.mxu1 %v6784_v41 }
 0x8e8   :  { %5868 = vmatpush1.bf16.msra.mxu0 %v7496_v2 }
 0x8e9   :  { %5870 = vmatprep.subr.bf16.mxu0 %v7499_v16 }
 0x8ea   :  { %5896 = vmatpush3.bf16.msra.mxu1 %v7502_v32 }
 0x8eb   :  { %5897 = vmatprep.subr.bf16.mxu1 %v6784_v41 }
 0x8ec   :  { %5872 = vmatpush1.bf16.msra.mxu0 %v7506_v39 }
 0x8ed   :  { %5874 = vmatprep.subr.bf16.mxu0 %v7509_v44 }
 0x8ee   :  { %5899 = vmatpush3.bf16.msra.mxu1 %v7512_v54 }
 0x8ef   :  { %5900 = vmatprep.subr.bf16.mxu1 %v6784_v41 }
 0x8f0   :  { %5876 = vmatpush1.bf16.msra.mxu0 %v7516_v62 }
 0x8f1   :  { %5878 = vmatprep.subr.bf16.mxu0 %v7519_v63 }
 0x8f2   :  { %5902 = vmatpush3.bf16.msra.mxu1 %v7522_v18 }
 0x8f3   :  { %5903 = vmatprep.subr.bf16.mxu1 %v6784_v41 }
 0x8f4   :  { %5880 = vmatpush1.bf16.msra.mxu0 %v7526_v28 }
 0x8f5   :  { %5882 = vmatprep.subr.bf16.mxu0 %v7529_v56 }
 0x8f6   :  { %5905 = vmatpush3.bf16.msra.mxu1 %v7532_v0 }
 0x8f7   :  { %5906 = vmatprep.subr.bf16.mxu1 %v6784_v41 }
 0x8f8   :  { %5884 = vmatpush1.bf16.msra.mxu0 %v7536_v11 }
 0x8f9   :  { %5910 = vmatprep.subr.bf16.mxu0 %v7452_v36 }
 0x8fa   :  { %5908 = vmatpush3.bf16.msra.mxu1 %v7540_v14 }
 0x8fb   :  { %2400 = vmatmul.mubr.f32.vlgmr.msra.gmra.mrb[24].mxu0 %v7547_v34  ;;  %5941 = vmatprep.subr.bf16.mxu1 %v6784_v41 }
 0x8fc   :  { %5912 = vmatpush1.bf16.msra.mxu0 %v7465_v30  ;;  %2606 = vmatprep.mubr.f32.mxu0 %v6783_v1 }
 0x8fd   :  { %5016 = vmatmul.mubr.f32.vlgmr.msra.gmra.mrb[20].mxu1 %v7547_v34  ;;  %5914 = vmatprep.subr.bf16.mxu0 %v7467_v55 }
 0x8fe   :  { %5943 = vmatpush3.bf16.msra.mxu1 %v7469_v7  ;;  %5050 = vmatprep.mubr.msk.f32.mxu1 %vm6785_vm1, %v6783_v1 }
 0x8ff   :  { %5944 = vmatprep.subr.bf16.mxu1 %v6784_v41 }
 0x900   :  { %5916 = vmatpush1.bf16.msra.mxu0 %v7472_v26 }
 0x901   :  { %5918 = vmatprep.subr.bf16.mxu0 %v7476_v21 }
 0x902   :  { %5946 = vmatpush3.bf16.msra.mxu1 %v7479_v31 }
 0x903   :  { %5947 = vmatprep.subr.bf16.mxu1 %v6784_v41 }
 0x904   :  { %5920 = vmatpush1.bf16.msra.mxu0 %v7485_v33 }
 0x905   :  { %5922 = vmatprep.subr.bf16.mxu0 %v7489_v10 }
 0x906   :  { %5949 = vmatpush3.bf16.msra.mxu1 %v7492_v51 }
 0x907   :  { %5950 = vmatprep.subr.bf16.mxu1 %v6784_v41 }
 0x908   :  { %5924 = vmatpush1.bf16.msra.mxu0 %v7496_v2 }
 0x909   :  { %5926 = vmatprep.subr.bf16.mxu0 %v7499_v16 }
 0x90a   :  { %5952 = vmatpush3.bf16.msra.mxu1 %v7502_v32 }
 0x90b   :  { %5953 = vmatprep.subr.bf16.mxu1 %v6784_v41 }
 0x90c   :  { %5928 = vmatpush1.bf16.msra.mxu0 %v7506_v39 }
 0x90d   :  { %5930 = vmatprep.subr.bf16.mxu0 %v7509_v44 }
 0x90e   :  { %5955 = vmatpush3.bf16.msra.mxu1 %v7512_v54 }
 0x90f   :  { %5956 = vmatprep.subr.bf16.mxu1 %v6784_v41 }
 0x910   :  { %5932 = vmatpush1.bf16.msra.mxu0 %v7516_v62 }
 0x911   :  { %5934 = vmatprep.subr.bf16.mxu0 %v7519_v63 }
 0x912   :  { %5958 = vmatpush3.bf16.msra.mxu1 %v7522_v18 }
 0x913   :  { %5959 = vmatprep.subr.bf16.mxu1 %v6784_v41 }
 0x914   :  { %5936 = vmatpush1.bf16.msra.mxu0 %v7526_v28 }
 0x915   :  { %5938 = vmatprep.subr.bf16.mxu0 %v7529_v56 }
 0x916   :  { %5961 = vmatpush3.bf16.msra.mxu1 %v7532_v0 }
 0x917   :  { %5962 = vmatprep.subr.bf16.mxu1 %v6784_v41 }
 0x918   :  { %5940 = vmatpush1.bf16.msra.mxu0 %v7536_v11 }
 0x919   :  { %5966 = vmatprep.subr.bf16.mxu0 %v7452_v36 }
 0x91a   :  { %5964 = vmatpush3.bf16.msra.mxu1 %v7540_v14 }
 0x91b   :  { %5997 = vmatprep.subr.bf16.mxu1 %v6784_v41 }
 0x9ae   :  { %v2247_v29 = vpop.f32.mrb[20].mxu0 }
 0x9af   :  { %v2249_v23 = vpop.f32.mrb[21].mxu0  ;;  %v4982_v3 = vpop.f32.mrb[18].mxu1  ;;  %v7594_v59 = vadd.f32 %v2247_v29, %v2169_v37 }
 0x9b0   :  { %v2324_v13 = vpop.f32.mrb[19].mxu1  ;;  %v7602_v53 = vadd.f32 %v2249_v23, %v2173_v40 }
 0x9b2   :  { %v2253_v20 = vpop.f32.mrb[22].mxu0 }
 0x9b3   :  { %v2255_v46 = vpop.f32.mrb[23].mxu0  ;;  %v7596_v60 = vadd.f32 %v2253_v20, %v2169_v37  ;;  %v7618_v37 = vadd.f32 %v2324_v13, %v2177_v5 }
 0x9b4   :  { %v7604_v47 = vadd.f32 %v2255_v46, %v2173_v40  ;;  %v7616_v46 = vadd.f32 %v4982_v3, %v2177_v5 }
 0x9ce   :  { %v2401_v52 = vpop.f32.mrb[24].mxu0 }
 0x9cf   :  { %v2477_v6 = vrot.slane %v2401_v52, 1  ;;  %v2480_v17 = vadd.f32 %v2401_v52, %v7594_v59  ;;  %v2403_v22 = vpop.f32.mrb[25].mxu0 }
 0x9d0   :  { %v2472_v24 = vpop.f32.mrb[20].mxu1  ;;  %v2495_v50 = vrot.slane %v2403_v22, 1  ;;  %v2498_v4 = vadd.f32 %v2403_v22, %v7602_v53 }
 0x9d1   :  { %v2481_v19 = vadd.f32 %v2477_v6, %v7596_v60  ;;  %v4299_v35 = vmul.f32 -1.442695, %v2480_v17  ;;  %v5017_v45 = vpop.f32.mrb[21].mxu1  ;;  %v2512_v42 = vadd.f32 %v7611_v57, %v2472_v24 }
 0x9d2   :  { %v2499_v12 = vadd.f32 %v2495_v50, %v7604_v47  ;;  %v4301_v43 = vmul.f32 -1.442695, %v2498_v4 }
 0x9d3   :  { %6520 = vpow2.f32 %v4299_v35  ;;  %v4300_v49 = vmul.f32 -1.442695, %v2481_v19  ;;  %v2514_v15 = vrot.slane %v2512_v42, 1 }
 0x9d4   :  { %v4302_v61 = vmul.f32 -1.442695, %v2499_v12 }
 0x9d5   :  { %6522 = vpow2.f32 %v4300_v49 }
 0x9dd   :  { %v6521_v58 = vpop.eup %6520 }
 0x9de   :  { %v2488_v8 = vadd.f32 1.0, %v6521_v58 }
 0x9df   :  { %v6523_v9 = vpop.eup %6522 }
 0x9e0   :  { %v2489_v25 = vadd.f32 1.0, %v6523_v9  ;;  %6524 = vrcp.f32 %v2488_v8 }
 0x9e2   :  { %6526 = vrcp.f32 %v2489_v25 }
 0x9e3   :  { %6528 = vpow2.f32 %v4301_v43 }
 0x9e4   :  { %6530 = vpow2.f32 %v4302_v61 }
 0x9ea   :  { %v6525_v29 = vpop.eup %6524 }
 0x9eb   :  { %v2517_v23 = vmul.f32 %v6525_v29, %v2512_v42 }
 0x9ec   :  { %v6527_v20 = vpop.eup %6526 }
 0x9ed   :  { %v2518_v52 = vmul.f32 %v6527_v20, %v2514_v15  ;;  %v6529_v6 = vpop.eup %6528  ;;  %v2519_v17 = vadd.f32 %v2517_v23, %v7618_v37 }
 0x9ee   :  { %v6531_v19 = vpop.eup %6530  ;;  %v2506_v24 = vadd.f32 1.0, %v6529_v6 }
 0x9ef   :  { %v2520_v22 = vadd.f32 %v2518_v52, %v7616_v46  ;;  %v2507_v38 = vadd.f32 1.0, %v6531_v19 }
 0x9f1   :  { %6532 = vtanh.f32 %v2520_v22 }
 0x9f2   :  { %6534 = vtanh.f32 %v2519_v17 }
 0x9f3   :  { %6536 = vrcp.f32 %v2506_v24 }
 0x9f4   :  { %6538 = vrcp.f32 %v2507_v38 }
 0x9fb   :  { %v6533_v27 = vpop.eup %6532 }
 0x9fc   :  { %v2525_v48 = vrot.slane %v6533_v27, 7  ;;  %v6535_v35 = vpop.eup %6534 }
 0x9fd   :  { %v6537_v45 = vpop.eup %6536 }
 0x9fe   :  { %v2526_v3 = vsel %vm524_vm2, %v2525_v48, %v6535_v35  ;;  %v6539_v50 = vpop.eup %6538 }
 0x9ff   :  { %v2528_v13 = vsub.f32 %v7547_v34, %v2526_v3 }
 0xa01   :  { %v2530_v49 = vrot.slane %v2528_v13, 1  ;;  %v2533_v40 = vmul.f32 %v6537_v45, %v2528_v13 }
 0xa03   :  { %v2534_v58 = vmul.f32 %v6539_v50, %v2530_v49  ;;  %v7624_v4 = vadd.f32 %v6535_v35, %v2533_v40 }
 0xa05   :  { %v7626_v8 = vadd.f32 %v6533_v27, %v2534_v58 }
 0xa07   :  { %v2539_v9 = vrot.slane %v7626_v8, 7 }
 0xa09   :  { %v2540_v12 = vsel %vm524_vm2, %v2539_v9, %v7624_v4 }
 0xa0a   :  { %2607 = vmatmul.mubr.f32.vlgmr.msra.gmra.mrb[26].mxu0 %v2540_v12  ;;  %5051 = vmatmul.mubr.f32.vlgmr.msra.gmra.mrb[22].mxu1 %v2540_v12 }
 0xa0b   :  { %5968 = vmatpush1.bf16.msra.mxu0 %v7465_v30  ;;  %5999 = vmatpush3.bf16.msra.mxu1 %v7469_v7 }
 0xa0c   :  { %5970 = vmatprep.subr.bf16.mxu0 %v7467_v55  ;;  %6000 = vmatprep.subr.bf16.mxu1 %v6784_v41 }
 0xa0d   :  { %2817 = vmatprep.mubr.f32.mxu0 %v6783_v1  ;;  %5085 = vmatprep.mubr.msk.f32.mxu1 %vm6785_vm1, %v6783_v1 }
 0xa0f   :  { %5972 = vmatpush1.bf16.msra.mxu0 %v7472_v26  ;;  %6002 = vmatpush3.bf16.msra.mxu1 %v7479_v31 }
 0xa10   :  { %5974 = vmatprep.subr.bf16.mxu0 %v7476_v21  ;;  %6003 = vmatprep.subr.bf16.mxu1 %v6784_v41 }
 0xa13   :  { %5976 = vmatpush1.bf16.msra.mxu0 %v7485_v33  ;;  %6005 = vmatpush3.bf16.msra.mxu1 %v7492_v51 }
 0xa14   :  { %5978 = vmatprep.subr.bf16.mxu0 %v7489_v10  ;;  %6006 = vmatprep.subr.bf16.mxu1 %v6784_v41 }
 0xa17   :  { %5980 = vmatpush1.bf16.msra.mxu0 %v7496_v2  ;;  %6008 = vmatpush3.bf16.msra.mxu1 %v7502_v32 }
 0xa18   :  { %5982 = vmatprep.subr.bf16.mxu0 %v7499_v16  ;;  %6009 = vmatprep.subr.bf16.mxu1 %v6784_v41 }
 0xa1b   :  { %5984 = vmatpush1.bf16.msra.mxu0 %v7506_v39  ;;  %6011 = vmatpush3.bf16.msra.mxu1 %v7512_v54 }
 0xa1c   :  { %5986 = vmatprep.subr.bf16.mxu0 %v7509_v44  ;;  %6012 = vmatprep.subr.bf16.mxu1 %v6784_v41 }
 0xa1f   :  { %5988 = vmatpush1.bf16.msra.mxu0 %v7516_v62  ;;  %6014 = vmatpush3.bf16.msra.mxu1 %v7522_v18 }
 0xa20   :  { %5990 = vmatprep.subr.bf16.mxu0 %v7519_v63  ;;  %6015 = vmatprep.subr.bf16.mxu1 %v6784_v41 }
 0xa23   :  { %5992 = vmatpush1.bf16.msra.mxu0 %v7526_v28  ;;  %6017 = vmatpush3.bf16.msra.mxu1 %v7532_v0 }
 0xa24   :  { %5994 = vmatprep.subr.bf16.mxu0 %v7529_v56  ;;  %6018 = vmatprep.subr.bf16.mxu1 %v6784_v41 }
 0xa27   :  { %5996 = vmatpush1.bf16.msra.mxu0 %v7536_v11  ;;  %6020 = vmatpush3.bf16.msra.mxu1 %v7540_v14 }
 0xa28   :  { %6022 = vmatprep.subr.bf16.mxu0 %v7452_v36  ;;  %6053 = vmatprep.subr.bf16.mxu1 %v6784_v41 }
 0xadd   :  { %v2608_v34 = vpop.f32.mrb[26].mxu0  ;;  %v2679_v25 = vpop.f32.mrb[22].mxu1 }
 0xade   :  { %v2684_v43 = vrot.slane %v2608_v34, 7  ;;  %v2688_v61 = vadd.f32 %v2608_v34, %v7596_v60  ;;  %v2610_v42 = vpop.f32.mrb[27].mxu0  ;;  %v5052_v5 = vpop.f32.mrb[23].mxu1  ;;  %v2719_v48 = vadd.f32 %v7611_v57, %v2679_v25 }
 0xadf   :  { %v2702_v20 = vrot.slane %v2610_v42, 7  ;;  %v2706_v52 = vadd.f32 %v2610_v42, %v7604_v47 }
 0xae0   :  { %v2687_v15 = vadd.f32 %v2684_v43, %v7594_v59  ;;  %v4304_v29 = vmul.f32 -1.442695, %v2688_v61  ;;  %v2721_v3 = vrot.slane %v2719_v48, 7 }
 0xae1   :  { %v2705_v22 = vadd.f32 %v2702_v20, %v7602_v53  ;;  %v4306_v38 = vmul.f32 -1.442695, %v2706_v52 }
 0xae2   :  { %v4303_v23 = vmul.f32 -1.442695, %v2687_v15  ;;  %6540 = vpow2.f32 %v4304_v29 }
 0xae3   :  { %v4305_v27 = vmul.f32 -1.442695, %v2705_v22 }
 0xae4   :  { %6542 = vpow2.f32 %v4303_v23 }
 0xaec   :  { %v6541_v6 = vpop.eup %6540 }
 0xaed   :  { %v2696_v17 = vadd.f32 1.0, %v6541_v6 }
 0xaee   :  { %v6543_v19 = vpop.eup %6542 }
 0xaef   :  { %v2695_v24 = vadd.f32 1.0, %v6543_v19  ;;  %6544 = vrcp.f32 %v2696_v17 }
 0xaf1   :  { %6546 = vrcp.f32 %v2695_v24 }
 0xaf2   :  { %6548 = vpow2.f32 %v4306_v38 }
 0xaf3   :  { %6550 = vpow2.f32 %v4305_v27 }
 0xaf9   :  { %v6545_v35 = vpop.eup %6544 }
 0xafa   :  { %v2725_v13 = vmul.f32 %v6545_v35, %v2719_v48 }
 0xafb   :  { %v6547_v45 = vpop.eup %6546 }
 0xafc   :  { %v2724_v49 = vmul.f32 %v6547_v45, %v2721_v3  ;;  %v2727_v40 = vadd.f32 %v2725_v13, %v7616_v46  ;;  %v6549_v50 = vpop.eup %6548 }
 0xafd   :  { %v6551_v9 = vpop.eup %6550  ;;  %v2714_v12 = vadd.f32 1.0, %v6549_v50 }
 0xafe   :  { %v2726_v58 = vadd.f32 %v2724_v49, %v7618_v37  ;;  %6552 = vtanh.f32 %v2727_v40  ;;  %v2713_v34 = vadd.f32 1.0, %v6551_v9 }
 0xb00   :  { %6554 = vtanh.f32 %v2726_v58 }
 0xb01   :  { %6556 = vrcp.f32 %v2714_v12 }
 0xb02   :  { %6558 = vrcp.f32 %v2713_v34 }
 0xb08   :  { %v6553_v43 = vpop.eup %6552 }
 0xb09   :  { %v2733_v61 = vrot.slane %v6553_v43, 1 }
 0xb0a   :  { %v6555_v25 = vpop.eup %6554 }
 0xb0b   :  { %v2732_v42 = vrot.slane %v6555_v25, 1  ;;  %v2737_v5 = vsub.f32 %v7626_v8, %v2733_v61  ;;  %v6557_v23 = vpop.eup %6556 }
 0xb0c   :  { %v6559_v6 = vpop.eup %6558 }
 0xb0d   :  { %v2736_v15 = vsub.f32 %v7624_v4, %v2732_v42  ;;  %v2741_v29 = vrot.slane %v2737_v5, 7 }
 0xb0f   :  { %v2740_v20 = vrot.slane %v2736_v15, 7  ;;  %v2745_v52 = vmul.f32 %v6557_v23, %v2741_v29 }
 0xb11   :  { %v2744_v17 = vmul.f32 %v6559_v6, %v2740_v20  ;;  %v7675_v22 = vadd.f32 %v6553_v43, %v2745_v52 }
 0xb13   :  { %v7677_v19 = vadd.f32 %v6555_v25, %v2744_v17 }
 0xb15   :  { %v2750_v24 = vrot.slane %v7677_v19, 1 }
 0xb17   :  { %v2751_v38 = vsel %vm524_vm2, %v7675_v22, %v2750_v24 }
 0xb18   :  { %2818 = vmatmul.mubr.f32.vlgmr.msra.gmra.mrb[28].mxu0 %v2751_v38  ;;  %5086 = vmatmul.mubr.f32.vlgmr.msra.gmra.mrb[24].mxu1 %v2751_v38 }
 0xb19   :  { %6024 = vmatpush1.bf16.msra.mxu0 %v7465_v30  ;;  %6055 = vmatpush3.bf16.msra.mxu1 %v7469_v7 }
 0xb1a   :  { %6026 = vmatprep.subr.bf16.mxu0 %v7467_v55  ;;  %6056 = vmatprep.subr.bf16.mxu1 %v6784_v41 }
 0xb1b   :  { %3032 = vmatprep.mubr.f32.mxu0 %v6783_v1  ;;  %5120 = vmatprep.mubr.msk.f32.mxu1 %vm6785_vm1, %v6783_v1 }
 0xb1d   :  { %6028 = vmatpush1.bf16.msra.mxu0 %v7472_v26  ;;  %6058 = vmatpush3.bf16.msra.mxu1 %v7479_v31 }
 0xb1e   :  { %6030 = vmatprep.subr.bf16.mxu0 %v7476_v21  ;;  %6059 = vmatprep.subr.bf16.mxu1 %v6784_v41 }
 0xb21   :  { %6032 = vmatpush1.bf16.msra.mxu0 %v7485_v33  ;;  %6061 = vmatpush3.bf16.msra.mxu1 %v7492_v51 }
 0xb22   :  { %6034 = vmatprep.subr.bf16.mxu0 %v7489_v10  ;;  %6062 = vmatprep.subr.bf16.mxu1 %v6784_v41 }
 0xb25   :  { %6036 = vmatpush1.bf16.msra.mxu0 %v7496_v2  ;;  %6064 = vmatpush3.bf16.msra.mxu1 %v7502_v32 }
 0xb26   :  { %6038 = vmatprep.subr.bf16.mxu0 %v7499_v16  ;;  %6065 = vmatprep.subr.bf16.mxu1 %v6784_v41 }
 0xb29   :  { %6040 = vmatpush1.bf16.msra.mxu0 %v7506_v39  ;;  %6067 = vmatpush3.bf16.msra.mxu1 %v7512_v54 }
 0xb2a   :  { %6042 = vmatprep.subr.bf16.mxu0 %v7509_v44  ;;  %6068 = vmatprep.subr.bf16.mxu1 %v6784_v41 }
 0xb2d   :  { %6044 = vmatpush1.bf16.msra.mxu0 %v7516_v62  ;;  %6070 = vmatpush3.bf16.msra.mxu1 %v7522_v18 }
 0xb2e   :  { %6046 = vmatprep.subr.bf16.mxu0 %v7519_v63  ;;  %6071 = vmatprep.subr.bf16.mxu1 %v6784_v41 }
 0xb31   :  { %6048 = vmatpush1.bf16.msra.mxu0 %v7526_v28  ;;  %6073 = vmatpush3.bf16.msra.mxu1 %v7532_v0 }
 0xb32   :  { %6050 = vmatprep.subr.bf16.mxu0 %v7529_v56  ;;  %6074 = vmatprep.subr.bf16.mxu1 %v6784_v41 }
 0xb35   :  { %6052 = vmatpush1.bf16.msra.mxu0 %v7536_v11  ;;  %6076 = vmatpush3.bf16.msra.mxu1 %v7540_v14 }
 0xb36   :  { %6078 = vmatprep.subr.bf16.mxu0 %v7452_v36  ;;  %6109 = vmatprep.subr.bf16.mxu1 %v6784_v41 }
 0xbeb   :  { %v2819_v4 = vpop.f32.mrb[28].mxu0  ;;  %v2890_v8 = vpop.f32.mrb[24].mxu1 }
 0xbec   :  { %v2895_v27 = vrot.slane %v2819_v4, 6  ;;  %v2896_v48 = vrot.slane %v2819_v4, 7  ;;  %v2821_v35 = vpop.f32.mrb[29].mxu0  ;;  %v5087_v3 = vpop.f32.mrb[25].mxu1  ;;  %v2932_v15 = vadd.f32 %v7611_v57, %v2890_v8 }
 0xbed   :  { %v2914_v50 = vrot.slane %v2821_v35, 6  ;;  %v2915_v58 = vrot.slane %v2821_v35, 7 }
 0xbee   :  { %v2899_v13 = vadd.f32 %v2895_v27, %v7594_v59  ;;  %v2900_v45 = vadd.f32 %v2896_v48, %v7596_v60  ;;  %v2934_v29 = vrot.slane %v2932_v15, 6  ;;  %v2935_v20 = vrot.slane %v2932_v15, 7 }
 0xbef   :  { %v2918_v9 = vadd.f32 %v2914_v50, %v7602_v53  ;;  %v2919_v34 = vadd.f32 %v2915_v58, %v7604_v47 }
 0xbf0   :  { %v4307_v49 = vmul.f32 -1.442695, %v2899_v13  ;;  %v4308_v40 = vmul.f32 -1.442695, %v2900_v45 }
 0xbf1   :  { %v4309_v42 = vmul.f32 -1.442695, %v2918_v9  ;;  %v4310_v5 = vmul.f32 -1.442695, %v2919_v34 }
 0xbf2   :  { %6560 = vpow2.f32 %v4307_v49 }
 0xbf3   :  { %6562 = vpow2.f32 %v4308_v40 }
 0xbfc   :  { %v6561_v12 = vpop.eup %6560 }
 0xbfd   :  { %v6563_v43 = vpop.eup %6562  ;;  %v2907_v61 = vadd.f32 1.0, %v6561_v12 }
 0xbfe   :  { %v2908_v25 = vadd.f32 1.0, %v6563_v43 }
 0xbff   :  { %6564 = vrcp.f32 %v2907_v61 }
 0xc00   :  { %6566 = vrcp.f32 %v2908_v25 }
 0xc01   :  { %6568 = vpow2.f32 %v4309_v42 }
 0xc02   :  { %6570 = vpow2.f32 %v4310_v5 }
 0xc09   :  { %v6565_v23 = vpop.eup %6564 }
 0xc0a   :  { %v6567_v52 = vpop.eup %6566  ;;  %v2938_v6 = vmul.f32 %v6565_v23, %v2934_v29 }
 0xc0b   :  { %v2939_v17 = vmul.f32 %v6567_v52, %v2935_v20  ;;  %v6569_v38 = vpop.eup %6568 }
 0xc0c   :  { %v2940_v24 = vadd.f32 %v2938_v6, %v7618_v37  ;;  %v6571_v27 = vpop.eup %6570  ;;  %v2926_v48 = vadd.f32 1.0, %v6569_v38 }
 0xc0d   :  { %v2941_v4 = vadd.f32 %v2939_v17, %v7616_v46  ;;  %v2927_v35 = vadd.f32 1.0, %v6571_v27 }
 0xc0e   :  { %6572 = vtanh.f32 %v2940_v24 }
 0xc0f   :  { %6574 = vtanh.f32 %v2941_v4 }
 0xc10   :  { %6576 = vrcp.f32 %v2926_v48 }
 0xc11   :  { %6578 = vrcp.f32 %v2927_v35 }
 0xc18   :  { %v6573_v8 = vpop.eup %6572 }
 0xc19   :  { %v6575_v3 = vpop.eup %6574  ;;  %v2946_v13 = vrot.slane %v6573_v8, 1 }
 0xc1a   :  { %v2947_v45 = vrot.slane %v6575_v3, 1  ;;  %v6577_v58 = vpop.eup %6576 }
 0xc1b   :  { %v2950_v49 = vsub.f32 %v7677_v19, %v2946_v13  ;;  %v6579_v12 = vpop.eup %6578 }
 0xc1c   :  { %v2951_v40 = vsub.f32 %v7675_v22, %v2947_v45 }
 0xc1d   :  { %v2954_v50 = vrot.slane %v2950_v49, 7 }
 0xc1e   :  { %v2955_v9 = vrot.slane %v2951_v40, 7 }
 0xc1f   :  { %v2958_v34 = vmul.f32 %v6577_v58, %v2954_v50 }
 0xc20   :  { %v2959_v43 = vmul.f32 %v6579_v12, %v2955_v9 }
 0xc21   :  { %v7726_v61 = vadd.f32 %v6573_v8, %v2958_v34 }
 0xc22   :  { %v7728_v25 = vadd.f32 %v6575_v3, %v2959_v43 }
 0xc23   :  { %v2964_v42 = vrot.slane %v7726_v61, 2 }
 0xc24   :  { %v2965_v5 = vrot.slane %v7728_v25, 1 }
 0xc26   :  { %v2966_v15 = vsel %vm524_vm2, %v2965_v5, %v2964_v42 }
 0xc27   :  { %3033 = vmatmul.mubr.f32.vlgmr.msra.gmra.mrb[30].mxu0 %v2966_v15  ;;  %5121 = vmatmul.mubr.f32.vlgmr.msra.gmra.mrb[26].mxu1 %v2966_v15 }
 0xc28   :  { %6080 = vmatpush1.bf16.msra.mxu0 %v7465_v30  ;;  %6111 = vmatpush3.bf16.msra.mxu1 %v7469_v7 }
 0xc29   :  { %6082 = vmatprep.subr.bf16.mxu0 %v7467_v55  ;;  %6112 = vmatprep.subr.bf16.mxu1 %v6784_v41 }
 0xc2a   :  { %3247 = vmatprep.mubr.f32.mxu0 %v6783_v1  ;;  %5155 = vmatprep.mubr.msk.f32.mxu1 %vm6785_vm1, %v6783_v1 }
 0xc2c   :  { %6084 = vmatpush1.bf16.msra.mxu0 %v7472_v26  ;;  %6114 = vmatpush3.bf16.msra.mxu1 %v7479_v31 }
 0xc2d   :  { %6086 = vmatprep.subr.bf16.mxu0 %v7476_v21  ;;  %6115 = vmatprep.subr.bf16.mxu1 %v6784_v41 }
 0xc30   :  { %6088 = vmatpush1.bf16.msra.mxu0 %v7485_v33  ;;  %6117 = vmatpush3.bf16.msra.mxu1 %v7492_v51 }
 0xc31   :  { %6090 = vmatprep.subr.bf16.mxu0 %v7489_v10  ;;  %6118 = vmatprep.subr.bf16.mxu1 %v6784_v41 }
 0xc34   :  { %6092 = vmatpush1.bf16.msra.mxu0 %v7496_v2  ;;  %6120 = vmatpush3.bf16.msra.mxu1 %v7502_v32 }
 0xc35   :  { %6094 = vmatprep.subr.bf16.mxu0 %v7499_v16  ;;  %6121 = vmatprep.subr.bf16.mxu1 %v6784_v41 }
 0xc38   :  { %6096 = vmatpush1.bf16.msra.mxu0 %v7506_v39  ;;  %6123 = vmatpush3.bf16.msra.mxu1 %v7512_v54 }
 0xc39   :  { %6098 = vmatprep.subr.bf16.mxu0 %v7509_v44  ;;  %6124 = vmatprep.subr.bf16.mxu1 %v6784_v41 }
 0xc3c   :  { %6100 = vmatpush1.bf16.msra.mxu0 %v7516_v62  ;;  %6126 = vmatpush3.bf16.msra.mxu1 %v7522_v18 }
 0xc3d   :  { %6102 = vmatprep.subr.bf16.mxu0 %v7519_v63  ;;  %6127 = vmatprep.subr.bf16.mxu1 %v6784_v41 }
 0xc40   :  { %6104 = vmatpush1.bf16.msra.mxu0 %v7526_v28  ;;  %6129 = vmatpush3.bf16.msra.mxu1 %v7532_v0 }
 0xc41   :  { %6106 = vmatprep.subr.bf16.mxu0 %v7529_v56  ;;  %6130 = vmatprep.subr.bf16.mxu1 %v6784_v41 }
 0xc44   :  { %6108 = vmatpush1.bf16.msra.mxu0 %v7536_v11  ;;  %6132 = vmatpush3.bf16.msra.mxu1 %v7540_v14 }
 0xc45   :  { %6134 = vmatprep.subr.bf16.mxu0 %v7452_v36  ;;  %6165 = vmatprep.subr.bf16.mxu1 %v6784_v41 }
 0xcfa   :  { %v3034_v22 = vpop.f32.mrb[30].mxu0  ;;  %v3105_v19 = vpop.f32.mrb[26].mxu1 }
 0xcfb   :  { %v3110_v29 = vrot.slane %v3034_v22, 5  ;;  %v3111_v23 = vrot.slane %v3034_v22, 6  ;;  %v3036_v20 = vpop.f32.mrb[31].mxu0  ;;  %v5122_v52 = vpop.f32.mrb[27].mxu1  ;;  %v3147_v50 = vadd.f32 %v7611_v57, %v3105_v19 }
 0xcfc   :  { %v3129_v4 = vrot.slane %v3036_v20, 5  ;;  %v3130_v27 = vrot.slane %v3036_v20, 6 }
 0xcfd   :  { %v3114_v6 = vadd.f32 %v3110_v29, %v7594_v59  ;;  %v3115_v17 = vadd.f32 %v3111_v23, %v7596_v60  ;;  %v3149_v58 = vrot.slane %v3147_v50, 5  ;;  %v3150_v12 = vrot.slane %v3147_v50, 6 }
 0xcfe   :  { %v3133_v48 = vadd.f32 %v3129_v4, %v7602_v53  ;;  %v3134_v8 = vadd.f32 %v3130_v27, %v7604_v47 }
 0xcff   :  { %v4311_v24 = vmul.f32 -1.442695, %v3114_v6  ;;  %v4312_v38 = vmul.f32 -1.442695, %v3115_v17 }
 0xd00   :  { %v4313_v49 = vmul.f32 -1.442695, %v3133_v48  ;;  %v4314_v40 = vmul.f32 -1.442695, %v3134_v8 }
 0xd01   :  { %6580 = vpow2.f32 %v4311_v24 }
 0xd02   :  { %6582 = vpow2.f32 %v4312_v38 }
 0xd0b   :  { %v6581_v35 = vpop.eup %6580 }
 0xd0c   :  { %v6583_v3 = vpop.eup %6582  ;;  %v3122_v13 = vadd.f32 1.0, %v6581_v35 }
 0xd0d   :  { %v3123_v45 = vadd.f32 1.0, %v6583_v3 }
 0xd0e   :  { %6584 = vrcp.f32 %v3122_v13 }
 0xd0f   :  { %6586 = vrcp.f32 %v3123_v45 }
 0xd10   :  { %6588 = vpow2.f32 %v4313_v49 }
 0xd11   :  { %6590 = vpow2.f32 %v4314_v40 }
 0xd18   :  { %v6585_v9 = vpop.eup %6584 }
 0xd19   :  { %v6587_v34 = vpop.eup %6586  ;;  %v3153_v43 = vmul.f32 %v6585_v9, %v3149_v58 }
 0xd1a   :  { %v3154_v42 = vmul.f32 %v6587_v34, %v3150_v12  ;;  %v6589_v15 = vpop.eup %6588 }
 0xd1b   :  { %v3155_v5 = vadd.f32 %v3153_v43, %v7618_v37  ;;  %v6591_v29 = vpop.eup %6590  ;;  %v3141_v23 = vadd.f32 1.0, %v6589_v15 }
 0xd1c   :  { %v3156_v22 = vadd.f32 %v3154_v42, %v7616_v46  ;;  %v3142_v20 = vadd.f32 1.0, %v6591_v29 }
 0xd1d   :  { %6592 = vtanh.f32 %v3155_v5 }
 0xd1e   :  { %6594 = vtanh.f32 %v3156_v22 }
 0xd1f   :  { %6596 = vrcp.f32 %v3141_v23 }
 0xd20   :  { %6598 = vrcp.f32 %v3142_v20 }
 0xd27   :  { %v6593_v19 = vpop.eup %6592 }
 0xd28   :  { %v6595_v52 = vpop.eup %6594  ;;  %v3161_v6 = vrot.slane %v6593_v19, 1 }
 0xd29   :  { %v3162_v17 = vrot.slane %v6595_v52, 1  ;;  %v6597_v27 = vpop.eup %6596 }
 0xd2a   :  { %v3165_v24 = vsub.f32 %v7726_v61, %v3161_v6  ;;  %v6599_v35 = vpop.eup %6598 }
 0xd2b   :  { %v3166_v38 = vsub.f32 %v7728_v25, %v3162_v17 }
 0xd2c   :  { %v3169_v4 = vrot.slane %v3165_v24, 7 }
 0xd2d   :  { %v3170_v48 = vrot.slane %v3166_v38, 7 }
 0xd2e   :  { %v3173_v8 = vmul.f32 %v6597_v27, %v3169_v4 }
 0xd2f   :  { %v3174_v3 = vmul.f32 %v6599_v35, %v3170_v48 }
 0xd30   :  { %v7777_v13 = vadd.f32 %v6593_v19, %v3173_v8 }
 0xd31   :  { %v7779_v45 = vadd.f32 %v6595_v52, %v3174_v3 }
 0xd32   :  { %v3179_v49 = vrot.slane %v7777_v13, 3 }
 0xd33   :  { %v3180_v40 = vrot.slane %v7779_v45, 2 }
 0xd35   :  { %v3181_v50 = vsel %vm524_vm2, %v3180_v40, %v3179_v49 }
 0xd36   :  { %3248 = vmatmul.mubr.f32.vlgmr.msra.gmra.mrb[32].mxu0 %v3181_v50  ;;  %5156 = vmatmul.mubr.f32.vlgmr.msra.gmra.mrb[28].mxu1 %v3181_v50 }
 0xd37   :  { %6136 = vmatpush1.bf16.msra.mxu0 %v7465_v30  ;;  %6167 = vmatpush3.bf16.msra.mxu1 %v7469_v7 }
 0xd38   :  { %6138 = vmatprep.subr.bf16.mxu0 %v7467_v55  ;;  %6168 = vmatprep.subr.bf16.mxu1 %v6784_v41 }
 0xd39   :  { %3462 = vmatprep.mubr.f32.mxu0 %v6783_v1  ;;  %5190 = vmatprep.mubr.msk.f32.mxu1 %vm6785_vm1, %v6783_v1 }
 0xd3b   :  { %6140 = vmatpush1.bf16.msra.mxu0 %v7472_v26  ;;  %6170 = vmatpush3.bf16.msra.mxu1 %v7479_v31 }
 0xd3c   :  { %6142 = vmatprep.subr.bf16.mxu0 %v7476_v21  ;;  %6171 = vmatprep.subr.bf16.mxu1 %v6784_v41 }
 0xd3f   :  { %6144 = vmatpush1.bf16.msra.mxu0 %v7485_v33  ;;  %6173 = vmatpush3.bf16.msra.mxu1 %v7492_v51 }
 0xd40   :  { %6146 = vmatprep.subr.bf16.mxu0 %v7489_v10  ;;  %6174 = vmatprep.subr.bf16.mxu1 %v6784_v41 }
 0xd43   :  { %6148 = vmatpush1.bf16.msra.mxu0 %v7496_v2  ;;  %6176 = vmatpush3.bf16.msra.mxu1 %v7502_v32 }
 0xd44   :  { %6150 = vmatprep.subr.bf16.mxu0 %v7499_v16  ;;  %6177 = vmatprep.subr.bf16.mxu1 %v6784_v41 }
 0xd47   :  { %6152 = vmatpush1.bf16.msra.mxu0 %v7506_v39  ;;  %6179 = vmatpush3.bf16.msra.mxu1 %v7512_v54 }
 0xd48   :  { %6154 = vmatprep.subr.bf16.mxu0 %v7509_v44  ;;  %6180 = vmatprep.subr.bf16.mxu1 %v6784_v41 }
 0xd4b   :  { %6156 = vmatpush1.bf16.msra.mxu0 %v7516_v62  ;;  %6182 = vmatpush3.bf16.msra.mxu1 %v7522_v18 }
 0xd4c   :  { %6158 = vmatprep.subr.bf16.mxu0 %v7519_v63  ;;  %6183 = vmatprep.subr.bf16.mxu1 %v6784_v41 }
 0xd4f   :  { %6160 = vmatpush1.bf16.msra.mxu0 %v7526_v28  ;;  %6185 = vmatpush3.bf16.msra.mxu1 %v7532_v0 }
 0xd50   :  { %6162 = vmatprep.subr.bf16.mxu0 %v7529_v56  ;;  %6186 = vmatprep.subr.bf16.mxu1 %v6784_v41 }
 0xd53   :  { %6164 = vmatpush1.bf16.msra.mxu0 %v7536_v11  ;;  %6188 = vmatpush3.bf16.msra.mxu1 %v7540_v14 }
 0xd54   :  { %6190 = vmatprep.subr.bf16.mxu0 %v7452_v36  ;;  %6221 = vmatprep.subr.bf16.mxu1 %v6784_v41 }
 0xe09   :  { %v3249_v61 = vpop.f32.mrb[32].mxu0  ;;  %v3320_v25 = vpop.f32.mrb[28].mxu1 }
 0xe0a   :  { %v3325_v58 = vrot.slane %v3249_v61, 4  ;;  %v3326_v9 = vrot.slane %v3249_v61, 5  ;;  %v3251_v12 = vpop.f32.mrb[33].mxu0  ;;  %v5157_v34 = vpop.f32.mrb[29].mxu1  ;;  %v3362_v4 = vadd.f32 %v7611_v57, %v3320_v25 }
 0xe0b   :  { %v3344_v22 = vrot.slane %v3251_v12, 4  ;;  %v3345_v29 = vrot.slane %v3251_v12, 5 }
 0xe0c   :  { %v3329_v43 = vadd.f32 %v3325_v58, %v7594_v59  ;;  %v3330_v42 = vadd.f32 %v3326_v9, %v7596_v60  ;;  %v3364_v27 = vrot.slane %v3362_v4, 4  ;;  %v3365_v35 = vrot.slane %v3362_v4, 5 }
 0xe0d   :  { %v3348_v23 = vadd.f32 %v3344_v22, %v7602_v53  ;;  %v3349_v19 = vadd.f32 %v3345_v29, %v7604_v47 }
 0xe0e   :  { %v4315_v5 = vmul.f32 -1.442695, %v3329_v43  ;;  %v4316_v15 = vmul.f32 -1.442695, %v3330_v42 }
 0xe0f   :  { %v4317_v24 = vmul.f32 -1.442695, %v3348_v23  ;;  %v4318_v38 = vmul.f32 -1.442695, %v3349_v19 }
 0xe10   :  { %6600 = vpow2.f32 %v4315_v5 }
 0xe11   :  { %6602 = vpow2.f32 %v4316_v15 }
 0xe1a   :  { %v6601_v20 = vpop.eup %6600 }
 0xe1b   :  { %v6603_v52 = vpop.eup %6602  ;;  %v3337_v6 = vadd.f32 1.0, %v6601_v20 }
 0xe1c   :  { %v3338_v17 = vadd.f32 1.0, %v6603_v52 }
 0xe1d   :  { %6604 = vrcp.f32 %v3337_v6 }
 0xe1e   :  { %6606 = vrcp.f32 %v3338_v17 }
 0xe1f   :  { %6608 = vpow2.f32 %v4317_v24 }
 0xe20   :  { %6610 = vpow2.f32 %v4318_v38 }
 0xe27   :  { %v6605_v48 = vpop.eup %6604 }
 0xe28   :  { %v6607_v8 = vpop.eup %6606  ;;  %v3368_v3 = vmul.f32 %v6605_v48, %v3364_v27 }
 0xe29   :  { %v3369_v49 = vmul.f32 %v6607_v8, %v3365_v35  ;;  %v6609_v50 = vpop.eup %6608 }
 0xe2a   :  { %v3370_v40 = vadd.f32 %v3368_v3, %v7618_v37  ;;  %v6611_v58 = vpop.eup %6610  ;;  %v3356_v9 = vadd.f32 1.0, %v6609_v50 }
 0xe2b   :  { %v3371_v61 = vadd.f32 %v3369_v49, %v7616_v46  ;;  %v3357_v12 = vadd.f32 1.0, %v6611_v58 }
 0xe2c   :  { %6612 = vtanh.f32 %v3370_v40 }
 0xe2d   :  { %6614 = vtanh.f32 %v3371_v61 }
 0xe2e   :  { %6616 = vrcp.f32 %v3356_v9 }
 0xe2f   :  { %6618 = vrcp.f32 %v3357_v12 }
 0xe36   :  { %v6613_v25 = vpop.eup %6612 }
 0xe37   :  { %v6615_v34 = vpop.eup %6614  ;;  %v3376_v43 = vrot.slane %v6613_v25, 1 }
 0xe38   :  { %v3377_v42 = vrot.slane %v6615_v34, 1  ;;  %v6617_v29 = vpop.eup %6616 }
 0xe39   :  { %v3380_v5 = vsub.f32 %v7777_v13, %v3376_v43  ;;  %v6619_v20 = vpop.eup %6618 }
 0xe3a   :  { %v3381_v15 = vsub.f32 %v7779_v45, %v3377_v42 }
 0xe3b   :  { %v3384_v22 = vrot.slane %v3380_v5, 7 }
 0xe3c   :  { %v3385_v23 = vrot.slane %v3381_v15, 7 }
 0xe3d   :  { %v3388_v19 = vmul.f32 %v6617_v29, %v3384_v22 }
 0xe3e   :  { %v3389_v52 = vmul.f32 %v6619_v20, %v3385_v23 }
 0xe3f   :  { %v7828_v6 = vadd.f32 %v6613_v25, %v3388_v19 }
 0xe40   :  { %v7830_v17 = vadd.f32 %v6615_v34, %v3389_v52 }
 0xe41   :  { %v3394_v24 = vrot.slane %v7828_v6, 4 }
 0xe42   :  { %v3395_v38 = vrot.slane %v7830_v17, 3 }
 0xe44   :  { %v3396_v4 = vsel %vm524_vm2, %v3395_v38, %v3394_v24 }
 0xe45   :  { %3463 = vmatmul.mubr.f32.vlgmr.msra.gmra.mrb[34].mxu0 %v3396_v4  ;;  %5191 = vmatmul.mubr.f32.vlgmr.msra.gmra.mrb[30].mxu1 %v3396_v4 }
 0xe46   :  { %6192 = vmatpush1.bf16.msra.mxu0 %v7465_v30  ;;  %6223 = vmatpush3.bf16.msra.mxu1 %v7469_v7 }
 0xe47   :  { %6194 = vmatprep.subr.bf16.mxu0 %v7467_v55  ;;  %6224 = vmatprep.subr.bf16.mxu1 %v6784_v41 }
 0xe48   :  { %3677 = vmatprep.mubr.f32.mxu0 %v6783_v1  ;;  %5225 = vmatprep.mubr.msk.f32.mxu1 %vm6785_vm1, %v6783_v1 }
 0xe4a   :  { %6196 = vmatpush1.bf16.msra.mxu0 %v7472_v26  ;;  %6226 = vmatpush3.bf16.msra.mxu1 %v7479_v31 }
 0xe4b   :  { %6198 = vmatprep.subr.bf16.mxu0 %v7476_v21  ;;  %6227 = vmatprep.subr.bf16.mxu1 %v6784_v41 }
 0xe4e   :  { %6200 = vmatpush1.bf16.msra.mxu0 %v7485_v33  ;;  %6229 = vmatpush3.bf16.msra.mxu1 %v7492_v51 }
 0xe4f   :  { %6202 = vmatprep.subr.bf16.mxu0 %v7489_v10  ;;  %6230 = vmatprep.subr.bf16.mxu1 %v6784_v41 }
 0xe52   :  { %6204 = vmatpush1.bf16.msra.mxu0 %v7496_v2  ;;  %6232 = vmatpush3.bf16.msra.mxu1 %v7502_v32 }
 0xe53   :  { %6206 = vmatprep.subr.bf16.mxu0 %v7499_v16  ;;  %6233 = vmatprep.subr.bf16.mxu1 %v6784_v41 }
 0xe56   :  { %6208 = vmatpush1.bf16.msra.mxu0 %v7506_v39  ;;  %6235 = vmatpush3.bf16.msra.mxu1 %v7512_v54 }
 0xe57   :  { %6210 = vmatprep.subr.bf16.mxu0 %v7509_v44  ;;  %6236 = vmatprep.subr.bf16.mxu1 %v6784_v41 }
 0xe5a   :  { %6212 = vmatpush1.bf16.msra.mxu0 %v7516_v62  ;;  %6238 = vmatpush3.bf16.msra.mxu1 %v7522_v18 }
 0xe5b   :  { %6214 = vmatprep.subr.bf16.mxu0 %v7519_v63  ;;  %6239 = vmatprep.subr.bf16.mxu1 %v6784_v41 }
 0xe5e   :  { %6216 = vmatpush1.bf16.msra.mxu0 %v7526_v28  ;;  %6241 = vmatpush3.bf16.msra.mxu1 %v7532_v0 }
 0xe5f   :  { %6218 = vmatprep.subr.bf16.mxu0 %v7529_v56  ;;  %6242 = vmatprep.subr.bf16.mxu1 %v6784_v41 }
 0xe62   :  { %6220 = vmatpush1.bf16.msra.mxu0 %v7536_v11  ;;  %6244 = vmatpush3.bf16.msra.mxu1 %v7540_v14 }
 0xe63   :  { %6246 = vmatprep.subr.bf16.mxu0 %v7452_v36  ;;  %6277 = vmatprep.subr.bf16.mxu1 %v6784_v41 }
 0xf18   :  { %v3464_v13 = vpop.f32.mrb[34].mxu0  ;;  %v3535_v45 = vpop.f32.mrb[30].mxu1 }
 0xf19   :  { %v3540_v27 = vrot.slane %v3464_v13, 3  ;;  %v3541_v48 = vrot.slane %v3464_v13, 4  ;;  %v3466_v35 = vpop.f32.mrb[35].mxu0  ;;  %v5192_v8 = vpop.f32.mrb[31].mxu1  ;;  %v3577_v15 = vadd.f32 %v7611_v57, %v3535_v45 }
 0xf1a   :  { %v3559_v61 = vrot.slane %v3466_v35, 3  ;;  %v3560_v58 = vrot.slane %v3466_v35, 4 }
 0xf1b   :  { %v3544_v3 = vadd.f32 %v3540_v27, %v7594_v59  ;;  %v3545_v49 = vadd.f32 %v3541_v48, %v7596_v60  ;;  %v3579_v22 = vrot.slane %v3577_v15, 3  ;;  %v3580_v23 = vrot.slane %v3577_v15, 4 }
 0xf1c   :  { %v3563_v36 = vadd.f32 %v3559_v61, %v7602_v53  ;;  %v3564_v12 = vadd.f32 %v3560_v58, %v7604_v47 }
 0xf1d   :  { %v4319_v40 = vmul.f32 -1.442695, %v3544_v3  ;;  %v4320_v50 = vmul.f32 -1.442695, %v3545_v49 }
 0xf1e   :  { %v4321_v42 = vmul.f32 -1.442695, %v3563_v36  ;;  %v4322_v5 = vmul.f32 -1.442695, %v3564_v12 }
 0xf1f   :  { %6620 = vpow2.f32 %v4319_v40 }
 0xf20   :  { %6622 = vpow2.f32 %v4320_v50 }
 0xf29   :  { %v6621_v9 = vpop.eup %6620 }
 0xf2a   :  { %v6623_v25 = vpop.eup %6622  ;;  %v3552_v34 = vadd.f32 1.0, %v6621_v9 }
 0xf2b   :  { %v3553_v43 = vadd.f32 1.0, %v6623_v25 }
 0xf2c   :  { %6624 = vrcp.f32 %v3552_v34 }
 0xf2d   :  { %6626 = vrcp.f32 %v3553_v43 }
 0xf2e   :  { %6628 = vpow2.f32 %v4321_v42 }
 0xf2f   :  { %6630 = vpow2.f32 %v4322_v5 }
 0xf36   :  { %v6625_v29 = vpop.eup %6624 }
 0xf37   :  { %v6627_v20 = vpop.eup %6626  ;;  %v3583_v19 = vmul.f32 %v6625_v29, %v3579_v22 }
 0xf38   :  { %v3584_v52 = vmul.f32 %v6627_v20, %v3580_v23  ;;  %v6629_v38 = vpop.eup %6628 }
 0xf39   :  { %v3585_v24 = vadd.f32 %v3583_v19, %v7618_v37  ;;  %v6631_v13 = vpop.eup %6630  ;;  %v3571_v27 = vadd.f32 1.0, %v6629_v38 }
 0xf3a   :  { %v3586_v4 = vadd.f32 %v3584_v52, %v7616_v46  ;;  %v3572_v48 = vadd.f32 1.0, %v6631_v13 }
 0xf3b   :  { %6632 = vtanh.f32 %v3585_v24 }
 0xf3c   :  { %6634 = vtanh.f32 %v3586_v4 }
 0xf3d   :  { %6636 = vrcp.f32 %v3571_v27 }
 0xf3e   :  { %6638 = vrcp.f32 %v3572_v48 }
 0xf45   :  { %v6633_v57 = vpop.eup %6632 }
 0xf46   :  { %v6635_v45 = vpop.eup %6634  ;;  %v3591_v35 = vrot.slane %v6633_v57, 1 }
 0xf47   :  { %v3592_v8 = vrot.slane %v6635_v45, 1  ;;  %v6637_v50 = vpop.eup %6636 }
 0xf48   :  { %v3595_v3 = vsub.f32 %v7828_v6, %v3591_v35  ;;  %v6639_v58 = vpop.eup %6638 }
 0xf49   :  { %v3596_v49 = vsub.f32 %v7830_v17, %v3592_v8 }
 0xf4a   :  { %v3599_v40 = vrot.slane %v3595_v3, 7 }
 0xf4b   :  { %v3600_v61 = vrot.slane %v3596_v49, 7 }
 0xf4c   :  { %v3603_v36 = vmul.f32 %v6637_v50, %v3599_v40 }
 0xf4d   :  { %v3604_v9 = vmul.f32 %v6639_v58, %v3600_v61 }
 0xf4e   :  { %v7879_v12 = vadd.f32 %v6633_v57, %v3603_v36 }
 0xf4f   :  { %v7881_v25 = vadd.f32 %v6635_v45, %v3604_v9 }
 0xf50   :  { %v3609_v34 = vrot.slane %v7879_v12, 5 }
 0xf51   :  { %v3610_v43 = vrot.slane %v7881_v25, 4 }
 0xf53   :  { %v3611_v42 = vsel %vm524_vm2, %v3610_v43, %v3609_v34  ;;  %v4047_v43 = vld [vmem:[%s8094_s10 + $0x10] sm:$0xff] }
 0xf54   :  { %3678 = vmatmul.mubr.f32.vlgmr.msra.gmra.mrb[36].mxu0 %v3611_v42  ;;  %5226 = vmatmul.mubr.f32.vlgmr.msra.gmra.mrb[32].mxu1 %v3611_v42 }
 0xf55   :  { %6248 = vmatpush1.bf16.msra.mxu0 %v7465_v30  ;;  %6279 = vmatpush3.bf16.msra.mxu1 %v7469_v7 }
 0xf56   :  { %6250 = vmatprep.subr.bf16.mxu0 %v7467_v55  ;;  %6280 = vmatprep.subr.bf16.mxu1 %v6784_v41 }
 0xf57   :  { %3892 = vmatprep.mubr.f32.mxu0 %v6783_v1  ;;  %5260 = vmatprep.mubr.msk.f32.mxu1 %vm6785_vm1, %v6783_v1 }
 0xf59   :  { %6252 = vmatpush1.bf16.msra.mxu0 %v7472_v26  ;;  %6282 = vmatpush3.bf16.msra.mxu1 %v7479_v31 }
 0xf5a   :  { %6254 = vmatprep.subr.bf16.mxu0 %v7476_v21  ;;  %6283 = vmatprep.subr.bf16.mxu1 %v6784_v41 }
 0xf5d   :  { %6256 = vmatpush1.bf16.msra.mxu0 %v7485_v33  ;;  %6285 = vmatpush3.bf16.msra.mxu1 %v7492_v51 }
 0xf5e   :  { %6258 = vmatprep.subr.bf16.mxu0 %v7489_v10  ;;  %6286 = vmatprep.subr.bf16.mxu1 %v6784_v41 }
 0xf61   :  { %6260 = vmatpush1.bf16.msra.mxu0 %v7496_v2  ;;  %6288 = vmatpush3.bf16.msra.mxu1 %v7502_v32 }
 0xf62   :  { %6262 = vmatprep.subr.bf16.mxu0 %v7499_v16  ;;  %6289 = vmatprep.subr.bf16.mxu1 %v6784_v41 }
 0xf65   :  { %6264 = vmatpush1.bf16.msra.mxu0 %v7506_v39  ;;  %6291 = vmatpush3.bf16.msra.mxu1 %v7512_v54 }
 0xf66   :  { %6266 = vmatprep.subr.bf16.mxu0 %v7509_v44  ;;  %6292 = vmatprep.subr.bf16.mxu1 %v6784_v41 }
 0xf69   :  { %6268 = vmatpush1.bf16.msra.mxu0 %v7516_v62  ;;  %6294 = vmatpush3.bf16.msra.mxu1 %v7522_v18 }
 0xf6a   :  { %6270 = vmatprep.subr.bf16.mxu0 %v7519_v63  ;;  %6295 = vmatprep.subr.bf16.mxu1 %v6784_v41 }
 0xf6d   :  { %6272 = vmatpush1.bf16.msra.mxu0 %v7526_v28  ;;  %6297 = vmatpush3.bf16.msra.mxu1 %v7532_v0  ;;  %v7928_v0 = vld [vmem:[%s8093_s9] ss:$0 sm:$0xff] }
 0xf6e   :  { %6274 = vmatprep.subr.bf16.mxu0 %v7529_v56  ;;  %6298 = vmatprep.subr.bf16.mxu1 %v6784_v41 }
 0xf71   :  { %6276 = vmatpush1.bf16.msra.mxu0 %v7536_v11  ;;  %6300 = vmatpush3.bf16.msra.mxu1 %v7540_v14 }
 0xf72   :  { %6301 = vmatprep.subr.bf16.mxu0 %v6784_v41  ;;  %6325 = vmatprep.subr.bf16.mxu1 %v6784_v41 }
0x1027   :  { %v3679_v30 = vpop.f32.mrb[36].mxu0  ;;  %v3750_v55 = vpop.f32.mrb[32].mxu1 }
0x1028   :  { %v3755_v7 = vrot.slane %v3679_v30, 2  ;;  %v3756_v26 = vrot.slane %v3679_v30, 3  ;;  %v3681_v21 = vpop.f32.mrb[37].mxu0  ;;  %v5227_v31 = vpop.f32.mrb[33].mxu1  ;;  %v3792_v11 = vadd.f32 %v7928_v0, %v3750_v55  ;;  %v4049_v30 = vld [vmem:[%s8094_s10 + $0x20] sm:$0xff]  ;;  %v4050_v55 = vld [vmem:[%s8094_s10 + $0x28] sm:$0xff] }
0x1029   :  { %v3774_v16 = vrot.slane %v3681_v21, 2  ;;  %v3775_v32 = vrot.slane %v3681_v21, 3  ;;  %v4052_v21 = vld [vmem:[%s8094_s10 + $0x38] sm:$0xff] }
0x102a   :  { %v3759_v33 = vadd.f32 %v3755_v7, %v7594_v59  ;;  %v3760_v10 = vadd.f32 %v3756_v26, %v7596_v60  ;;  %v3794_v14 = vrot.slane %v3792_v11, 2  ;;  %v3795_v17 = vrot.slane %v3792_v11, 3  ;;  %v4051_v26 = vld [vmem:[%s8094_s10 + $0x30] sm:$0xff] }
0x102b   :  { %v3778_v39 = vadd.f32 %v3774_v16, %v7602_v53  ;;  %v3779_v54 = vadd.f32 %v3775_v32, %v7604_v47  ;;  %v6308_v7 = vpack.c.bf16 %v4050_v55, %v4049_v30  ;;  %v6311_v31 = vpack.c.bf16 %v4052_v21, %v4051_v26  ;;  %v4056_v16 = vld [vmem:[%s8094_s10 + $0x58] sm:$0xff]  ;;  %v4145_v11 = vld [vmem:[%s8096_s12 + $0x10] sm:$0xff] }
0x102c   :  { %v4323_v51 = vmul.f32 -1.442695, %v3759_v33  ;;  %v4324_v2 = vmul.f32 -1.442695, %v3760_v10  ;;  %v4053_v33 = vld [vmem:[%s8094_s10 + $0x40] sm:$0xff]  ;;  %v4054_v10 = vld [vmem:[%s8094_s10 + $0x48] sm:$0xff] }
0x102d   :  { %v4325_v28 = vmul.f32 -1.442695, %v3778_v39  ;;  %v4326_v56 = vmul.f32 -1.442695, %v3779_v54  ;;  %v4057_v39 = vld [vmem:[%s8094_s10 + $0x60] sm:$0xff] }
0x102e   :  { %6640 = vpow2.f32 %v4323_v51  ;;  %v6314_v51 = vpack.c.bf16 %v4054_v10, %v4053_v33 }
0x102f   :  { %6642 = vpow2.f32 %v4324_v2  ;;  %v4055_v2 = vld [vmem:[%s8094_s10 + $0x50] sm:$0xff] }
0x1030   :  { %v6317_v32 = vpack.c.bf16 %v4056_v16, %v4055_v2 }
0x1038   :  { %v6641_v44 = vpop.eup %6640 }
0x1039   :  { %v6643_v62 = vpop.eup %6642  ;;  %v3767_v63 = vadd.f32 1.0, %v6641_v44  ;;  %v4058_v44 = vld [vmem:[%s8094_s10 + $0x68] sm:$0xff] }
0x103a   :  { %v3768_v18 = vadd.f32 1.0, %v6643_v62  ;;  %v6320_v54 = vpack.c.bf16 %v4058_v44, %v4057_v39  ;;  %v4059_v62 = vld [vmem:[%s8094_s10 + $0x70] sm:$0xff] }
0x103b   :  { %6644 = vrcp.f32 %v3767_v63  ;;  %v4060_v63 = vld [vmem:[%s8094_s10 + $0x78] sm:$0xff] }
0x103c   :  { %6646 = vrcp.f32 %v3768_v18  ;;  %v6323_v18 = vpack.c.bf16 %v4060_v63, %v4059_v62 }
0x103d   :  { %6648 = vpow2.f32 %v4325_v28  ;;  %v4143_v28 = vld [vmem:[%s8096_s12] sm:$0xff] }
0x103e   :  { %6650 = vpow2.f32 %v4326_v56  ;;  %v4144_v56 = vld [vmem:[%s8096_s12 + $0x8] sm:$0xff] }
0x1045   :  { %v6645_v6 = vpop.eup %6644 }
0x1046   :  { %v6647_v5 = vpop.eup %6646  ;;  %v3798_v15 = vmul.f32 %v6645_v6, %v3794_v14  ;;  %v6326_v14 = vpack.c.bf16 %v4144_v56, %v4143_v28  ;;  %v4146_v6 = vld [vmem:[%s8096_s12 + $0x18] sm:$0xff] }
0x1047   :  { %v3799_v22 = vmul.f32 %v6647_v5, %v3795_v17  ;;  %v6649_v23 = vpop.eup %6648  ;;  %v6329_v17 = vpack.c.bf16 %v4146_v6, %v4145_v11  ;;  %v4147_v5 = vld [vmem:[%s8096_s12 + $0x20] sm:$0xff] }
0x1048   :  { %v3800_v29 = vadd.f32 %v3798_v15, %v7618_v37  ;;  %v6651_v19 = vpop.eup %6650  ;;  %v3786_v52 = vadd.f32 1.0, %v6649_v23  ;;  %v4148_v15 = vld [vmem:[%s8096_s12 + $0x28] sm:$0xff]  ;;  %v4150_v23 = vld [vmem:[%s8096_s12 + $0x38] sm:$0xff] }
0x1049   :  { %v3801_v20 = vadd.f32 %v3799_v22, %v7616_v46  ;;  %v3787_v24 = vadd.f32 1.0, %v6651_v19  ;;  %v6332_v22 = vpack.c.bf16 %v4148_v15, %v4147_v5  ;;  %v4151_v19 = vld [vmem:[%s8096_s12 + $0x40] sm:$0xff]  ;;  %v4156_v15 = vld [vmem:[%s8096_s12 + $0x68] sm:$0xff] }
0x104a   :  { %6652 = vtanh.f32 %v3800_v29  ;;  %v4149_v29 = vld [vmem:[%s8096_s12 + $0x30] sm:$0xff]  ;;  %v4155_v5 = vld [vmem:[%s8096_s12 + $0x60] sm:$0xff] }
0x104b   :  { %6654 = vtanh.f32 %v3801_v20  ;;  %v6335_v20 = vpack.c.bf16 %v4150_v23, %v4149_v29  ;;  %v4157_v29 = vld [vmem:[%s8096_s12 + $0x70] sm:$0xff]  ;;  %v4158_v23 = vld [vmem:[%s8096_s12 + $0x78] sm:$0xff] }
0x104c   :  { %6656 = vrcp.f32 %v3786_v52  ;;  %v4152_v52 = vld [vmem:[%s8096_s12 + $0x48] sm:$0xff] }
0x104d   :  { %6658 = vrcp.f32 %v3787_v24  ;;  %v6338_v24 = vpack.c.bf16 %v4152_v52, %v4151_v19  ;;  %v4331_v19 = vld [vmem:[%s8095_s11] ss:$0 sm:$0xff] }
0x1054   :  { %v6653_v38 = vpop.eup %6652 }
0x1055   :  { %v6655_v4 = vpop.eup %6654  ;;  %v3806_v13 = vrot.slane %v6653_v38, 1 }
0x1056   :  { %v3807_v27 = vrot.slane %v6655_v4, 1  ;;  %v6657_v35 = vpop.eup %6656 }
0x1057   :  { %v3810_v48 = vsub.f32 %v7879_v12, %v3806_v13  ;;  %v6659_v3 = vpop.eup %6658  ;;  %v4045_v12 = vld [vmem:[%s8094_s10] sm:$0xff] }
0x1058   :  { %v3811_v57 = vsub.f32 %v7881_v25, %v3807_v27  ;;  %v4046_v25 = vld [vmem:[%s8094_s10 + $0x8] sm:$0xff] }
0x1059   :  { %v3814_v45 = vrot.slane %v3810_v48, 7  ;;  %v6302_v34 = vpack.c.bf16 %v4046_v25, %v4045_v12 }
0x105a   :  { %v3815_v8 = vrot.slane %v3811_v57, 7 }
0x105b   :  { %v3818_v49 = vmul.f32 %v6657_v35, %v3814_v45 }
0x105c   :  { %v3819_v40 = vmul.f32 %v6659_v3, %v3815_v8 }
0x105d   :  { %v7935_v50 = vadd.f32 %v6653_v38, %v3818_v49 }
0x105e   :  { %v7937_v61 = vadd.f32 %v6655_v4, %v3819_v40 }
0x105f   :  { %v3824_v58 = vrot.slane %v7935_v50, 6 }
0x1060   :  { %v3825_v36 = vrot.slane %v7937_v61, 5 }
0x1062   :  { %v3826_v9 = vsel %vm524_vm2, %v3825_v36, %v3824_v58 }
0x1063   :  { %3893 = vmatmul.mubr.f32.vlgmr.msra.gmra.mrb[38].mxu0 %v3826_v9  ;;  %5261 = vmatmul.mubr.f32.vlgmr.msra.gmra.mrb[34].mxu1 %v3826_v9 }
0x1064   :  { %5295 = vmatprep.mubr.msk.f32.mxu0 %vm6785_vm1, %v6783_v1  ;;  %5330 = vmatprep.mubr.msk.f32.mxu1 %vm6785_vm1, %v6783_v1  ;;  %v4048_v1 = vld [vmem:[%s8094_s10 + $0x18] sm:$0xff]  ;;  %s6786_s10 = smov [#allocation10]  }
0x1065   :  { %6303 = vmatpush3.bf16.msra.mxu0 %v6302_v34  ;;  %v6305_v42 = vpack.c.bf16 %v4048_v1, %v4047_v43  ;;  %6327 = vmatpush3.bf16.msra.mxu1 %v6326_v14  ;;  %s4245_s3 = sshll.u32 %s6786_s10, 4  ;;  %s4246_s3 = int_to_ptr.vmem [resolvable:$true] %s4245_s3 }
0x1066   :  { %6304 = vmatprep.subr.bf16.mxu0 %v6784_v41  ;;  %6328 = vmatprep.subr.bf16.mxu1 %v6784_v41  ;;  %s6750_s4 = scalar_lea.vmem %s4246_s3, 64  ;;  %p6755_p11 = scmp.lt.s32.totalorder %s4246_s3, %s4246_s3 }
0x1067   :  { %p6751_p10 = scmp.ne.s32.totalorder %s4246_s3, %s6750_s4  ;;  %p6756_p12 = scmp.lt.s32.totalorder %s6750_s4, %s6750_s4 }
0x1069   :  { %6306 = vmatpush3.bf16.msra.mxu0 %v6305_v42  ;;  %6330 = vmatpush3.bf16.msra.mxu1 %v6329_v17  ;;  %p6757_p13 = por %p6756_p12, %p6755_p11 }
0x106a   :  { %6307 = vmatprep.subr.bf16.mxu0 %v6784_v41  ;;  %6331 = vmatprep.subr.bf16.mxu1 %v6784_v41 }
0x106b   :  { %p6758_p0 = pnand %p6757_p13, %p6751_p10 }
0x106d   :  { %6309 = vmatpush3.bf16.msra.mxu0 %v6308_v7  ;;  %6333 = vmatpush3.bf16.msra.mxu1 %v6332_v22  ;;  %v6344_v22 = vpack.c.bf16 %v4156_v15, %v4155_v5 }
0x106e   :  { %6310 = vmatprep.subr.bf16.mxu0 %v6784_v41  ;;  %6334 = vmatprep.subr.bf16.mxu1 %v6784_v41 }
0x1071   :  { %6312 = vmatpush3.bf16.msra.mxu0 %v6311_v31  ;;  %6336 = vmatpush3.bf16.msra.mxu1 %v6335_v20  ;;  %v6347_v20 = vpack.c.bf16 %v4158_v23, %v4157_v29 }
0x1072   :  { %6313 = vmatprep.subr.bf16.mxu0 %v6784_v41  ;;  %6337 = vmatprep.subr.bf16.mxu1 %v6784_v41 }
0x1075   :  { %6315 = vmatpush3.bf16.msra.mxu0 %v6314_v51  ;;  %6339 = vmatpush3.bf16.msra.mxu1 %v6338_v24 }
0x1076   :  { %6316 = vmatprep.subr.bf16.mxu0 %v6784_v41  ;;  %6340 = vmatprep.subr.bf16.mxu1 %v6784_v41 }
0x1079   :  { %6318 = vmatpush3.bf16.msra.mxu0 %v6317_v32 }
0x107a   :  { %6319 = vmatprep.subr.bf16.mxu0 %v6784_v41 }
0x107d   :  { %6321 = vmatpush3.bf16.msra.mxu0 %v6320_v54 }
0x107e   :  { %6322 = vmatprep.subr.bf16.mxu0 %v6784_v41 }
0x1081   :  { %6324 = vmatpush3.bf16.msra.mxu0 %v6323_v18 }
0x1136   :  { %v3894_v38 = vpop.f32.mrb[38].mxu0  ;;  %v3965_v4 = vpop.f32.mrb[34].mxu1 }
0x1137   :  { %v3970_v13 = vrot.slane %v3894_v38, 1  ;;  %v3971_v27 = vrot.slane %v3894_v38, 2  ;;  %v3896_v48 = vpop.f32.mrb[39].mxu0  ;;  %v5262_v57 = vpop.f32.mrb[35].mxu1 }
0x1138   :  { %v3989_v49 = vrot.slane %v3896_v48, 1  ;;  %v3990_v40 = vrot.slane %v3896_v48, 2 }
0x1139   :  { %v3974_v45 = vadd.f32 %v3970_v13, %v7594_v59  ;;  %v3975_v35 = vadd.f32 %v3971_v27, %v7596_v60  ;;  %v4007_v60 = vadd.f32 %v7928_v0, %v3965_v4 }
0x113a   :  { %v3993_v58 = vadd.f32 %v3989_v49, %v7602_v53  ;;  %v3994_v9 = vadd.f32 %v3990_v40, %v7604_v47 }
0x113b   :  { %v4327_v8 = vmul.f32 -1.442695, %v3974_v45  ;;  %v4328_v3 = vmul.f32 -1.442695, %v3975_v35  ;;  %v4009_v1 = vrot.slane %v4007_v60, 1  ;;  %v4010_v30 = vrot.slane %v4007_v60, 2 }
0x113c   :  { %v4329_v43 = vmul.f32 -1.442695, %v3993_v58  ;;  %v4330_v59 = vmul.f32 -1.442695, %v3994_v9 }
0x113d   :  { %6660 = vpow2.f32 %v4327_v8 }
0x113e   :  { %6662 = vpow2.f32 %v4328_v3 }
0x1147   :  { %v6661_v36 = vpop.eup %6660 }
0x1148   :  { %v6663_v12 = vpop.eup %6662  ;;  %v3982_v25 = vadd.f32 1.0, %v6661_v36 }
0x1149   :  { %v3983_v34 = vadd.f32 1.0, %v6663_v12 }
0x114a   :  { %6664 = vrcp.f32 %v3982_v25 }
0x114b   :  { %6666 = vrcp.f32 %v3983_v34 }
0x114c   :  { %6668 = vpow2.f32 %v4329_v43 }
0x114d   :  { %6670 = vpow2.f32 %v4330_v59 }
0x1154   :  { %v6665_v42 = vpop.eup %6664 }
0x1155   :  { %v6667_v55 = vpop.eup %6666  ;;  %v4013_v7 = vmul.f32 %v6665_v42, %v4009_v1 }
0x1156   :  { %v4014_v53 = vmul.f32 %v6667_v55, %v4010_v30  ;;  %v6669_v47 = vpop.eup %6668 }
0x1157   :  { %v4015_v26 = vadd.f32 %v4013_v7, %v7618_v37  ;;  %v6671_v31 = vpop.eup %6670  ;;  %v4001_v33 = vadd.f32 1.0, %v6669_v47 }
0x1158   :  { %v4016_v21 = vadd.f32 %v4014_v53, %v7616_v46  ;;  %v4002_v10 = vadd.f32 1.0, %v6671_v31 }
0x1159   :  { %6672 = vtanh.f32 %v4015_v26 }
0x115a   :  { %6674 = vtanh.f32 %v4016_v21 }
0x115b   :  { %6676 = vrcp.f32 %v4001_v33 }
0x115c   :  { %6678 = vrcp.f32 %v4002_v10 }
0x1163   :  { %v6673_v0 = vpop.eup %6672 }
0x1164   :  { %v6675_v51 = vpop.eup %6674  ;;  %v4021_v2 = vrot.slane %v6673_v0, 1 }
0x1165   :  { %v4022_v16 = vrot.slane %v6675_v51, 1  ;;  %v6677_v37 = vpop.eup %6676 }
0x1166   :  { %v4025_v32 = vsub.f32 %v7935_v50, %v4021_v2  ;;  %v6679_v62 = vpop.eup %6678  ;;  %v4153_v50 = vld [vmem:[%s8096_s12 + $0x50] sm:$0xff] }
0x1167   :  { %v4026_v39 = vsub.f32 %v7937_v61, %v4022_v16  ;;  %v4154_v61 = vld [vmem:[%s8096_s12 + $0x58] sm:$0xff] }
0x1168   :  { %v4029_v44 = vrot.slane %v4025_v32, 7  ;;  %v6341_v17 = vpack.c.bf16 %v4154_v61, %v4153_v50 }
0x1169   :  { %v4030_v54 = vrot.slane %v4026_v39, 7 }
0x116a   :  { %v4033_v46 = vmul.f32 %v6677_v37, %v4029_v44  ;;  %6342 = vmatpush3.bf16.msra.mxu1 %v6341_v17 }
0x116b   :  { %v4034_v63 = vmul.f32 %v6679_v62, %v4030_v54  ;;  %6343 = vmatprep.subr.bf16.mxu1 %v6784_v41 }
0x116c   :  { %v4035_v18 = vadd.f32 %v6673_v0, %v4033_v46 }
0x116d   :  { %v4036_v28 = vadd.f32 %v6675_v51, %v4034_v63 }
0x116e   :  { %4043 = vst [vmem:[#allocation10 - $0x5] sm:$0x80] %v4035_v18  ;;  %v4068_v56 = vrot.slane %v4035_v18, 7  ;;  %6345 = vmatpush3.bf16.msra.mxu1 %v6344_v22 }
0x116f   :  { %v4039_v11 = vrot.slane %v4036_v28, 7  ;;  %v4069_v14 = vrot.slane %v4036_v28, 6  ;;  %6346 = vmatprep.subr.bf16.mxu1 %v6784_v41 }
0x1171   :  { %4044 = vst [vmem:[#allocation10 + $0x3] sm:$0x1] %v4039_v11  ;;  %v4070_v6 = vsel %vm524_vm2, %v4069_v14, %v4068_v56 }
0x1172   :  { %5296 = vmatmul.mubr.f32.vlgmr.msra.gmra.mrb[40].mxu0 %v4070_v6  ;;  %6348 = vmatpush3.bf16.msra.mxu1 %v6347_v20 }
0x1245   :  { %v4138_v52 = vpop.f32.mrb[40].mxu0 }
0x1246   :  { %v4139_v24 = vadd.f32 %v4331_v19, %v4138_v52  ;;  %v5297_v38 = vpop.f32.mrb[41].mxu0 }
0x1248   :  { %6680 = vtanh.f32 %v4139_v24 }
0x1252   :  { %v6681_v4 = vpop.eup %6680 }
0x1253   :  { %5331 = vmatmul.mubr.f32.vlgmr.msra.gmra.mrb[36].mxu1 %v6681_v4 }
0x1254   :  { %6761 = shalt.err (!%p6758_p0)
}
0x1255   :  { %s6762_s11 = scalar_lea.hbm %s8099_s15, 64 }
0x1256   :  { %p6763_p1 = scmp.ne.s32.totalorder %s8099_s15, %s6762_s11  ;;  %p6766_p2 = scmp.lt.u32.totalorder %s6762_s11, %s8099_s15 }
0x1258   :  { %p6768_p3 = pnand %p6766_p2, %p6763_p1 }
0x125a   :  { %6771 = shalt.err (!%p6768_p3)
}
0x125b   :  { %s6787_s1 = smov 32   ;;  %s6788_s21 = smov 2   ;;  %v4332_v41 = vld [vmem:[#allocation3] ss:$0 sm:$0xff]  ;;  %vm4236_vm3 = vcmask 1024  }
0x125c   :  { %4251 = dma.vmem_to_hbm [thread:$0]  %s4246_s3, 64, %s8099_s15, [#allocation6], %s6787_s1, %s6787_s1, %s6788_s21  }
0x1326   :  { %v4232_v13 = vpop.f32.mrb[36].mxu1 }
0x1327   :  { %v4233_v27 = vadd.f32 %v4332_v41, %v4232_v13  ;;  %v5332_v48 = vpop.f32.mrb[37].mxu1 }
0x1329   :  { %4237 = vst.msk [vmem:[%s8098_s14] sm:$0x3] %vm4236_vm3, %v4233_v27 }
0x132a   :  { %6776 = dma.done.wait [#allocation6], 64  }
0x132b   :  { %6777 = vsyncadd [#allocation6], 4294967232 }
0x132c   :  { %4257 = vsyncpa [#allocation5], 1 }
0x132d   :  { %4258 = vsyncpa [#allocation8], 1 }
0x132e   :  { %4259 = vsyncpa [#allocation6], 1 }

</bundles_post_ra>
